<compile_context>
chip_gen: v7x
topology: tpu7x:2x2x1
jax: 0.10.0
libtpu: 0.0.40
codegen_flags: <defaults>
</compile_context>

<pallas_src>
import functools

import jax
import jax.numpy as jnp
from jax import lax
from jax.experimental import pallas as pl
from jax.experimental.pallas import tpu as pltpu


def _conv3x3_taps(src_pad_ref, w_ref, rows, W, C):
    """Tap-wise 3x3 conv over `rows` output rows.

    src_pad_ref : (rows+2, Wp, C) bf16, zero 1-px halo inside cols [0, W+2)
    w_ref       : (9*C, C) bf16, rows ordered (kh, kw, cin)
    returns     : (rows*W, C) f32 accumulator
    """
    acc = None
    for tap in range(9):
        kh, kw = divmod(tap, 3)
        lhs = src_pad_ref[kh:kh + rows, kw:kw + W, :].reshape(rows * W, C)
        part = jnp.dot(lhs, w_ref[tap * C:(tap + 1) * C, :],
                       preferred_element_type=jnp.float32)
        acc = part if acc is None else acc + part
    return acc


def _basic_block_kernel(x_ref, w1_ref, b1_ref, w2_ref, b2_ref, out_ref,
                        xpad_ref, midpad_ref):
    """One (batch, row-tile) grid step of the fused BasicBlock.

    x_ref      : (1, H, W, C)   bf16  full image (resident across row tiles)
    w1_ref     : (9*C, C)       bf16  conv1 weights * bn1 scale (im2col rows)
    b1_ref     : (1, C)         f32   folded bn1 bias
    w2_ref     : (9*C, C)       bf16  conv2 weights * bn2 scale
    b2_ref     : (1, C)         f32   folded bn2 bias
    out_ref    : (1, TH, W, C)  f32   output row tile
    xpad_ref   : (TH+4, Wp, C)  bf16  scratch: halo-padded input rows
    midpad_ref : (TH+2, Wp, C)  bf16  scratch: halo-padded conv1-output rows
    """
    _, H, W, C = x_ref.shape
    TH = out_ref.shape[1]
    Wp = xpad_ref.shape[1]
    bf = xpad_ref.dtype

    t = pl.program_id(1)
    nt = pl.num_programs(1)
    r0 = t * TH
    is_first = t == 0
    is_last = t == nt - 1

    # ---- Stage conv1 input rows [r0-2, r0+TH+2) with a zero 1-px halo.
    # Only the halo ring is zeroed; the interior is always fully overwritten.
    col_z4 = jnp.zeros((TH + 4, 1, C), bf)
    xpad_ref[:, 0:1, :] = col_z4
    xpad_ref[:, W + 1:W + 2, :] = col_z4
    row2_z = jnp.zeros((2, Wp, C), bf)

    @pl.when(jnp.logical_and(t > 0, t < nt - 1))
    def _stage_interior():
        xpad_ref[0:TH + 4, 1:W + 1, :] = x_ref[0, pl.ds(r0 - 2, TH + 4), :, :]

    @pl.when(is_first)
    def _stage_first():
        xpad_ref[0:2, :, :] = row2_z
        xpad_ref[2:TH + 4, 1:W + 1, :] = x_ref[0, pl.ds(0, TH + 2), :, :]

    @pl.when(is_last)
    def _stage_last():
        xpad_ref[TH + 2:TH + 4, :, :] = row2_z
        xpad_ref[0:TH + 2, 1:W + 1, :] = x_ref[0, pl.ds(r0 - 2, TH + 2), :, :]

    # ---- conv1 + bn1 + relu for rows [r0-1, r0+TH+1); epilogue fused into the
    # bf16 conv2-input scratch (conv1 activations never leave VMEM).
    acc1 = _conv3x3_taps(xpad_ref, w1_ref, TH + 2, W, C)
    y1 = jnp.maximum(acc1 + b1_ref[...], 0.0)
    midpad_ref[0:TH + 2, 1:W + 1, :] = y1.reshape(TH + 2, W, C).astype(bf)

    # midpad halo: zero side columns; top/bottom rows are real conv1 outputs
    # except at the image border, where conv2's own zero padding applies.
    col_z2 = jnp.zeros((TH + 2, 1, C), bf)
    midpad_ref[:, 0:1, :] = col_z2
    midpad_ref[:, W + 1:W + 2, :] = col_z2
    row1_z = jnp.zeros((1, Wp, C), bf)

    @pl.when(is_first)
    def _zero_top():
        midpad_ref[0:1, :, :] = row1_z

    @pl.when(is_last)
    def _zero_bottom():
        midpad_ref[TH + 1:TH + 2, :, :] = row1_z

    # ---- conv2 + bn2 + residual + relu for rows [r0, r0+TH).
    acc2 = _conv3x3_taps(midpad_ref, w2_ref, TH, W, C)
    resid = xpad_ref[2:TH + 2, 1:W + 1, :].astype(jnp.float32).reshape(TH * W, C)
    y2 = jnp.maximum(acc2 + b2_ref[...] + resid, 0.0)
    out_ref[...] = y2.reshape(1, TH, W, C).astype(out_ref.dtype)


def _fold_bn(gamma, beta, mean, var, eps=1e-5):
    scale = gamma / jnp.sqrt(var + eps)
    return scale, beta - mean * scale


def _pick_row_tile(h):
    # Need nt >= 2 (pipelining depth / both v7x cores) and th + 4 <= h
    # (per-tile halo staging reads th+2 input rows at the borders).
    for cand in (16, 8, 32, 4, 2, 1):
        if h % cand == 0 and h // cand >= 2 and cand + 4 <= h:
            return cand
    raise NotImplementedError("BasicBlock Pallas kernel needs H >= 8 with a "
                              "usable row-tile divisor")


@functools.partial(jax.jit, static_argnames=("compute_dtype",))
def basic_block_forward(x_nchw, params, compute_dtype=jnp.bfloat16):
    """BasicBlock forward (stride=1, downsample=None). Input/output: NCHW f32."""
    B, C, H, W = x_nchw.shape
    if C % 128 != 0:
        # TODO(synk): masked-lane path for C < 128 (first ResNet stages).
        raise NotImplementedError("C must be a multiple of 128")
    th = _pick_row_tile(H)
    nt = H // th
    wp = ((W + 2 + 15) // 16) * 16     # sublane-aligned padded scratch width (bf16)

    # NCHW -> NHWC, bf16 MXU input (halves HBM traffic; the residual uses the
    # same bf16-rounded x). TODO(synk): keep the whole net NHWC to avoid the
    # per-block layout transposes.
    x = jnp.transpose(x_nchw, (0, 2, 3, 1)).astype(compute_dtype)

    s1, b1 = _fold_bn(params["bn1_gamma"], params["bn1_beta"],
                      params["bn1_mean"], params["bn1_var"])
    s2, b2 = _fold_bn(params["bn2_gamma"], params["bn2_beta"],
                      params["bn2_mean"], params["bn2_var"])

    # torch OIHW (Cout,Cin,3,3) -> HWIO (3,3,Cin,Cout), fold BN scale into the
    # Cout axis, flatten to im2col rows ordered (kh, kw, cin).
    def fold_w(w_oihw, scale):
        w = jnp.transpose(w_oihw, (2, 3, 1, 0)) * scale
        return w.reshape(9 * C, C).astype(compute_dtype)

    w1f = fold_w(params["w1"], s1)
    w2f = fold_w(params["w2"], s2)

    out = pl.pallas_call(
        _basic_block_kernel,
        out_shape=jax.ShapeDtypeStruct((B, H, W, C), jnp.float32),
        grid=(B, nt),
        in_specs=[
            pl.BlockSpec((1, H, W, C), lambda b, t: (b, 0, 0, 0)),   # x (resident over t)
            pl.BlockSpec((9 * C, C), lambda b, t: (0, 0)),           # w1 (folded)
            pl.BlockSpec((1, C), lambda b, t: (0, 0)),               # b1
            pl.BlockSpec((9 * C, C), lambda b, t: (0, 0)),           # w2 (folded)
            pl.BlockSpec((1, C), lambda b, t: (0, 0)),               # b2
        ],
        out_specs=pl.BlockSpec((1, th, W, C), lambda b, t: (b, t, 0, 0)),
        scratch_shapes=[
            pltpu.VMEM((th + 4, wp, C), compute_dtype),   # padded conv1 input rows
            pltpu.VMEM((th + 2, wp, C), compute_dtype),   # padded conv1 output rows
        ],
        compiler_params=pltpu.CompilerParams(
            dimension_semantics=("parallel", "parallel"),
            vmem_limit_bytes=32 * 1024 * 1024),
    )(x, w1f, b1.reshape(1, C), w2f, b2.reshape(1, C))

    return jnp.transpose(out, (0, 3, 1, 2))               # NHWC -> NCHW


def _reference_forward(x_nchw, params, compute_dtype=jnp.float32):
    """Pure-JAX reference. compute_dtype=bf16 mirrors the kernel's MXU-input
    rounding (incl. the bf16-rounded residual); f32 is the exact module math."""
    B, C, H, W = x_nchw.shape
    x = jnp.transpose(x_nchw, (0, 2, 3, 1))
    if compute_dtype != jnp.float32:
        x = x.astype(compute_dtype).astype(jnp.float32)

    s1, b1 = _fold_bn(params["bn1_gamma"], params["bn1_beta"],
                      params["bn1_mean"], params["bn1_var"])
    s2, b2 = _fold_bn(params["bn2_gamma"], params["bn2_beta"],
                      params["bn2_mean"], params["bn2_var"])

    def to_hwio(w_oihw, scale):
        return (jnp.transpose(w_oihw, (2, 3, 1, 0)) * scale).astype(compute_dtype)

    w1 = to_hwio(params["w1"], s1)
    w2 = to_hwio(params["w2"], s2)
    dn = lax.conv_dimension_numbers(x.shape, w1.shape, ("NHWC", "HWIO", "NHWC"))

    def conv(v, w):
        return lax.conv_general_dilated(
            v.astype(compute_dtype), w, (1, 1), ((1, 1), (1, 1)),
            dimension_numbers=dn, preferred_element_type=jnp.float32)

    out = jnp.maximum(conv(x, w1) + b1, 0.0)
    out = conv(out, w2) + b2
    out = jnp.maximum(out + x, 0.0)
    return jnp.transpose(out, (0, 3, 1, 2))


if __name__ == "__main__":
    # ResNet-18/34 "layer2"-style BasicBlock: inplanes = planes = 128, stride 1.
    B, C, H, W = 2, 128, 16, 16
    key = jax.random.PRNGKey(0)
    ks = jax.random.split(key, 11)

    x = jax.random.normal(ks[0], (B, C, H, W), jnp.float32)
    w_std = (9 * C) ** -0.5
    params = {
        # conv weights in torch OIHW layout: (Cout, Cin, 3, 3)
        "w1": jax.random.normal(ks[1], (C, C, 3, 3), jnp.float32) * w_std,
        "w2": jax.random.normal(ks[2], (C, C, 3, 3), jnp.float32) * w_std,
        "bn1_gamma": jax.random.uniform(ks[3], (C,), jnp.float32, 0.5, 1.5),
        "bn1_beta": jax.random.normal(ks[4], (C,), jnp.float32) * 0.1,
        "bn1_mean": jax.random.normal(ks[5], (C,), jnp.float32) * 0.1,
        "bn1_var": jax.random.uniform(ks[6], (C,), jnp.float32, 0.5, 1.5),
        "bn2_gamma": jax.random.uniform(ks[7], (C,), jnp.float32, 0.5, 1.5),
        "bn2_beta": jax.random.normal(ks[8], (C,), jnp.float32) * 0.1,
        "bn2_mean": jax.random.normal(ks[9], (C,), jnp.float32) * 0.1,
        "bn2_var": jax.random.uniform(ks[10], (C,), jnp.float32, 0.5, 1.5),
    }

    out = jax.block_until_ready(basic_block_forward(x, params))
    assert out.shape == (B, C, H, W) and out.dtype == jnp.float32

    # Tight check vs. a reference using the same bf16 MXU-input rounding.
    ref_bf16 = _reference_forward(x, params, compute_dtype=jnp.bfloat16)
    assert jnp.allclose(out, ref_bf16, atol=5e-3, rtol=5e-3), "mismatch vs bf16 reference"

    # Loose sanity check vs. exact f32 module semantics.
    ref_f32 = _reference_forward(x, params, compute_dtype=jnp.float32)
    assert jnp.allclose(out, ref_f32, atol=1e-1, rtol=1e-1), "mismatch vs f32 reference"

    print("KERNEL_OK")
</pallas_src>

<mosaic_0001>
module attributes {stable_mosaic.version = 11 : i64} {
  func.func @_basic_block_kernel(%arg0: i32, %arg1: i32, %arg2: memref<1x16x16x128xbf16, #tpu.memory_space<vmem>>, %arg3: memref<1152x128xbf16, #tpu.memory_space<vmem>>, %arg4: memref<1x128xf32, #tpu.memory_space<vmem>>, %arg5: memref<1152x128xbf16, #tpu.memory_space<vmem>>, %arg6: memref<1x128xf32, #tpu.memory_space<vmem>>, %arg7: memref<1x8x16x128xf32, #tpu.memory_space<vmem>>, %arg8: memref<12x32x128xbf16, #tpu.memory_space<vmem>>, %arg9: memref<10x32x128xbf16, #tpu.memory_space<vmem>>) attributes {dimension_semantics = [#tpu.dimension_semantics<parallel>, #tpu.dimension_semantics<parallel>], iteration_bounds = array<i64: 2, 2>, scalar_prefetch = 0 : i64, scratch_operands = 2 : i64, tpu.core_type = #tpu.core_type<tc>, window_params = [{transform_indices = @transform_0, window_bounds = array<i64: 1, 16, 16, 128>}, {pipeline_mode = #tpu.pipeline_mode<synchronous>, transform_indices = @transform_1, window_bounds = array<i64: 1152, 128>}, {pipeline_mode = #tpu.pipeline_mode<synchronous>, transform_indices = @transform_2, window_bounds = array<i64: 1, 128>}, {pipeline_mode = #tpu.pipeline_mode<synchronous>, transform_indices = @transform_3, window_bounds = array<i64: 1152, 128>}, {pipeline_mode = #tpu.pipeline_mode<synchronous>, transform_indices = @transform_4, window_bounds = array<i64: 1, 128>}, {transform_indices = @transform_5, window_bounds = array<i64: 1, 8, 16, 128>}]} {
    %c8_i32 = arith.constant 8 : i32
    %0 = arith.muli %arg1, %c8_i32 : i32
    %c0_i32 = arith.constant 0 : i32
    %1 = arith.cmpi eq, %arg1, %c0_i32 : i32
    %c1_i32 = arith.constant 1 : i32
    %2 = arith.cmpi eq, %arg1, %c1_i32 : i32
    %cst = arith.constant 0.000000e+00 : bf16
    %3 = vector.broadcast %cst : bf16 to vector<12x1x128xbf16>
    %c0 = arith.constant 0 : index
    %c0_0 = arith.constant 0 : index
    %c0_1 = arith.constant 0 : index
    %4 = vector.load %arg8[%c0, %c0_0, %c0_1] : memref<12x32x128xbf16, #tpu.memory_space<vmem>>, vector<12x1x128xbf16>
    tpu.vector_store %arg8[%c0, %c0_0, %c0_1], %3 {strides = array<i32>} : memref<12x32x128xbf16, #tpu.memory_space<vmem>>, vector<12x1x128xbf16>,
    %c0_2 = arith.constant 0 : index
    %c17 = arith.constant 17 : index
    %c0_3 = arith.constant 0 : index
    %5 = vector.load %arg8[%c0_2, %c17, %c0_3] : memref<12x32x128xbf16, #tpu.memory_space<vmem>>, vector<12x1x128xbf16>
    tpu.vector_store %arg8[%c0_2, %c17, %c0_3], %3 {strides = array<i32>} : memref<12x32x128xbf16, #tpu.memory_space<vmem>>, vector<12x1x128xbf16>,
    %cst_4 = arith.constant 0.000000e+00 : bf16
    %6 = vector.broadcast %cst_4 : bf16 to vector<2x32x128xbf16>
    %c0_i32_5 = arith.constant 0 : i32
    %7 = arith.cmpi sgt, %arg1, %c0_i32_5 : i32
    %c1_i32_6 = arith.constant 1 : i32
    %8 = arith.cmpi slt, %arg1, %c1_i32_6 : i32
    %9 = arith.andi %7, %8 : i1
    %10 = arith.extui %9 : i1 to i32
    %c0_i32_7 = arith.constant 0 : i32
    %11 = arith.cmpi ne, %10, %c0_i32_7 : i32
    scf.if %11 {
      %c2_i32 = arith.constant 2 : i32
      %131 = arith.subi %0, %c2_i32 : i32
      %c0_134 = arith.constant 0 : index
      %132 = arith.index_cast %131 : i32 to index
      %c0_135 = arith.constant 0 : index
      %c0_136 = arith.constant 0 : index
      %133 = vector.load %arg2[%c0_134, %132, %c0_135, %c0_136] : memref<1x16x16x128xbf16, #tpu.memory_space<vmem>>, vector<1x12x16x128xbf16>
      %134 = vector.shape_cast %133 : vector<1x12x16x128xbf16> to vector<12x16x128xbf16>
      %c0_137 = arith.constant 0 : index
      %c1_138 = arith.constant 1 : index
      %c0_139 = arith.constant 0 : index
      %135 = vector.load %arg8[%c0_137, %c1_138, %c0_139] : memref<12x32x128xbf16, #tpu.memory_space<vmem>>, vector<12x16x128xbf16>
      tpu.vector_store %arg8[%c0_137, %c1_138, %c0_139], %134 {strides = array<i32>} : memref<12x32x128xbf16, #tpu.memory_space<vmem>>, vector<12x16x128xbf16>,
    } else {
    }
    %12 = arith.extui %1 : i1 to i32
    %c0_i32_8 = arith.constant 0 : i32
    %13 = arith.cmpi ne, %12, %c0_i32_8 : i32
    scf.if %13 {
      %c0_134 = arith.constant 0 : index
      %c0_135 = arith.constant 0 : index
      %c0_136 = arith.constant 0 : index
      %131 = vector.load %arg8[%c0_134, %c0_135, %c0_136] : memref<12x32x128xbf16, #tpu.memory_space<vmem>>, vector<2x32x128xbf16>
      tpu.vector_store %arg8[%c0_134, %c0_135, %c0_136], %6 {strides = array<i32>} : memref<12x32x128xbf16, #tpu.memory_space<vmem>>, vector<2x32x128xbf16>,
      %c0_137 = arith.constant 0 : index
      %c0_138 = arith.constant 0 : index
      %c0_139 = arith.constant 0 : index
      %c0_140 = arith.constant 0 : index
      %132 = vector.load %arg2[%c0_137, %c0_138, %c0_139, %c0_140] : memref<1x16x16x128xbf16, #tpu.memory_space<vmem>>, vector<1x10x16x128xbf16>
      %133 = vector.shape_cast %132 : vector<1x10x16x128xbf16> to vector<10x16x128xbf16>
      %c2_141 = arith.constant 2 : index
      %c1_142 = arith.constant 1 : index
      %c0_143 = arith.constant 0 : index
      %134 = vector.load %arg8[%c2_141, %c1_142, %c0_143] : memref<12x32x128xbf16, #tpu.memory_space<vmem>>, vector<10x16x128xbf16>
      tpu.vector_store %arg8[%c2_141, %c1_142, %c0_143], %133 {strides = array<i32>} : memref<12x32x128xbf16, #tpu.memory_space<vmem>>, vector<10x16x128xbf16>,
    } else {
    }
    %14 = arith.extui %2 : i1 to i32
    %c0_i32_9 = arith.constant 0 : i32
    %15 = arith.cmpi ne, %14, %c0_i32_9 : i32
    scf.if %15 {
      %c10 = arith.constant 10 : index
      %c0_134 = arith.constant 0 : index
      %c0_135 = arith.constant 0 : index
      %131 = vector.load %arg8[%c10, %c0_134, %c0_135] : memref<12x32x128xbf16, #tpu.memory_space<vmem>>, vector<2x32x128xbf16>
      tpu.vector_store %arg8[%c10, %c0_134, %c0_135], %6 {strides = array<i32>} : memref<12x32x128xbf16, #tpu.memory_space<vmem>>, vector<2x32x128xbf16>,
      %c2_i32 = arith.constant 2 : i32
      %132 = arith.subi %0, %c2_i32 : i32
      %c0_136 = arith.constant 0 : index
      %133 = arith.index_cast %132 : i32 to index
      %c0_137 = arith.constant 0 : index
      %c0_138 = arith.constant 0 : index
      %134 = vector.load %arg2[%c0_136, %133, %c0_137, %c0_138] : memref<1x16x16x128xbf16, #tpu.memory_space<vmem>>, vector<1x10x16x128xbf16>
      %135 = vector.shape_cast %134 : vector<1x10x16x128xbf16> to vector<10x16x128xbf16>
      %c0_139 = arith.constant 0 : index
      %c1_140 = arith.constant 1 : index
      %c0_141 = arith.constant 0 : index
      %136 = vector.load %arg8[%c0_139, %c1_140, %c0_141] : memref<12x32x128xbf16, #tpu.memory_space<vmem>>, vector<10x16x128xbf16>
      tpu.vector_store %arg8[%c0_139, %c1_140, %c0_141], %135 {strides = array<i32>} : memref<12x32x128xbf16, #tpu.memory_space<vmem>>, vector<10x16x128xbf16>,
    } else {
    }
    %c0_10 = arith.constant 0 : index
    %c0_11 = arith.constant 0 : index
    %c0_12 = arith.constant 0 : index
    %16 = vector.load %arg8[%c0_10, %c0_11, %c0_12] : memref<12x32x128xbf16, #tpu.memory_space<vmem>>, vector<10x16x128xbf16>
    %17 = vector.shape_cast %16 : vector<10x16x128xbf16> to vector<160x128xbf16>
    %c0_13 = arith.constant 0 : index
    %c0_14 = arith.constant 0 : index
    %18 = vector.load %arg3[%c0_13, %c0_14] : memref<1152x128xbf16, #tpu.memory_space<vmem>>, vector<128x128xbf16>
    %cst_15 = arith.constant dense<0.000000e+00> : vector<160x128xf32>
    %19 = tpu.matmul %17, %18, %cst_15 {dimension_numbers = #tpu.dot_dimension_numbers<[1], [0], [0], [1], [0, 0, 1, 1], [], []>} : vector<160x128xbf16>, vector<128x128xbf16>, vector<160x128xf32> -> vector<160x128xf32>
    %c0_16 = arith.constant 0 : index
    %c1 = arith.constant 1 : index
    %c0_17 = arith.constant 0 : index
    %20 = vector.load %arg8[%c0_16, %c1, %c0_17] : memref<12x32x128xbf16, #tpu.memory_space<vmem>>, vector<10x16x128xbf16>
    %21 = vector.shape_cast %20 : vector<10x16x128xbf16> to vector<160x128xbf16>
    %c128 = arith.constant 128 : index
    %c0_18 = arith.constant 0 : index
    %22 = vector.load %arg3[%c128, %c0_18] : memref<1152x128xbf16, #tpu.memory_space<vmem>>, vector<128x128xbf16>
    %cst_19 = arith.constant dense<0.000000e+00> : vector<160x128xf32>
    %23 = tpu.matmul %21, %22, %cst_19 {dimension_numbers = #tpu.dot_dimension_numbers<[1], [0], [0], [1], [0, 0, 1, 1], [], []>} : vector<160x128xbf16>, vector<128x128xbf16>, vector<160x128xf32> -> vector<160x128xf32>
    %24 = arith.addf %19, %23 : vector<160x128xf32>
    %c0_20 = arith.constant 0 : index
    %c2 = arith.constant 2 : index
    %c0_21 = arith.constant 0 : index
    %25 = vector.load %arg8[%c0_20, %c2, %c0_21] : memref<12x32x128xbf16, #tpu.memory_space<vmem>>, vector<10x16x128xbf16>
    %26 = vector.shape_cast %25 : vector<10x16x128xbf16> to vector<160x128xbf16>
    %c256 = arith.constant 256 : index
    %c0_22 = arith.constant 0 : index
    %27 = vector.load %arg3[%c256, %c0_22] : memref<1152x128xbf16, #tpu.memory_space<vmem>>, vector<128x128xbf16>
    %cst_23 = arith.constant dense<0.000000e+00> : vector<160x128xf32>
    %28 = tpu.matmul %26, %27, %cst_23 {dimension_numbers = #tpu.dot_dimension_numbers<[1], [0], [0], [1], [0, 0, 1, 1], [], []>} : vector<160x128xbf16>, vector<128x128xbf16>, vector<160x128xf32> -> vector<160x128xf32>
    %29 = arith.addf %24, %28 : vector<160x128xf32>
    %c1_24 = arith.constant 1 : index
    %c0_25 = arith.constant 0 : index
    %c0_26 = arith.constant 0 : index
    %30 = vector.load %arg8[%c1_24, %c0_25, %c0_26] : memref<12x32x128xbf16, #tpu.memory_space<vmem>>, vector<10x16x128xbf16>
    %31 = vector.shape_cast %30 : vector<10x16x128xbf16> to vector<160x128xbf16>
    %c384 = arith.constant 384 : index
    %c0_27 = arith.constant 0 : index
    %32 = vector.load %arg3[%c384, %c0_27] : memref<1152x128xbf16, #tpu.memory_space<vmem>>, vector<128x128xbf16>
    %cst_28 = arith.constant dense<0.000000e+00> : vector<160x128xf32>
    %33 = tpu.matmul %31, %32, %cst_28 {dimension_numbers = #tpu.dot_dimension_numbers<[1], [0], [0], [1], [0, 0, 1, 1], [], []>} : vector<160x128xbf16>, vector<128x128xbf16>, vector<160x128xf32> -> vector<160x128xf32>
    %34 = arith.addf %29, %33 : vector<160x128xf32>
    %c1_29 = arith.constant 1 : index
    %c1_30 = arith.constant 1 : index
    %c0_31 = arith.constant 0 : index
    %35 = vector.load %arg8[%c1_29, %c1_30, %c0_31] : memref<12x32x128xbf16, #tpu.memory_space<vmem>>, vector<10x16x128xbf16>
    %36 = vector.shape_cast %35 : vector<10x16x128xbf16> to vector<160x128xbf16>
    %c512 = arith.constant 512 : index
    %c0_32 = arith.constant 0 : index
    %37 = vector.load %arg3[%c512, %c0_32] : memref<1152x128xbf16, #tpu.memory_space<vmem>>, vector<128x128xbf16>
    %cst_33 = arith.constant dense<0.000000e+00> : vector<160x128xf32>
    %38 = tpu.matmul %36, %37, %cst_33 {dimension_numbers = #tpu.dot_dimension_numbers<[1], [0], [0], [1], [0, 0, 1, 1], [], []>} : vector<160x128xbf16>, vector<128x128xbf16>, vector<160x128xf32> -> vector<160x128xf32>
    %39 = arith.addf %34, %38 : vector<160x128xf32>
    %c1_34 = arith.constant 1 : index
    %c2_35 = arith.constant 2 : index
    %c0_36 = arith.constant 0 : index
    %40 = vector.load %arg8[%c1_34, %c2_35, %c0_36] : memref<12x32x128xbf16, #tpu.memory_space<vmem>>, vector<10x16x128xbf16>
    %41 = vector.shape_cast %40 : vector<10x16x128xbf16> to vector<160x128xbf16>
    %c640 = arith.constant 640 : index
    %c0_37 = arith.constant 0 : index
    %42 = vector.load %arg3[%c640, %c0_37] : memref<1152x128xbf16, #tpu.memory_space<vmem>>, vector<128x128xbf16>
    %cst_38 = arith.constant dense<0.000000e+00> : vector<160x128xf32>
    %43 = tpu.matmul %41, %42, %cst_38 {dimension_numbers = #tpu.dot_dimension_numbers<[1], [0], [0], [1], [0, 0, 1, 1], [], []>} : vector<160x128xbf16>, vector<128x128xbf16>, vector<160x128xf32> -> vector<160x128xf32>
    %44 = arith.addf %39, %43 : vector<160x128xf32>
    %c2_39 = arith.constant 2 : index
    %c0_40 = arith.constant 0 : index
    %c0_41 = arith.constant 0 : index
    %45 = vector.load %arg8[%c2_39, %c0_40, %c0_41] : memref<12x32x128xbf16, #tpu.memory_space<vmem>>, vector<10x16x128xbf16>
    %46 = vector.shape_cast %45 : vector<10x16x128xbf16> to vector<160x128xbf16>
    %c768 = arith.constant 768 : index
    %c0_42 = arith.constant 0 : index
    %47 = vector.load %arg3[%c768, %c0_42] : memref<1152x128xbf16, #tpu.memory_space<vmem>>, vector<128x128xbf16>
    %cst_43 = arith.constant dense<0.000000e+00> : vector<160x128xf32>
    %48 = tpu.matmul %46, %47, %cst_43 {dimension_numbers = #tpu.dot_dimension_numbers<[1], [0], [0], [1], [0, 0, 1, 1], [], []>} : vector<160x128xbf16>, vector<128x128xbf16>, vector<160x128xf32> -> vector<160x128xf32>
    %49 = arith.addf %44, %48 : vector<160x128xf32>
    %c2_44 = arith.constant 2 : index
    %c1_45 = arith.constant 1 : index
    %c0_46 = arith.constant 0 : index
    %50 = vector.load %arg8[%c2_44, %c1_45, %c0_46] : memref<12x32x128xbf16, #tpu.memory_space<vmem>>, vector<10x16x128xbf16>
    %51 = vector.shape_cast %50 : vector<10x16x128xbf16> to vector<160x128xbf16>
    %c896 = arith.constant 896 : index
    %c0_47 = arith.constant 0 : index
    %52 = vector.load %arg3[%c896, %c0_47] : memref<1152x128xbf16, #tpu.memory_space<vmem>>, vector<128x128xbf16>
    %cst_48 = arith.constant dense<0.000000e+00> : vector<160x128xf32>
    %53 = tpu.matmul %51, %52, %cst_48 {dimension_numbers = #tpu.dot_dimension_numbers<[1], [0], [0], [1], [0, 0, 1, 1], [], []>} : vector<160x128xbf16>, vector<128x128xbf16>, vector<160x128xf32> -> vector<160x128xf32>
    %54 = arith.addf %49, %53 : vector<160x128xf32>
    %c2_49 = arith.constant 2 : index
    %c2_50 = arith.constant 2 : index
    %c0_51 = arith.constant 0 : index
    %55 = vector.load %arg8[%c2_49, %c2_50, %c0_51] : memref<12x32x128xbf16, #tpu.memory_space<vmem>>, vector<10x16x128xbf16>
    %56 = vector.shape_cast %55 : vector<10x16x128xbf16> to vector<160x128xbf16>
    %c1024 = arith.constant 1024 : index
    %c0_52 = arith.constant 0 : index
    %57 = vector.load %arg3[%c1024, %c0_52] : memref<1152x128xbf16, #tpu.memory_space<vmem>>, vector<128x128xbf16>
    %cst_53 = arith.constant dense<0.000000e+00> : vector<160x128xf32>
    %58 = tpu.matmul %56, %57, %cst_53 {dimension_numbers = #tpu.dot_dimension_numbers<[1], [0], [0], [1], [0, 0, 1, 1], [], []>} : vector<160x128xbf16>, vector<128x128xbf16>, vector<160x128xf32> -> vector<160x128xf32>
    %59 = arith.addf %54, %58 : vector<160x128xf32>
    %c0_54 = arith.constant 0 : index
    %c0_55 = arith.constant 0 : index
    %60 = vector.load %arg4[%c0_54, %c0_55] : memref<1x128xf32, #tpu.memory_space<vmem>>, vector<1x128xf32>
    %61 = vector.broadcast %60 : vector<1x128xf32> to vector<160x128xf32>
    %62 = arith.addf %59, %61 : vector<160x128xf32>
    %cst_56 = arith.constant 0.000000e+00 : f32
    %63 = vector.broadcast %cst_56 : f32 to vector<160x128xf32>
    %64 = arith.maximumf %62, %63 : vector<160x128xf32>
    %65 = vector.shape_cast %64 : vector<160x128xf32> to vector<10x16x128xf32>
    %66 = arith.truncf %65 : vector<10x16x128xf32> to vector<10x16x128xbf16>
    %c0_57 = arith.constant 0 : index
    %c1_58 = arith.constant 1 : index
    %c0_59 = arith.constant 0 : index
    %67 = vector.load %arg9[%c0_57, %c1_58, %c0_59] : memref<10x32x128xbf16, #tpu.memory_space<vmem>>, vector<10x16x128xbf16>
    tpu.vector_store %arg9[%c0_57, %c1_58, %c0_59], %66 {strides = array<i32>} : memref<10x32x128xbf16, #tpu.memory_space<vmem>>, vector<10x16x128xbf16>,
    %cst_60 = arith.constant 0.000000e+00 : bf16
    %68 = vector.broadcast %cst_60 : bf16 to vector<10x1x128xbf16>
    %c0_61 = arith.constant 0 : index
    %c0_62 = arith.constant 0 : index
    %c0_63 = arith.constant 0 : index
    %69 = vector.load %arg9[%c0_61, %c0_62, %c0_63] : memref<10x32x128xbf16, #tpu.memory_space<vmem>>, vector<10x1x128xbf16>
    tpu.vector_store %arg9[%c0_61, %c0_62, %c0_63], %68 {strides = array<i32>} : memref<10x32x128xbf16, #tpu.memory_space<vmem>>, vector<10x1x128xbf16>,
    %c0_64 = arith.constant 0 : index
    %c17_65 = arith.constant 17 : index
    %c0_66 = arith.constant 0 : index
    %70 = vector.load %arg9[%c0_64, %c17_65, %c0_66] : memref<10x32x128xbf16, #tpu.memory_space<vmem>>, vector<10x1x128xbf16>
    tpu.vector_store %arg9[%c0_64, %c17_65, %c0_66], %68 {strides = array<i32>} : memref<10x32x128xbf16, #tpu.memory_space<vmem>>, vector<10x1x128xbf16>,
    %cst_67 = arith.constant 0.000000e+00 : bf16
    %71 = vector.broadcast %cst_67 : bf16 to vector<1x32x128xbf16>
    %72 = arith.extui %1 : i1 to i32
    %c0_i32_68 = arith.constant 0 : i32
    %73 = arith.cmpi ne, %72, %c0_i32_68 : i32
    scf.if %73 {
      %c0_134 = arith.constant 0 : index
      %c0_135 = arith.constant 0 : index
      %c0_136 = arith.constant 0 : index
      %131 = vector.load %arg9[%c0_134, %c0_135, %c0_136] : memref<10x32x128xbf16, #tpu.memory_space<vmem>>, vector<1x32x128xbf16>
      tpu.vector_store %arg9[%c0_134, %c0_135, %c0_136], %71 {strides = array<i32>} : memref<10x32x128xbf16, #tpu.memory_space<vmem>>, vector<1x32x128xbf16>,
    } else {
    }
    %74 = arith.extui %2 : i1 to i32
    %c0_i32_69 = arith.constant 0 : i32
    %75 = arith.cmpi ne, %74, %c0_i32_69 : i32
    scf.if %75 {
      %c9 = arith.constant 9 : index
      %c0_134 = arith.constant 0 : index
      %c0_135 = arith.constant 0 : index
      %131 = vector.load %arg9[%c9, %c0_134, %c0_135] : memref<10x32x128xbf16, #tpu.memory_space<vmem>>, vector<1x32x128xbf16>
      tpu.vector_store %arg9[%c9, %c0_134, %c0_135], %71 {strides = array<i32>} : memref<10x32x128xbf16, #tpu.memory_space<vmem>>, vector<1x32x128xbf16>,
    } else {
    }
    %c0_70 = arith.constant 0 : index
    %c0_71 = arith.constant 0 : index
    %c0_72 = arith.constant 0 : index
    %76 = vector.load %arg9[%c0_70, %c0_71, %c0_72] : memref<10x32x128xbf16, #tpu.memory_space<vmem>>, vector<8x16x128xbf16>
    %77 = vector.shape_cast %76 : vector<8x16x128xbf16> to vector<128x128xbf16>
    %c0_73 = arith.constant 0 : index
    %c0_74 = arith.constant 0 : index
    %78 = vector.load %arg5[%c0_73, %c0_74] : memref<1152x128xbf16, #tpu.memory_space<vmem>>, vector<128x128xbf16>
    %cst_75 = arith.constant dense<0.000000e+00> : vector<128x128xf32>
    %79 = tpu.matmul %77, %78, %cst_75 {dimension_numbers = #tpu.dot_dimension_numbers<[1], [0], [0], [1], [0, 0, 1, 1], [], []>} : vector<128x128xbf16>, vector<128x128xbf16>, vector<128x128xf32> -> vector<128x128xf32>
    %c0_76 = arith.constant 0 : index
    %c1_77 = arith.constant 1 : index
    %c0_78 = arith.constant 0 : index
    %80 = vector.load %arg9[%c0_76, %c1_77, %c0_78] : memref<10x32x128xbf16, #tpu.memory_space<vmem>>, vector<8x16x128xbf16>
    %81 = vector.shape_cast %80 : vector<8x16x128xbf16> to vector<128x128xbf16>
    %c128_79 = arith.constant 128 : index
    %c0_80 = arith.constant 0 : index
    %82 = vector.load %arg5[%c128_79, %c0_80] : memref<1152x128xbf16, #tpu.memory_space<vmem>>, vector<128x128xbf16>
    %cst_81 = arith.constant dense<0.000000e+00> : vector<128x128xf32>
    %83 = tpu.matmul %81, %82, %cst_81 {dimension_numbers = #tpu.dot_dimension_numbers<[1], [0], [0], [1], [0, 0, 1, 1], [], []>} : vector<128x128xbf16>, vector<128x128xbf16>, vector<128x128xf32> -> vector<128x128xf32>
    %84 = arith.addf %79, %83 : vector<128x128xf32>
    %c0_82 = arith.constant 0 : index
    %c2_83 = arith.constant 2 : index
    %c0_84 = arith.constant 0 : index
    %85 = vector.load %arg9[%c0_82, %c2_83, %c0_84] : memref<10x32x128xbf16, #tpu.memory_space<vmem>>, vector<8x16x128xbf16>
    %86 = vector.shape_cast %85 : vector<8x16x128xbf16> to vector<128x128xbf16>
    %c256_85 = arith.constant 256 : index
    %c0_86 = arith.constant 0 : index
    %87 = vector.load %arg5[%c256_85, %c0_86] : memref<1152x128xbf16, #tpu.memory_space<vmem>>, vector<128x128xbf16>
    %cst_87 = arith.constant dense<0.000000e+00> : vector<128x128xf32>
    %88 = tpu.matmul %86, %87, %cst_87 {dimension_numbers = #tpu.dot_dimension_numbers<[1], [0], [0], [1], [0, 0, 1, 1], [], []>} : vector<128x128xbf16>, vector<128x128xbf16>, vector<128x128xf32> -> vector<128x128xf32>
    %89 = arith.addf %84, %88 : vector<128x128xf32>
    %c1_88 = arith.constant 1 : index
    %c0_89 = arith.constant 0 : index
    %c0_90 = arith.constant 0 : index
    %90 = vector.load %arg9[%c1_88, %c0_89, %c0_90] : memref<10x32x128xbf16, #tpu.memory_space<vmem>>, vector<8x16x128xbf16>
    %91 = vector.shape_cast %90 : vector<8x16x128xbf16> to vector<128x128xbf16>
    %c384_91 = arith.constant 384 : index
    %c0_92 = arith.constant 0 : index
    %92 = vector.load %arg5[%c384_91, %c0_92] : memref<1152x128xbf16, #tpu.memory_space<vmem>>, vector<128x128xbf16>
    %cst_93 = arith.constant dense<0.000000e+00> : vector<128x128xf32>
    %93 = tpu.matmul %91, %92, %cst_93 {dimension_numbers = #tpu.dot_dimension_numbers<[1], [0], [0], [1], [0, 0, 1, 1], [], []>} : vector<128x128xbf16>, vector<128x128xbf16>, vector<128x128xf32> -> vector<128x128xf32>
    %94 = arith.addf %89, %93 : vector<128x128xf32>
    %c1_94 = arith.constant 1 : index
    %c1_95 = arith.constant 1 : index
    %c0_96 = arith.constant 0 : index
    %95 = vector.load %arg9[%c1_94, %c1_95, %c0_96] : memref<10x32x128xbf16, #tpu.memory_space<vmem>>, vector<8x16x128xbf16>
    %96 = vector.shape_cast %95 : vector<8x16x128xbf16> to vector<128x128xbf16>
    %c512_97 = arith.constant 512 : index
    %c0_98 = arith.constant 0 : index
    %97 = vector.load %arg5[%c512_97, %c0_98] : memref<1152x128xbf16, #tpu.memory_space<vmem>>, vector<128x128xbf16>
    %cst_99 = arith.constant dense<0.000000e+00> : vector<128x128xf32>
    %98 = tpu.matmul %96, %97, %cst_99 {dimension_numbers = #tpu.dot_dimension_numbers<[1], [0], [0], [1], [0, 0, 1, 1], [], []>} : vector<128x128xbf16>, vector<128x128xbf16>, vector<128x128xf32> -> vector<128x128xf32>
    %99 = arith.addf %94, %98 : vector<128x128xf32>
    %c1_100 = arith.constant 1 : index
    %c2_101 = arith.constant 2 : index
    %c0_102 = arith.constant 0 : index
    %100 = vector.load %arg9[%c1_100, %c2_101, %c0_102] : memref<10x32x128xbf16, #tpu.memory_space<vmem>>, vector<8x16x128xbf16>
    %101 = vector.shape_cast %100 : vector<8x16x128xbf16> to vector<128x128xbf16>
    %c640_103 = arith.constant 640 : index
    %c0_104 = arith.constant 0 : index
    %102 = vector.load %arg5[%c640_103, %c0_104] : memref<1152x128xbf16, #tpu.memory_space<vmem>>, vector<128x128xbf16>
    %cst_105 = arith.constant dense<0.000000e+00> : vector<128x128xf32>
    %103 = tpu.matmul %101, %102, %cst_105 {dimension_numbers = #tpu.dot_dimension_numbers<[1], [0], [0], [1], [0, 0, 1, 1], [], []>} : vector<128x128xbf16>, vector<128x128xbf16>, vector<128x128xf32> -> vector<128x128xf32>
    %104 = arith.addf %99, %103 : vector<128x128xf32>
    %c2_106 = arith.constant 2 : index
    %c0_107 = arith.constant 0 : index
    %c0_108 = arith.constant 0 : index
    %105 = vector.load %arg9[%c2_106, %c0_107, %c0_108] : memref<10x32x128xbf16, #tpu.memory_space<vmem>>, vector<8x16x128xbf16>
    %106 = vector.shape_cast %105 : vector<8x16x128xbf16> to vector<128x128xbf16>
    %c768_109 = arith.constant 768 : index
    %c0_110 = arith.constant 0 : index
    %107 = vector.load %arg5[%c768_109, %c0_110] : memref<1152x128xbf16, #tpu.memory_space<vmem>>, vector<128x128xbf16>
    %cst_111 = arith.constant dense<0.000000e+00> : vector<128x128xf32>
    %108 = tpu.matmul %106, %107, %cst_111 {dimension_numbers = #tpu.dot_dimension_numbers<[1], [0], [0], [1], [0, 0, 1, 1], [], []>} : vector<128x128xbf16>, vector<128x128xbf16>, vector<128x128xf32> -> vector<128x128xf32>
    %109 = arith.addf %104, %108 : vector<128x128xf32>
    %c2_112 = arith.constant 2 : index
    %c1_113 = arith.constant 1 : index
    %c0_114 = arith.constant 0 : index
    %110 = vector.load %arg9[%c2_112, %c1_113, %c0_114] : memref<10x32x128xbf16, #tpu.memory_space<vmem>>, vector<8x16x128xbf16>
    %111 = vector.shape_cast %110 : vector<8x16x128xbf16> to vector<128x128xbf16>
    %c896_115 = arith.constant 896 : index
    %c0_116 = arith.constant 0 : index
    %112 = vector.load %arg5[%c896_115, %c0_116] : memref<1152x128xbf16, #tpu.memory_space<vmem>>, vector<128x128xbf16>
    %cst_117 = arith.constant dense<0.000000e+00> : vector<128x128xf32>
    %113 = tpu.matmul %111, %112, %cst_117 {dimension_numbers = #tpu.dot_dimension_numbers<[1], [0], [0], [1], [0, 0, 1, 1], [], []>} : vector<128x128xbf16>, vector<128x128xbf16>, vector<128x128xf32> -> vector<128x128xf32>
    %114 = arith.addf %109, %113 : vector<128x128xf32>
    %c2_118 = arith.constant 2 : index
    %c2_119 = arith.constant 2 : index
    %c0_120 = arith.constant 0 : index
    %115 = vector.load %arg9[%c2_118, %c2_119, %c0_120] : memref<10x32x128xbf16, #tpu.memory_space<vmem>>, vector<8x16x128xbf16>
    %116 = vector.shape_cast %115 : vector<8x16x128xbf16> to vector<128x128xbf16>
    %c1024_121 = arith.constant 1024 : index
    %c0_122 = arith.constant 0 : index
    %117 = vector.load %arg5[%c1024_121, %c0_122] : memref<1152x128xbf16, #tpu.memory_space<vmem>>, vector<128x128xbf16>
    %cst_123 = arith.constant dense<0.000000e+00> : vector<128x128xf32>
    %118 = tpu.matmul %116, %117, %cst_123 {dimension_numbers = #tpu.dot_dimension_numbers<[1], [0], [0], [1], [0, 0, 1, 1], [], []>} : vector<128x128xbf16>, vector<128x128xbf16>, vector<128x128xf32> -> vector<128x128xf32>
    %119 = arith.addf %114, %118 : vector<128x128xf32>
    %c2_124 = arith.constant 2 : index
    %c1_125 = arith.constant 1 : index
    %c0_126 = arith.constant 0 : index
    %120 = vector.load %arg8[%c2_124, %c1_125, %c0_126] : memref<12x32x128xbf16, #tpu.memory_space<vmem>>, vector<8x16x128xbf16>
    %121 = arith.extf %120 : vector<8x16x128xbf16> to vector<8x16x128xf32>
    %122 = vector.shape_cast %121 : vector<8x16x128xf32> to vector<128x128xf32>
    %c0_127 = arith.constant 0 : index
    %c0_128 = arith.constant 0 : index
    %123 = vector.load %arg6[%c0_127, %c0_128] : memref<1x128xf32, #tpu.memory_space<vmem>>, vector<1x128xf32>
    %124 = vector.broadcast %123 : vector<1x128xf32> to vector<128x128xf32>
    %125 = arith.addf %119, %124 : vector<128x128xf32>
    %126 = arith.addf %125, %122 : vector<128x128xf32>
    %cst_129 = arith.constant 0.000000e+00 : f32
    %127 = vector.broadcast %cst_129 : f32 to vector<128x128xf32>
    %128 = arith.maximumf %126, %127 : vector<128x128xf32>
    %129 = vector.shape_cast %128 : vector<128x128xf32> to vector<1x8x16x128xf32>
    %c0_130 = arith.constant 0 : index
    %c0_131 = arith.constant 0 : index
    %c0_132 = arith.constant 0 : index
    %c0_133 = arith.constant 0 : index
    %130 = vector.load %arg7[%c0_130, %c0_131, %c0_132, %c0_133] : memref<1x8x16x128xf32, #tpu.memory_space<vmem>>, vector<1x8x16x128xf32>
    tpu.vector_store %arg7[%c0_130, %c0_131, %c0_132, %c0_133], %129 {strides = array<i32>} : memref<1x8x16x128xf32, #tpu.memory_space<vmem>>, vector<1x8x16x128xf32>,
    return
  }
  func.func @transform_0(%arg0: i32, %arg1: i32) -> (i32, i32, i32, i32) {
    %c0_i32 = arith.constant 0 : i32
    %c0_i32_0 = arith.constant 0 : i32
    %c0_i32_1 = arith.constant 0 : i32
    %c0_i32_2 = arith.constant 0 : i32
    return %arg0, %c0_i32, %c0_i32_0, %c0_i32_1 : i32, i32, i32, i32
  }
  func.func @transform_1(%arg0: i32, %arg1: i32) -> (i32, i32) {
    %c0_i32 = arith.constant 0 : i32
    %c0_i32_0 = arith.constant 0 : i32
    %c0_i32_1 = arith.constant 0 : i32
    return %c0_i32, %c0_i32_0 : i32, i32
  }
  func.func @transform_2(%arg0: i32, %arg1: i32) -> (i32, i32) {
    %c0_i32 = arith.constant 0 : i32
    %c0_i32_0 = arith.constant 0 : i32
    %c0_i32_1 = arith.constant 0 : i32
    return %c0_i32, %c0_i32_0 : i32, i32
  }
  func.func @transform_3(%arg0: i32, %arg1: i32) -> (i32, i32) {
    %c0_i32 = arith.constant 0 : i32
    %c0_i32_0 = arith.constant 0 : i32
    %c0_i32_1 = arith.constant 0 : i32
    return %c0_i32, %c0_i32_0 : i32, i32
  }
  func.func @transform_4(%arg0: i32, %arg1: i32) -> (i32, i32) {
    %c0_i32 = arith.constant 0 : i32
    %c0_i32_0 = arith.constant 0 : i32
    %c0_i32_1 = arith.constant 0 : i32
    return %c0_i32, %c0_i32_0 : i32, i32
  }
  func.func @transform_5(%arg0: i32, %arg1: i32) -> (i32, i32, i32, i32) {
    %c0_i32 = arith.constant 0 : i32
    %c0_i32_0 = arith.constant 0 : i32
    %c0_i32_1 = arith.constant 0 : i32
    return %arg0, %arg1, %c0_i32, %c0_i32_0 : i32, i32, i32, i32
  }
}

</mosaic_0001>

<bundles_post_ra>
// kernel: basic_block_forward.1
= control target key start
LH: loop header
LB: loop body
LE: loop exit
PB: predicated region body
PF: predicated region fallthrough
CT: control target
= control target key end

     0   :  { %10 = vsyncpa [#allocation5], 0  ;;  %s9538_s0 = inlined_call_operand.vmem [shape: bf16[2,16,16,128], index: 0, kind: input, shape index: {}]   ;;  %s9539_s1 = inlined_call_operand.vmem [shape: bf16[1152,128], index: 1, kind: input, shape index: {}]   ;;  %s9540_s2 = inlined_call_operand.vmem [shape: f32[1,128], index: 2, kind: input, shape index: {}]   ;;  %s9541_s3 = inlined_call_operand.vmem [shape: bf16[1152,128], index: 3, kind: input, shape index: {}]   ;;  %s9542_s4 = inlined_call_operand.vmem [shape: f32[1,128], index: 4, kind: input, shape index: {}]   ;;  %s9543_s5 = inlined_call_operand.hbm [shape: f32[2,16,16,128], index: 5, kind: output, shape index: {}]  }
   0x1   :  { %12 = vsyncpa [#allocation5 + $0x1], 0  ;;  %s7954_s18 = smov 0   ;;  %s7956_s19 = smov 0  }
   0x2   :  { %s7958_s20 = smov 0   ;;  %s7960_s21 = smov 0  }
   0x3   :  { %s7962_s22 = smov 0   ;;  %s7964_s23 = smov 0  }
   0x4   :  { %s7966_s24 = smov 0   ;;  %s7968_s25 = smov 0  }
   0x5 LB: > { %s6152_s26 = sadd.s32 4294967295, %s7915_s25   ;;  %s6153_s27 = sadd.s32 4294967294, %s7915_s25   ;;  %s7915_s25 = sphi %s7968_s25, %s18_s25   ;;  %s7911_s24 = sphi %s7966_s24, %s9565_s24   ;;  %s7907_s23 = sphi %s7964_s23, %s9564_s23   ;;  %s7903_s22 = sphi %s7962_s22, %s9563_s22   ;;  %s7899_s21 = sphi %s7960_s21, %s9562_s21   ;;  %s7895_s20 = sphi %s7958_s20, %s9561_s20   ;;  %s7891_s19 = sphi %s7956_s19, %s9560_s19   ;;  %s7887_s18 = sphi %s7954_s18, %s9559_s18  }
   0x6   : > { %s27_s28 = sadd.s32 1, %s7907_s23  ;;  %s30_s29 = sadd.s32 1, %s7911_s24 }
   0x7   : > { %p28_p0 = scmp.ge.s32.totalorder %s27_s28, 2  ;;  %p159_p1 = scmp.ne.s32.totalorder %s7895_s20, %s7891_s19 }
   0x8   : > { %p160_p2 = scmp.eq.s32.totalorder %s6152_s26, 3  ;;  %p165_p5 = scmp.ne.s32.totalorder %s7891_s19, %s7887_s18 }
   0x9   : > { %s9567_s28 = smov (%p28_p0, %s27_s28), 0  ;;  %s9569_s29 = smov (!%p28_p0, %s30_s29), %s7911_s24 }
   0xa   : > { %s145_s30 = ssub.s32 %s7907_s23, %s9567_s28  ;;  %p8005_p3 = por %p160_p2, %p159_p1 }
   0xb   : > { %p32_p4 = scmp.ge.s32.totalorder %s9569_s29, 2  ;;  %p166_p6 = scmp.eq.s32.totalorder %s6153_s27, 3 }
   0xc   : > { %p6156_p7 = scmp.ge.s32.totalorder %s7915_s25, 1  ;;  %p204_p9 = scmp.lt.s32.totalorder %s7915_s25, 5 }
   0xd   : > { %s9571_s29 = smov (%p32_p4, %s9569_s29), 0  ;;  %p8014_p8 = por %p166_p6, %p165_p5 }
   0xe   : > { %s144_s8 = ssub.s32 %s7911_s24, %s9571_s29  ;;  %s149_s9 = sadd.s32 1, %s7895_s20 }
   0xf   : > { %s146_s10 = sor.u32 %s145_s30, %s144_s8  ;;  %p205_p10 = pnand %p6156_p7, %p204_p9 }
  0x10   : > { %p147_p11 = scmp.eq.s32.totalorder %s146_s10, 0  ;;  %s229_s12 = sand.u32 (!%p205_p10), 1, %s7891_s19   ;;  %vm242_vm0 = vcmask (!%p205_p10), 1040384   ;;  %vm243_vm1 = vsmask.f32 (!%p205_p10), 256 }
  0x11   : > { %208 = sbr.rel (%p205_p10) target bundleno = 1258 (0x4ea), region = 40  ;;  %p232_p12 = scmp.lt.s32.totalorder (!%p205_p10), %s7903_s22, 1  ;;  %vm8033_vm2 = vmand (!%p205_p10), %vm242_vm0, %vm243_vm1  ;;  %v245_v1 = vld [vmem:[#allocation2] sm:$0x1] (!%p205_p10)  ;;  %v248_v2 = vld [vmem:[#allocation2 + $0x10] sm:$0x1] (!%p205_p10) }
  0x12   : > { %s8023_s11 = scalar_select %p147_p11, %s7895_s20, %s149_s9  }
  0x13   : > { %s8029_s13 = sshll.u32 (!%p205_p10), %s229_s12, 7  ;;  %s6160_s14 = sshll.u32 (!%p205_p10), %s7899_s21, 3  ;;  %v246_v3 = vsel (!%p205_p10), %vm8033_vm2, 0, %v245_v1  ;;  %v249_v4 = vsel (!%p205_p10), %vm8033_vm2, 0, %v248_v2  ;;  %v251_v5 = vld [vmem:[#allocation2 + $0x20] sm:$0x1] (!%p205_p10) }
  0x14   : > { %p319_p13 = scmp.gt.s32.totalorder (!%p205_p10), %s7899_s21, 0  ;;  %247 = vst [vmem:[#allocation2] sm:$0x1] (!%p205_p10), %v246_v3  ;;  %250 = vst [vmem:[#allocation2 + $0x10] sm:$0x1] (!%p205_p10), %v249_v4  ;;  %v252_v6 = vsel (!%p205_p10), %vm8033_vm2, 0, %v251_v5 }
  0x15   : > { %v254_v7 = vld [vmem:[#allocation2 + $0x30] sm:$0x1] (!%p205_p10)  ;;  %v257_v8 = vld [vmem:[#allocation2 + $0x40] sm:$0x1] (!%p205_p10)  ;;  %253 = vst [vmem:[#allocation2 + $0x20] sm:$0x1] (!%p205_p10), %v252_v6 }
  0x16   : > { %v255_v9 = vsel (!%p205_p10), %vm8033_vm2, 0, %v254_v7  ;;  %v258_v10 = vsel (!%p205_p10), %vm8033_vm2, 0, %v257_v8  ;;  %v260_v11 = vld [vmem:[#allocation2 + $0x50] sm:$0x1] (!%p205_p10)  ;;  %v263_v12 = vld [vmem:[#allocation2 + $0x60] sm:$0x1] (!%p205_p10) }
  0x17   : > { %256 = vst [vmem:[#allocation2 + $0x30] sm:$0x1] (!%p205_p10), %v255_v9  ;;  %259 = vst [vmem:[#allocation2 + $0x40] sm:$0x1] (!%p205_p10), %v258_v10  ;;  %v261_v13 = vsel (!%p205_p10), %vm8033_vm2, 0, %v260_v11  ;;  %v264_v14 = vsel (!%p205_p10), %vm8033_vm2, 0, %v263_v12 }
  0x18   : > { %s233_s15 = scalar_select %p232_p12, %s7903_s22, 1  ;;  %v266_v15 = vld [vmem:[#allocation2 + $0x70] sm:$0x1]  ;;  %262 = vst [vmem:[#allocation2 + $0x50] sm:$0x1] %v261_v13 }
  0x19   : > { %p320_p0 = scmp.lt.s32.totalorder %s7899_s21, 1  ;;  %265 = vst [vmem:[#allocation2 + $0x60] sm:$0x1] %v264_v14  ;;  %v267_v16 = vsel %vm8033_vm2, 0, %v266_v15  ;;  %v269_v17 = vld [vmem:[#allocation2 + $0x80] sm:$0x1] }
  0x1a   : > { %s6356_s16 = sshll.u32 %s233_s15, 7  ;;  %v272_v18 = vld [vmem:[#allocation2 + $0x90] sm:$0x1]  ;;  %268 = vst [vmem:[#allocation2 + $0x70] sm:$0x1] %v267_v16  ;;  %v270_v19 = vsel %vm8033_vm2, 0, %v269_v17 }
  0x1b   : > { %s8057_s27 = scalar_lea.vmem %s9538_s0, %s6356_s16  ;;  %v273_v20 = vsel %vm8033_vm2, 0, %v272_v18  ;;  %v275_v21 = vld [vmem:[#allocation2 + $0xa0] sm:$0x1]  ;;  %v278_v22 = vld [vmem:[#allocation2 + $0xb0] sm:$0x1]  ;;  %p8067_p1 = pnand %p320_p0, %p319_p13 }
  0x1c   : > { %271 = vst [vmem:[#allocation2 + $0x80] sm:$0x1] %v270_v19  ;;  %274 = vst [vmem:[#allocation2 + $0x90] sm:$0x1] %v273_v20  ;;  %v276_v23 = vsel %vm8033_vm2, 0, %v275_v21  ;;  %v279_v24 = vsel %vm8033_vm2, 0, %v278_v22 }
  0x1d   : > { %vm281_vm3 = vsmask.f32 7938  ;;  %v283_v25 = vld [vmem:[#allocation2 + $0x8] sm:$0x1]  ;;  %277 = vst [vmem:[#allocation2 + $0xa0] sm:$0x1] %v276_v23 }
  0x1e   : > { %280 = vst [vmem:[#allocation2 + $0xb0] sm:$0x1] %v279_v24  ;;  %vm8077_vm4 = vmand %vm242_vm0, %vm281_vm3  ;;  %v286_v27 = vld [vmem:[#allocation2 + $0x18] sm:$0x1]  ;;  %v289_v28 = vld [vmem:[#allocation2 + $0x28] sm:$0x1] }
  0x1f   : > { %v284_v29 = vsel %vm8077_vm4, 0, %v283_v25  ;;  %v287_v30 = vsel %vm8077_vm4, 0, %v286_v27  ;;  %v290_v31 = vsel %vm8077_vm4, 0, %v289_v28  ;;  %v292_v32 = vld [vmem:[#allocation2 + $0x38] sm:$0x1]  ;;  %s8106_s8 = scalar_lea.vmem [#allocation4], %s8029_s13 }
  0x20   : > { %285 = vst [vmem:[#allocation2 + $0x8] sm:$0x1] %v284_v29  ;;  %288 = vst [vmem:[#allocation2 + $0x18] sm:$0x1] %v287_v30  ;;  %v293_v33 = vsel %vm8077_vm4, 0, %v292_v32  ;;  %s6161_s9 = sadd.s32 (!%p8067_p1), 4294967294, %s6160_s14 }
  0x21   : > { %291 = vst [vmem:[#allocation2 + $0x28] sm:$0x1] %v290_v31  ;;  %v295_v34 = vld [vmem:[#allocation2 + $0x48] sm:$0x1]  ;;  %v298_v35 = vld [vmem:[#allocation2 + $0x58] sm:$0x1] }
  0x22   : > { %294 = vst [vmem:[#allocation2 + $0x38] sm:$0x1] %v293_v33  ;;  %v296_v36 = vsel %vm8077_vm4, 0, %v295_v34  ;;  %v299_v37 = vsel %vm8077_vm4, 0, %v298_v35  ;;  %v301_v38 = vld [vmem:[#allocation2 + $0x68] sm:$0x1] }
  0x23   : > { %v304_v39 = vld [vmem:[#allocation2 + $0x78] sm:$0x1]  ;;  %297 = vst [vmem:[#allocation2 + $0x48] sm:$0x1] %v296_v36  ;;  %300 = vst [vmem:[#allocation2 + $0x58] sm:$0x1] %v299_v37 }
  0x24   : > { %v302_v40 = vsel %vm8077_vm4, 0, %v301_v38  ;;  %v305_v41 = vsel %vm8077_vm4, 0, %v304_v39  ;;  %v307_v42 = vld [vmem:[#allocation2 + $0x88] sm:$0x1]  ;;  %v310_v43 = vld [vmem:[#allocation2 + $0x98] sm:$0x1] }
  0x25   : > { %303 = vst [vmem:[#allocation2 + $0x68] sm:$0x1] %v302_v40  ;;  %306 = vst [vmem:[#allocation2 + $0x78] sm:$0x1] %v305_v41  ;;  %v308_v44 = vsel %vm8077_vm4, 0, %v307_v42  ;;  %v311_v45 = vsel %vm8077_vm4, 0, %v310_v43 }
  0x26   : > { %v313_v46 = vld [vmem:[#allocation2 + $0xa8] sm:$0x1]  ;;  %v316_v47 = vld [vmem:[#allocation2 + $0xb8] sm:$0x1]  ;;  %309 = vst [vmem:[#allocation2 + $0x88] sm:$0x1] %v308_v44 }
  0x27   : > { %312 = vst [vmem:[#allocation2 + $0x98] sm:$0x1] %v311_v45  ;;  %v314_v48 = vsel %vm8077_vm4, 0, %v313_v46  ;;  %v317_v49 = vsel %vm8077_vm4, 0, %v316_v47  ;;  %324 = sbr.rel (%p8067_p1) target bundleno = 67 (0x43), region = 44  ;;  %s6357_s10 = sshll.u32 (!%p8067_p1), %s6161_s9, 3 }
  0x28   : > { %315 = vst [vmem:[#allocation2 + $0xa8] sm:$0x1] %v314_v48  ;;  %318 = vst [vmem:[#allocation2 + $0xb8] sm:$0x1] %v317_v49  ;;  %s8113_s15 = scalar_lea.vmem (!%p8067_p1), %s8057_s27, %s6357_s10  ;;  %vm521_vm5 = vcmask (!%p8067_p1), 1047552   ;;  %v523_v56 = vld [vmem:[#allocation2] sm:$0xff] (!%p8067_p1) }
  0x29   : > { %v7643_v50 = vld [vmem:[%s8113_s15] sm:$0xff] (!%p8067_p1)   ;;  %v526_v51 = vld [vmem:[#allocation2 + $0x8] sm:$0x1] (!%p8067_p1)  ;;  %v532_v55 = vld [vmem:[#allocation2 + $0x18] sm:$0x1] (!%p8067_p1) }
  0x2a   : > { %v7644_v52 = vld [vmem:[%s8113_s15 + $0x8] sm:$0xff] (!%p8067_p1)   ;;  %v414_v53 = vshrl.u32 (!%p8067_p1), %v7643_v50, 16  ;;  %v417_v54 = vshll.u32 (!%p8067_p1), %v7643_v50, 16  ;;  %v7645_v59 = vld [vmem:[%s8113_s15 + $0x10] sm:$0xff] (!%p8067_p1)   ;;  %v7646_v60 = vld [vmem:[%s8113_s15 + $0x18] sm:$0xff] (!%p8067_p1)  }
  0x2b   : > { %v421_v57 = vshrl.u32 (!%p8067_p1), %v7644_v52, 16  ;;  %v424_v58 = vshll.u32 (!%p8067_p1), %v7644_v52, 16  ;;  %v529_v62 = vld [vmem:[#allocation2 + $0x10] sm:$0xff] (!%p8067_p1)  ;;  %v538_v63 = vld [vmem:[#allocation2 + $0x28] sm:$0x1] (!%p8067_p1)  ;;  %v7647_v1 = vld [vmem:[%s8113_s15 + $0x20] sm:$0xff] (!%p8067_p1)  }
  0x2c   : > { %v416_v61 = vrot.slane (!%p8067_p1), %v414_v53, 7  ;;  %vm8122_vm6 = vmand (!%p8067_p1), %vm521_vm5, %vm281_vm3  ;;  %v428_v4 = vshrl.u32 (!%p8067_p1), %v7645_v59, 16  ;;  %v431_v5 = vshll.u32 (!%p8067_p1), %v7645_v59, 16  ;;  %v435_v6 = vshrl.u32 (!%p8067_p1), %v7646_v60, 16  ;;  %v544_v7 = vld [vmem:[#allocation2 + $0x38] sm:$0x1] (!%p8067_p1) }
  0x2d   : > { %v423_v3 = vrot.slane (!%p8067_p1), %v421_v57, 7  ;;  %v535_v10 = vld [vmem:[#allocation2 + $0x20] sm:$0xff] (!%p8067_p1)  ;;  %v438_v11 = vshll.u32 (!%p8067_p1), %v7646_v60, 16  ;;  %v541_v12 = vld [vmem:[#allocation2 + $0x30] sm:$0xff] (!%p8067_p1)  ;;  %v442_v13 = vshrl.u32 (!%p8067_p1), %v7647_v1, 16  ;;  %v7648_v15 = vld [vmem:[%s8113_s15 + $0x28] sm:$0xff] (!%p8067_p1)  }
  0x2e   : > { %v419_v8 = vor.u32 %v417_v54, %v416_v61  ;;  %v527_v9 = vsel %vm8033_vm2, %v416_v61, %v526_v51  ;;  %v550_v14 = vld [vmem:[#allocation2 + $0x48] sm:$0x1]  ;;  %v430_v18 = vrot.slane %v428_v4, 7  ;;  %v437_v19 = vrot.slane %v435_v6, 7  ;;  %v547_v23 = vld [vmem:[#allocation2 + $0x40] sm:$0xff]  ;;  %v7649_v31 = vld [vmem:[%s8113_s15 + $0x30] sm:$0xff]  }
  0x2f   : > { %528 = vst [vmem:[#allocation2 + $0x8] sm:$0x1] %v527_v9  ;;  %v426_v16 = vor.u32 %v424_v58, %v423_v3  ;;  %v533_v17 = vsel %vm8033_vm2, %v423_v3, %v532_v55  ;;  %v444_v21 = vrot.slane %v442_v13, 7  ;;  %v445_v22 = vshll.u32 %v7647_v1, 16  ;;  %v556_v25 = vld [vmem:[#allocation2 + $0x58] sm:$0x1] }
  0x30   : > { %v524_v20 = vsel %vm8122_vm6, %v419_v8, %v523_v56  ;;  %534 = vst [vmem:[#allocation2 + $0x18] sm:$0x1] %v533_v17  ;;  %v449_v24 = vshrl.u32 %v7648_v15, 16  ;;  %v433_v28 = vor.u32 %v431_v5, %v430_v18  ;;  %v539_v29 = vsel %vm8033_vm2, %v430_v18, %v538_v63  ;;  %v553_v39 = vld [vmem:[#allocation2 + $0x50] sm:$0xff]  ;;  %v7650_v41 = vld [vmem:[%s8113_s15 + $0x38] sm:$0xff]   ;;  %v7651_v46 = vld [vmem:[%s8113_s15 + $0x40] sm:$0xff]  }
  0x31   : > { %525 = vst [vmem:[#allocation2] sm:$0xff] %v524_v20  ;;  %v530_v27 = vsel %vm8122_vm6, %v426_v16, %v529_v62  ;;  %v440_v30 = vor.u32 %v438_v11, %v437_v19  ;;  %540 = vst [vmem:[#allocation2 + $0x28] sm:$0x1] %v539_v29  ;;  %v545_v32 = vsel %vm8033_vm2, %v437_v19, %v544_v7  ;;  %v452_v38 = vshll.u32 %v7648_v15, 16  ;;  %v562_v45 = vld [vmem:[#allocation2 + $0x68] sm:$0x1] }
  0x32   : > { %531 = vst [vmem:[#allocation2 + $0x10] sm:$0xff] %v530_v27  ;;  %v447_v33 = vor.u32 %v445_v22, %v444_v21  ;;  %v551_v34 = vsel %vm8033_vm2, %v444_v21, %v550_v14  ;;  %v451_v35 = vrot.slane %v449_v24, 7  ;;  %v536_v36 = vsel %vm8122_vm6, %v433_v28, %v535_v10  ;;  %546 = vst [vmem:[#allocation2 + $0x38] sm:$0x1] %v545_v32  ;;  %v559_v49 = vld [vmem:[#allocation2 + $0x60] sm:$0xff]  ;;  %v7652_v60 = vld [vmem:[%s8113_s15 + $0x48] sm:$0xff]  }
  0x33   : > { %v542_v37 = vsel %vm8122_vm6, %v440_v30, %v541_v12  ;;  %552 = vst [vmem:[#allocation2 + $0x48] sm:$0x1] %v551_v34  ;;  %v456_v40 = vshrl.u32 %v7649_v31, 16  ;;  %537 = vst [vmem:[#allocation2 + $0x20] sm:$0xff] %v536_v36  ;;  %v459_v44 = vshll.u32 %v7649_v31, 16  ;;  %v463_v50 = vshrl.u32 %v7650_v41, 16 }
  0x34   : > { %543 = vst [vmem:[#allocation2 + $0x30] sm:$0xff] %v542_v37  ;;  %v548_v42 = vsel %vm8122_vm6, %v447_v33, %v547_v23  ;;  %v557_v43 = vsel %vm8033_vm2, %v451_v35, %v556_v25  ;;  %v454_v47 = vor.u32 %v452_v38, %v451_v35  ;;  %v466_v51 = vshll.u32 %v7650_v41, 16  ;;  %v568_v52 = vld [vmem:[#allocation2 + $0x78] sm:$0x1]  ;;  %v574_v59 = vld [vmem:[#allocation2 + $0x88] sm:$0x1] }
  0x35   : > { %549 = vst [vmem:[#allocation2 + $0x40] sm:$0xff] %v548_v42  ;;  %558 = vst [vmem:[#allocation2 + $0x58] sm:$0x1] %v557_v43  ;;  %v458_v48 = vrot.slane %v456_v40, 7  ;;  %v470_v53 = vshrl.u32 %v7651_v46, 16  ;;  %v473_v54 = vshll.u32 %v7651_v46, 16 }
  0x36   : > { %v554_v55 = vsel %vm8122_vm6, %v454_v47, %v553_v39  ;;  %v465_v58 = vrot.slane %v463_v50, 7  ;;  %v565_v61 = vld [vmem:[#allocation2 + $0x70] sm:$0xff]  ;;  %v571_v5 = vld [vmem:[#allocation2 + $0x80] sm:$0xff]  ;;  %v477_v6 = vshrl.u32 %v7652_v60, 16  ;;  %v580_v7 = vld [vmem:[#allocation2 + $0x98] sm:$0x1] }
  0x37   : > { %v461_v56 = vor.u32 %v459_v44, %v458_v48  ;;  %v563_v57 = vsel %vm8033_vm2, %v458_v48, %v562_v45  ;;  %555 = vst [vmem:[#allocation2 + $0x50] sm:$0xff] %v554_v55  ;;  %v472_v62 = vrot.slane %v470_v53, 7  ;;  %v7653_v63 = vld [vmem:[%s8113_s15 + $0x50] sm:$0xff]   ;;  %v480_v10 = vshll.u32 %v7652_v60, 16  ;;  %v586_v15 = vld [vmem:[#allocation2 + $0xa8] sm:$0x1] }
  0x38   : > { %564 = vst [vmem:[#allocation2 + $0x68] sm:$0x1] %v563_v57  ;;  %v468_v3 = vor.u32 %v466_v51, %v465_v58  ;;  %v569_v4 = vsel %vm8033_vm2, %v465_v58, %v568_v52  ;;  %v484_v11 = vshrl.u32 %v7653_v63, 16  ;;  %v479_v13 = vrot.slane %v477_v6, 7  ;;  %v7654_v16 = vld [vmem:[%s8113_s15 + $0x58] sm:$0xff]   ;;  %v577_v18 = vld [vmem:[#allocation2 + $0x90] sm:$0xff] }
  0x39   : > { %v560_v1 = vsel %vm8122_vm6, %v461_v56, %v559_v49  ;;  %570 = vst [vmem:[#allocation2 + $0x78] sm:$0x1] %v569_v4  ;;  %v475_v8 = vor.u32 %v473_v54, %v472_v62  ;;  %v575_v9 = vsel %vm8033_vm2, %v472_v62, %v574_v59  ;;  %v487_v14 = vshll.u32 %v7653_v63, 16  ;;  %v583_v22 = vld [vmem:[#allocation2 + $0xa0] sm:$0xff]  ;;  %v592_v28 = vld [vmem:[#allocation2 + $0xb8] sm:$0x1] }
  0x3a   : > { %561 = vst [vmem:[#allocation2 + $0x60] sm:$0xff] %v560_v1  ;;  %v566_v12 = vsel %vm8122_vm6, %v468_v3, %v565_v61  ;;  %576 = vst [vmem:[#allocation2 + $0x88] sm:$0x1] %v575_v9  ;;  %v486_v19 = vrot.slane %v484_v11, 7  ;;  %v482_v20 = vor.u32 %v480_v10, %v479_v13  ;;  %v581_v21 = vsel %vm8033_vm2, %v479_v13, %v580_v7  ;;  %v589_v32 = vld [vmem:[#allocation2 + $0xb0] sm:$0xff] }
  0x3b   : > { %567 = vst [vmem:[#allocation2 + $0x70] sm:$0xff] %v566_v12  ;;  %v572_v17 = vsel %vm8122_vm6, %v475_v8, %v571_v5  ;;  %v491_v23 = vshrl.u32 %v7654_v16, 16  ;;  %v494_v24 = vshll.u32 %v7654_v16, 16  ;;  %582 = vst [vmem:[#allocation2 + $0x98] sm:$0x1] %v581_v21 }
  0x3c   : > { %573 = vst [vmem:[#allocation2 + $0x80] sm:$0xff] %v572_v17  ;;  %v489_v25 = vor.u32 %v487_v14, %v486_v19  ;;  %v587_v27 = vsel %vm8033_vm2, %v486_v19, %v586_v15  ;;  %v578_v29 = vsel %vm8122_vm6, %v482_v20, %v577_v18 }
  0x3d   : > { %588 = vst [vmem:[#allocation2 + $0xa8] sm:$0x1] %v587_v27  ;;  %v493_v30 = vrot.slane %v491_v23, 7  ;;  %579 = vst [vmem:[#allocation2 + $0x90] sm:$0xff] %v578_v29 }
  0x3e   : > { %v584_v31 = vsel %vm8122_vm6, %v489_v25, %v583_v22 }
  0x3f   : > { %585 = vst [vmem:[#allocation2 + $0xa0] sm:$0xff] %v584_v31  ;;  %v496_v33 = vor.u32 %v494_v24, %v493_v30  ;;  %v593_v34 = vsel %vm8033_vm2, %v493_v30, %v592_v28 }
  0x40   : > { %594 = vst [vmem:[#allocation2 + $0xb8] sm:$0x1] %v593_v34 }
  0x41   : > { %v590_v35 = vsel %vm8122_vm6, %v496_v33, %v589_v32 }
  0x42   : > { %591 = vst [vmem:[#allocation2 + $0xb0] sm:$0xff] %v590_v35 }
  0x43 PF: > { %p6176_p2 = scmp.ne.s32.totalorder %s7899_s21, 0 }
  0x44   : > { %v7655_v36 = vld [vmem:[%s8057_s27] sm:$0xff] (!%p6176_p2)   ;;  %v7917_v37 = vmov (!%p6176_p2), 0   ;;  %vm763_vm7 = vcmask (!%p6176_p2), 1047552   ;;  %v7656_v2 = vld [vmem:[%s8057_s27 + $0x8] sm:$0xff] (!%p6176_p2)   ;;  %v7657_v45 = vld [vmem:[%s8057_s27 + $0x10] sm:$0xff] (!%p6176_p2)  }
  0x45   : > { %597 = sbr.rel (%p6176_p2) target bundleno = 90 (0x5a), region = 48  ;;  %598 = vst [vmem:[#allocation2] sm:$0xff] (!%p6176_p2), %v7917_v37  ;;  %599 = vst [vmem:[#allocation2 + $0x8] sm:$0xff] (!%p6176_p2), %v7917_v37  ;;  %v673_v38 = vshrl.u32 (!%p6176_p2), %v7655_v36, 16  ;;  %v676_v39 = vshll.u32 (!%p6176_p2), %v7655_v36, 16  ;;  %v765_v40 = vld [vmem:[#allocation2 + $0x20] sm:$0xff] (!%p6176_p2) }
  0x46   : > { %600 = vst [vmem:[#allocation2 + $0x10] sm:$0xff] (!%p6176_p2), %v7917_v37  ;;  %601 = vst [vmem:[#allocation2 + $0x18] sm:$0xff] (!%p6176_p2), %v7917_v37  ;;  %v768_v41 = vld [vmem:[#allocation2 + $0x28] sm:$0x1] (!%p6176_p2)  ;;  %v680_v43 = vshrl.u32 (!%p6176_p2), %v7656_v2, 16  ;;  %v683_v44 = vshll.u32 (!%p6176_p2), %v7656_v2, 16 }
  0x47   : > { %v675_v42 = vrot.slane (!%p6176_p2), %v673_v38, 7  ;;  %vm8188_vm8 = vmand (!%p6176_p2), %vm763_vm7, %vm281_vm3  ;;  %v774_v47 = vld [vmem:[#allocation2 + $0x38] sm:$0x1] (!%p6176_p2)  ;;  %v771_v51 = vld [vmem:[#allocation2 + $0x30] sm:$0xff] (!%p6176_p2)  ;;  %v687_v52 = vshrl.u32 (!%p6176_p2), %v7657_v45, 16  ;;  %v690_v54 = vshll.u32 (!%p6176_p2), %v7657_v45, 16 }
  0x48   : > { %v682_v50 = vrot.slane (!%p6176_p2), %v680_v43, 7  ;;  %v7658_v53 = vld [vmem:[%s8057_s27 + $0x18] sm:$0xff] (!%p6176_p2)   ;;  %v780_v55 = vld [vmem:[#allocation2 + $0x48] sm:$0x1] (!%p6176_p2)  ;;  %v7659_v56 = vld [vmem:[%s8057_s27 + $0x20] sm:$0xff] (!%p6176_p2)  }
  0x49   : > { %v678_v48 = vor.u32 (!%p6176_p2), %v676_v39, %v675_v42  ;;  %v769_v49 = vsel (!%p6176_p2), %vm8033_vm2, %v675_v42, %v768_v41  ;;  %v689_v60 = vrot.slane (!%p6176_p2), %v687_v52, 7  ;;  %v777_v61 = vld [vmem:[#allocation2 + $0x40] sm:$0xff] (!%p6176_p2)  ;;  %v786_v62 = vld [vmem:[#allocation2 + $0x58] sm:$0x1] (!%p6176_p2)  ;;  %v694_v63 = vshrl.u32 (!%p6176_p2), %v7658_v53, 16  ;;  %v7660_v9 = vld [vmem:[%s8057_s27 + $0x28] sm:$0xff] (!%p6176_p2)  }
  0x4a   : > { %770 = vst [vmem:[#allocation2 + $0x28] sm:$0x1] (!%p6176_p2), %v769_v49  ;;  %v685_v58 = vor.u32 (!%p6176_p2), %v683_v44, %v682_v50  ;;  %v775_v59 = vsel (!%p6176_p2), %vm8033_vm2, %v682_v50, %v774_v47  ;;  %v697_v1 = vshll.u32 (!%p6176_p2), %v7658_v53, 16  ;;  %v701_v3 = vshrl.u32 (!%p6176_p2), %v7659_v56, 16  ;;  %v792_v8 = vld [vmem:[#allocation2 + $0x68] sm:$0x1] (!%p6176_p2) }
  0x4b   : > { %v766_v57 = vsel (!%p6176_p2), %vm8188_vm8, %v678_v48, %v765_v40  ;;  %776 = vst [vmem:[#allocation2 + $0x38] sm:$0x1] (!%p6176_p2), %v775_v59  ;;  %v704_v4 = vshll.u32 (!%p6176_p2), %v7659_v56, 16  ;;  %v692_v6 = vor.u32 (!%p6176_p2), %v690_v54, %v689_v60  ;;  %v781_v7 = vsel (!%p6176_p2), %vm8033_vm2, %v689_v60, %v780_v55  ;;  %v783_v11 = vld [vmem:[#allocation2 + $0x50] sm:$0xff] (!%p6176_p2)  ;;  %v789_v14 = vld [vmem:[#allocation2 + $0x60] sm:$0xff] (!%p6176_p2)  ;;  %v7662_v28 = vld [vmem:[%s8057_s27 + $0x38] sm:$0xff] (!%p6176_p2)  }
  0x4c   : > { %767 = vst [vmem:[#allocation2 + $0x20] sm:$0xff] %v766_v57  ;;  %v772_v5 = vsel %vm8188_vm8, %v685_v58, %v771_v51  ;;  %782 = vst [vmem:[#allocation2 + $0x48] sm:$0x1] %v781_v7  ;;  %v696_v10 = vrot.slane %v694_v63, 7  ;;  %v703_v12 = vrot.slane %v701_v3, 7  ;;  %v708_v15 = vshrl.u32 %v7660_v9, 16 }
  0x4d   : > { %773 = vst [vmem:[#allocation2 + $0x30] sm:$0xff] %v772_v5  ;;  %v778_v13 = vsel %vm8188_vm8, %v692_v6, %v777_v61  ;;  %v711_v16 = vshll.u32 %v7660_v9, 16  ;;  %v7661_v17 = vld [vmem:[%s8057_s27 + $0x30] sm:$0xff]   ;;  %v798_v22 = vld [vmem:[#allocation2 + $0x78] sm:$0x1]  ;;  %v7663_v29 = vld [vmem:[%s8057_s27 + $0x40] sm:$0xff]  }
  0x4e   : > { %779 = vst [vmem:[#allocation2 + $0x40] sm:$0xff] %v778_v13  ;;  %v699_v18 = vor.u32 %v697_v1, %v696_v10  ;;  %v787_v19 = vsel %vm8033_vm2, %v696_v10, %v786_v62  ;;  %v706_v20 = vor.u32 %v704_v4, %v703_v12  ;;  %v793_v21 = vsel %vm8033_vm2, %v703_v12, %v792_v8  ;;  %v795_v24 = vld [vmem:[#allocation2 + $0x70] sm:$0xff]  ;;  %v804_v32 = vld [vmem:[#allocation2 + $0x88] sm:$0x1]  ;;  %v810_v37 = vld [vmem:[#allocation2 + $0x98] sm:$0x1] }
  0x4f   : > { %788 = vst [vmem:[#allocation2 + $0x58] sm:$0x1] %v787_v19  ;;  %794 = vst [vmem:[#allocation2 + $0x68] sm:$0x1] %v793_v21  ;;  %v710_v23 = vrot.slane %v708_v15, 7  ;;  %v715_v25 = vshrl.u32 %v7661_v17, 16 }
  0x50   : > { %v718_v27 = vshll.u32 %v7661_v17, 16  ;;  %v784_v30 = vsel %vm8188_vm8, %v699_v18, %v783_v11  ;;  %v790_v31 = vsel %vm8188_vm8, %v706_v20, %v789_v14  ;;  %v722_v36 = vshrl.u32 %v7662_v28, 16  ;;  %v7664_v38 = vld [vmem:[%s8057_s27 + $0x48] sm:$0xff]   ;;  %v801_v39 = vld [vmem:[#allocation2 + $0x80] sm:$0xff]  ;;  %v807_v48 = vld [vmem:[#allocation2 + $0x90] sm:$0xff] }
  0x51   : > { %785 = vst [vmem:[#allocation2 + $0x50] sm:$0xff] %v784_v30  ;;  %791 = vst [vmem:[#allocation2 + $0x60] sm:$0xff] %v790_v31  ;;  %v713_v33 = vor.u32 %v711_v16, %v710_v23  ;;  %v799_v34 = vsel %vm8033_vm2, %v710_v23, %v798_v22  ;;  %v717_v35 = vrot.slane %v715_v25, 7  ;;  %v725_v2 = vshll.u32 %v7662_v28, 16  ;;  %v816_v47 = vld [vmem:[#allocation2 + $0xa8] sm:$0x1] }
  0x52   : > { %800 = vst [vmem:[#allocation2 + $0x78] sm:$0x1] %v799_v34  ;;  %v729_v40 = vshrl.u32 %v7663_v29, 16  ;;  %v732_v41 = vshll.u32 %v7663_v29, 16  ;;  %v724_v45 = vrot.slane %v722_v36, 7  ;;  %v736_v50 = vshrl.u32 %v7664_v38, 16 }
  0x53   : > { %v796_v42 = vsel %vm8188_vm8, %v713_v33, %v795_v24  ;;  %v720_v43 = vor.u32 %v718_v27, %v717_v35  ;;  %v805_v44 = vsel %vm8033_vm2, %v717_v35, %v804_v32  ;;  %v739_v51 = vshll.u32 %v7664_v38, 16  ;;  %v813_v55 = vld [vmem:[#allocation2 + $0xa0] sm:$0xff]  ;;  %v822_v56 = vld [vmem:[#allocation2 + $0xb8] sm:$0x1]  ;;  %v819_v61 = vld [vmem:[#allocation2 + $0xb0] sm:$0xff] }
  0x54   : > { %797 = vst [vmem:[#allocation2 + $0x70] sm:$0xff] %v796_v42  ;;  %806 = vst [vmem:[#allocation2 + $0x88] sm:$0x1] %v805_v44  ;;  %v731_v49 = vrot.slane %v729_v40, 7  ;;  %v727_v53 = vor.u32 %v725_v2, %v724_v45  ;;  %v811_v54 = vsel %vm8033_vm2, %v724_v45, %v810_v37  ;;  %v738_v59 = vrot.slane %v736_v50, 7 }
  0x55   : > { %v802_v52 = vsel %vm8188_vm8, %v720_v43, %v801_v39  ;;  %812 = vst [vmem:[#allocation2 + $0x98] sm:$0x1] %v811_v54 }
  0x56   : > { %803 = vst [vmem:[#allocation2 + $0x80] sm:$0xff] %v802_v52  ;;  %v734_v57 = vor.u32 %v732_v41, %v731_v49  ;;  %v817_v58 = vsel %vm8033_vm2, %v731_v49, %v816_v47  ;;  %v808_v60 = vsel %vm8188_vm8, %v727_v53, %v807_v48  ;;  %v741_v63 = vor.u32 %v739_v51, %v738_v59 }
  0x57   : > { %818 = vst [vmem:[#allocation2 + $0xa8] sm:$0x1] %v817_v58  ;;  %809 = vst [vmem:[#allocation2 + $0x90] sm:$0xff] %v808_v60  ;;  %v823_v1 = vsel %vm8033_vm2, %v738_v59, %v822_v56 }
  0x58   : > { %v814_v62 = vsel %vm8188_vm8, %v734_v57, %v813_v55  ;;  %824 = vst [vmem:[#allocation2 + $0xb8] sm:$0x1] %v823_v1  ;;  %v820_v3 = vsel %vm8188_vm8, %v741_v63, %v819_v61 }
  0x59   : > { %815 = vst [vmem:[#allocation2 + $0xa0] sm:$0xff] %v814_v62  ;;  %821 = vst [vmem:[#allocation2 + $0xb0] sm:$0xff] %v820_v3 }
  0x5a PF: > { %p6187_p4 = scmp.ne.s32.totalorder %s7899_s21, 1 }
  0x5b   : > { %s6188_s13 = sadd.s32 (!%p6187_p4), 4294967294, %s6160_s14  ;;  %v7918_v4 = vmov (!%p6187_p4), 0   ;;  %vm997_vm9 = vcmask (!%p6187_p4), 1047552   ;;  %v1002_v5 = vld [vmem:[#allocation2 + $0x8] sm:$0x1] (!%p6187_p4)  ;;  %v999_v10 = vld [vmem:[#allocation2] sm:$0xff] (!%p6187_p4) }
  0x5c   : > { %827 = sbr.rel (%p6187_p4) target bundleno = 116 (0x74), region = 52  ;;  %829 = vst [vmem:[#allocation2 + $0xa0] sm:$0xff] (!%p6187_p4), %v7918_v4  ;;  %830 = vst [vmem:[#allocation2 + $0xa8] sm:$0xff] (!%p6187_p4), %v7918_v4  ;;  %s6358_s16 = sshll.u32 (!%p6187_p4), %s6188_s13, 3  ;;  %v1008_v9 = vld [vmem:[#allocation2 + $0x18] sm:$0x1] (!%p6187_p4) }
  0x5d   : > { %831 = vst [vmem:[#allocation2 + $0xb0] sm:$0xff] (!%p6187_p4), %v7918_v4  ;;  %832 = vst [vmem:[#allocation2 + $0xb8] sm:$0xff] (!%p6187_p4), %v7918_v4  ;;  %s8245_s17 = scalar_lea.vmem (!%p6187_p4), %s8057_s27, %s6358_s16  ;;  %v1005_v16 = vld [vmem:[#allocation2 + $0x10] sm:$0xff] (!%p6187_p4)  ;;  %v1023_v40 = vld [vmem:[#allocation2 + $0x40] sm:$0xff] (!%p6187_p4) }
  0x5e   : > { %v7665_v46 = vld [vmem:[%s8245_s17] sm:$0xff] (!%p6187_p4)   ;;  %v7666_v6 = vld [vmem:[%s8245_s17 + $0x8] sm:$0xff] (!%p6187_p4)   ;;  %v7667_v13 = vld [vmem:[%s8245_s17 + $0x10] sm:$0xff] (!%p6187_p4)  }
  0x5f   : > { %v908_v7 = vshrl.u32 (!%p6187_p4), %v7665_v46, 16  ;;  %v911_v8 = vshll.u32 (!%p6187_p4), %v7665_v46, 16  ;;  %v915_v11 = vshrl.u32 (!%p6187_p4), %v7666_v6, 16  ;;  %v918_v12 = vshll.u32 (!%p6187_p4), %v7666_v6, 16  ;;  %v7668_v14 = vld [vmem:[%s8245_s17 + $0x18] sm:$0xff] (!%p6187_p4)   ;;  %v7669_v18 = vld [vmem:[%s8245_s17 + $0x20] sm:$0xff] (!%p6187_p4)   ;;  %vm8254_vm10 = vmand (!%p6187_p4), %vm997_vm9, %vm281_vm3 }
  0x60   : > { %v1014_v17 = vld [vmem:[#allocation2 + $0x28] sm:$0x1] (!%p6187_p4)  ;;  %v922_v21 = vshrl.u32 (!%p6187_p4), %v7667_v13, 16  ;;  %v925_v22 = vshll.u32 (!%p6187_p4), %v7667_v13, 16  ;;  %v929_v23 = vshrl.u32 (!%p6187_p4), %v7668_v14, 16  ;;  %v932_v29 = vshll.u32 (!%p6187_p4), %v7668_v14, 16 }
  0x61   : > { %v910_v15 = vrot.slane (!%p6187_p4), %v908_v7, 7  ;;  %v917_v20 = vrot.slane (!%p6187_p4), %v915_v11, 7  ;;  %v1020_v24 = vld [vmem:[#allocation2 + $0x38] sm:$0x1] (!%p6187_p4)  ;;  %v1011_v28 = vld [vmem:[#allocation2 + $0x20] sm:$0xff] (!%p6187_p4)  ;;  %v1017_v30 = vld [vmem:[#allocation2 + $0x30] sm:$0xff] (!%p6187_p4) }
  0x62   : > { %v936_v31 = vshrl.u32 (!%p6187_p4), %v7669_v18, 16  ;;  %v7670_v32 = vld [vmem:[%s8245_s17 + $0x28] sm:$0xff] (!%p6187_p4)   ;;  %v924_v35 = vrot.slane (!%p6187_p4), %v922_v21, 7  ;;  %v931_v36 = vrot.slane (!%p6187_p4), %v929_v23, 7  ;;  %v939_v2 = vshll.u32 (!%p6187_p4), %v7669_v18, 16  ;;  %v7671_v52 = vld [vmem:[%s8245_s17 + $0x30] sm:$0xff] (!%p6187_p4)  }
  0x63   : > { %v913_v25 = vor.u32 %v911_v8, %v910_v15  ;;  %v1003_v27 = vsel %vm8033_vm2, %v910_v15, %v1002_v5  ;;  %v920_v33 = vor.u32 %v918_v12, %v917_v20  ;;  %v1009_v34 = vsel %vm8033_vm2, %v917_v20, %v1008_v9  ;;  %v1026_v37 = vld [vmem:[#allocation2 + $0x48] sm:$0x1]  ;;  %v1032_v47 = vld [vmem:[#allocation2 + $0x58] sm:$0x1]  ;;  %v1029_v59 = vld [vmem:[#allocation2 + $0x50] sm:$0xff] }
  0x64   : > { %1004 = vst [vmem:[#allocation2 + $0x8] sm:$0x1] %v1003_v27  ;;  %1010 = vst [vmem:[#allocation2 + $0x18] sm:$0x1] %v1009_v34  ;;  %v938_v39 = vrot.slane %v936_v31, 7  ;;  %v943_v41 = vshrl.u32 %v7670_v32, 16  ;;  %v927_v43 = vor.u32 %v925_v22, %v924_v35  ;;  %v1015_v44 = vsel %vm8033_vm2, %v924_v35, %v1014_v17 }
  0x65   : > { %v1000_v38 = vsel %vm8254_vm10, %v913_v25, %v999_v10  ;;  %v1006_v42 = vsel %vm8254_vm10, %v920_v33, %v1005_v16  ;;  %v934_v45 = vor.u32 %v932_v29, %v931_v36  ;;  %1016 = vst [vmem:[#allocation2 + $0x28] sm:$0x1] %v1015_v44  ;;  %v1021_v48 = vsel %vm8033_vm2, %v931_v36, %v1020_v24  ;;  %v1038_v56 = vld [vmem:[#allocation2 + $0x68] sm:$0x1]  ;;  %v7672_v57 = vld [vmem:[%s8245_s17 + $0x38] sm:$0xff]   ;;  %v7673_v1 = vld [vmem:[%s8245_s17 + $0x40] sm:$0xff]  }
  0x66   : > { %1001 = vst [vmem:[#allocation2] sm:$0xff] %v1000_v38  ;;  %1007 = vst [vmem:[#allocation2 + $0x10] sm:$0xff] %v1006_v42  ;;  %v941_v49 = vor.u32 %v939_v2, %v938_v39  ;;  %v1027_v50 = vsel %vm8033_vm2, %v938_v39, %v1026_v37  ;;  %v945_v51 = vrot.slane %v943_v41, 7  ;;  %v1012_v53 = vsel %vm8254_vm10, %v927_v43, %v1011_v28  ;;  %v1044_v63 = vld [vmem:[#allocation2 + $0x78] sm:$0x1]  ;;  %v1035_v6 = vld [vmem:[#allocation2 + $0x60] sm:$0xff] }
  0x67   : > { %v1018_v54 = vsel %vm8254_vm10, %v934_v45, %v1017_v30  ;;  %1022 = vst [vmem:[#allocation2 + $0x38] sm:$0x1] %v1021_v48  ;;  %1028 = vst [vmem:[#allocation2 + $0x48] sm:$0x1] %v1027_v50  ;;  %v946_v55 = vshll.u32 %v7670_v32, 16  ;;  %v950_v61 = vshrl.u32 %v7671_v52, 16 }
  0x68   : > { %1013 = vst [vmem:[#allocation2 + $0x20] sm:$0xff] %v1012_v53  ;;  %1019 = vst [vmem:[#allocation2 + $0x30] sm:$0xff] %v1018_v54  ;;  %v1024_v58 = vsel %vm8254_vm10, %v941_v49, %v1023_v40  ;;  %v1033_v60 = vsel %vm8033_vm2, %v945_v51, %v1032_v47  ;;  %v953_v62 = vshll.u32 %v7671_v52, 16  ;;  %v957_v4 = vshrl.u32 %v7672_v57, 16  ;;  %v1050_v9 = vld [vmem:[#allocation2 + $0x88] sm:$0x1] }
  0x69   : > { %1025 = vst [vmem:[#allocation2 + $0x40] sm:$0xff] %v1024_v58  ;;  %v948_v3 = vor.u32 %v946_v55, %v945_v51  ;;  %1034 = vst [vmem:[#allocation2 + $0x58] sm:$0x1] %v1033_v60  ;;  %v960_v46 = vshll.u32 %v7672_v57, 16  ;;  %v952_v5 = vrot.slane %v950_v61, 7  ;;  %v964_v7 = vshrl.u32 %v7673_v1, 16 }
  0x6a   : > { %v967_v8 = vshll.u32 %v7673_v1, 16  ;;  %v959_v11 = vrot.slane %v957_v4, 7  ;;  %v7674_v12 = vld [vmem:[%s8245_s17 + $0x48] sm:$0xff]   ;;  %v1041_v15 = vld [vmem:[#allocation2 + $0x70] sm:$0xff]  ;;  %v1047_v20 = vld [vmem:[#allocation2 + $0x80] sm:$0xff] }
  0x6b   : > { %v1030_v10 = vsel %vm8254_vm10, %v948_v3, %v1029_v59  ;;  %v955_v13 = vor.u32 %v953_v62, %v952_v5  ;;  %v1039_v14 = vsel %vm8033_vm2, %v952_v5, %v1038_v56  ;;  %v966_v16 = vrot.slane %v964_v7, 7  ;;  %v1056_v27 = vld [vmem:[#allocation2 + $0x98] sm:$0x1]  ;;  %v1053_v31 = vld [vmem:[#allocation2 + $0x90] sm:$0xff] }
  0x6c   : > { %1031 = vst [vmem:[#allocation2 + $0x50] sm:$0xff] %v1030_v10  ;;  %1040 = vst [vmem:[#allocation2 + $0x68] sm:$0x1] %v1039_v14  ;;  %v962_v17 = vor.u32 %v960_v46, %v959_v11  ;;  %v1045_v18 = vsel %vm8033_vm2, %v959_v11, %v1044_v63  ;;  %v971_v21 = vshrl.u32 %v7674_v12, 16  ;;  %v974_v22 = vshll.u32 %v7674_v12, 16 }
  0x6d   : > { %v1036_v23 = vsel %vm8254_vm10, %v955_v13, %v1035_v6  ;;  %1046 = vst [vmem:[#allocation2 + $0x78] sm:$0x1] %v1045_v18  ;;  %v969_v24 = vor.u32 %v967_v8, %v966_v16  ;;  %v1051_v25 = vsel %vm8033_vm2, %v966_v16, %v1050_v9 }
  0x6e   : > { %1037 = vst [vmem:[#allocation2 + $0x60] sm:$0xff] %v1036_v23  ;;  %v1042_v28 = vsel %vm8254_vm10, %v962_v17, %v1041_v15  ;;  %1052 = vst [vmem:[#allocation2 + $0x88] sm:$0x1] %v1051_v25  ;;  %v973_v29 = vrot.slane %v971_v21, 7 }
  0x6f   : > { %1043 = vst [vmem:[#allocation2 + $0x70] sm:$0xff] %v1042_v28  ;;  %v1048_v30 = vsel %vm8254_vm10, %v969_v24, %v1047_v20 }
  0x70   : > { %1049 = vst [vmem:[#allocation2 + $0x80] sm:$0xff] %v1048_v30  ;;  %v976_v32 = vor.u32 %v974_v22, %v973_v29  ;;  %v1057_v33 = vsel %vm8033_vm2, %v973_v29, %v1056_v27 }
  0x71   : > { %1058 = vst [vmem:[#allocation2 + $0x98] sm:$0x1] %v1057_v33 }
  0x72   : > { %v1054_v34 = vsel %vm8254_vm10, %v976_v32, %v1053_v31 }
  0x73   : > { %1055 = vst [vmem:[#allocation2 + $0x90] sm:$0xff] %v1054_v34 }
  0x74 PF: > { %v7675_v35 = vld [vmem:[%s9539_s1] sm:$0xff]   ;;  %v7676_v36 = vld [vmem:[%s9539_s1 + $0x8] sm:$0xff]   ;;  %v7677_v37 = vld [vmem:[%s9539_s1 + $0x10] sm:$0xff]   ;;  %vm1594_vm11 = vcmask 1046528   ;;  %vm1095_vm12 = vsmask.f32 7424 }
  0x75   : > { %6702 = vmatprep.subr.bf16.mxu0 %v7675_v35  ;;  %v7678_v19 = vld [vmem:[%s9539_s1 + $0x18] sm:$0xff]   ;;  %v8315_v38 = vld [vmem:[#allocation2] sm:$0xff]  ;;  %v7680_v2 = vld [vmem:[%s9539_s1 + $0x28] sm:$0xff]   ;;  %vm3623_vm13 = vcmask 1047552  }
  0x76   : > { %6703 = vmatpush3.bf16.msra.mxu0 %v7675_v35  ;;  %6718 = vmatprep.mubr.bf16.mxu0 %v8315_v38  ;;  %v7679_v39 = vld [vmem:[%s9539_s1 + $0x20] sm:$0xff]   ;;  %v7681_v40 = vld [vmem:[%s9539_s1 + $0x30] sm:$0xff]   ;;  %v7682_v41 = vld [vmem:[%s9539_s1 + $0x38] sm:$0xff]  }
  0x77   : > { %6704 = vmatprep.subr.bf16.mxu0 %v7676_v36  ;;  %v7683_v42 = vld [vmem:[%s9539_s1 + $0x80] sm:$0xff]   ;;  %v8333_v43 = vld [vmem:[#allocation2 + $0x10] sm:$0xff]  ;;  %v7684_v44 = vld [vmem:[%s9539_s1 + $0x88] sm:$0xff]  }
  0x78   : > { %v8338_v45 = vld [vmem:[#allocation2 + $0x20] sm:$0xff]  ;;  %v7685_v47 = vld [vmem:[%s9539_s1 + $0x90] sm:$0xff]   ;;  %v7686_v50 = vld [vmem:[%s9539_s1 + $0x98] sm:$0xff]  }
  0x79   : > { %v8345_v48 = vld [vmem:[#allocation2 + $0x30] sm:$0xff]  ;;  %v8347_v49 = vld [vmem:[#allocation2 + $0x40] sm:$0xff]  ;;  %v7688_v54 = vld [vmem:[%s9539_s1 + $0xa8] sm:$0xff]  }
  0x7a   : > { %6705 = vmatpush3.bf16.msra.mxu0 %v7676_v36  ;;  %v7687_v51 = vld [vmem:[%s9539_s1 + $0xa0] sm:$0xff]   ;;  %v8357_v52 = vld [vmem:[#allocation2 + $0x50] sm:$0xff]  ;;  %v7690_v58 = vld [vmem:[%s9539_s1 + $0xb8] sm:$0xff]  }
  0x7b   : > { %6706 = vmatprep.subr.bf16.mxu0 %v7677_v37  ;;  %v8359_v53 = vld [vmem:[#allocation2 + $0x60] sm:$0xff]  ;;  %v7689_v55 = vld [vmem:[%s9539_s1 + $0xb0] sm:$0xff]   ;;  %v8376_v59 = vld [vmem:[#allocation2 + $0x8] sm:$0x1] }
  0x7c   : > { %v8369_v56 = vld [vmem:[#allocation2 + $0x70] sm:$0xff]  ;;  %v8371_v57 = vld [vmem:[#allocation2 + $0x80] sm:$0xff]  ;;  %v1596_v62 = vrot.slane %v8376_v59, 1  ;;  %v8386_v3 = vld [vmem:[#allocation2 + $0x18] sm:$0x1] }
  0x7d   : > { %v1564_v60 = vld [vmem:[#allocation2] sm:$0xfe]  ;;  %v8384_v1 = vld [vmem:[#allocation2 + $0x90] sm:$0xff]  ;;  %v8388_v46 = vld [vmem:[#allocation2 + $0x28] sm:$0x1]  ;;  %v1599_v8 = vrot.slane %v8386_v3, 1 }
  0x7e   : > { %6707 = vmatpush3.bf16.msra.mxu0 %v7677_v37  ;;  %v1595_v61 = vrot.slane %v1564_v60, 1  ;;  %v7691_v63 = vld [vmem:[%s9539_s1 + $0xc0] sm:$0xff]   ;;  %v1565_v4 = vld [vmem:[#allocation2 + $0x10] sm:$0xfe]  ;;  %v1602_v10 = vrot.slane %v8388_v46, 1  ;;  %v7692_v11 = vld [vmem:[%s9539_s1 + $0xc8] sm:$0xff]  }
  0x7f   : > { %6708 = vmatprep.subr.bf16.mxu0 %v7678_v19  ;;  %v1566_v5 = vld [vmem:[#allocation2 + $0x20] sm:$0xfe]  ;;  %v1598_v7 = vrot.slane %v1565_v4, 1  ;;  %v8397_v12 = vld [vmem:[#allocation2 + $0x38] sm:$0x1]  ;;  %v7693_v21 = vld [vmem:[%s9539_s1 + $0xd0] sm:$0xff]  }
  0x80   : > { %v1597_v6 = vsel %vm1594_vm11, %v1595_v61, %v1596_v62  ;;  %v1601_v9 = vrot.slane %v1566_v5, 1  ;;  %v1567_v13 = vld [vmem:[#allocation2 + $0x30] sm:$0xfe]  ;;  %v8400_v15 = vld [vmem:[#allocation2 + $0x48] sm:$0x1]  ;;  %v1605_v20 = vrot.slane %v8397_v12, 1  ;;  %vm8852_vm14 = vmand %vm3623_vm13, %vm281_vm3 }
  0x81   : > { %v1600_v14 = vsel %vm1594_vm11, %v1598_v7, %v1599_v8  ;;  %v1568_v16 = vld [vmem:[#allocation2 + $0x40] sm:$0xfe]  ;;  %v1604_v18 = vrot.slane %v1567_v13, 1  ;;  %v1608_v23 = vrot.slane %v8400_v15, 1  ;;  %v7694_v24 = vld [vmem:[%s9539_s1 + $0xd8] sm:$0xff]   ;;  %v7700_v7 = vld [vmem:[%s9539_s1 + $0x108] sm:$0xff]  }
  0x82   : > { %6709 = vmatpush3.bf16.msra.mxu0 %v7678_v19  ;;  %v1603_v17 = vsel %vm1594_vm11, %v1601_v9, %v1602_v10  ;;  %v1607_v22 = vrot.slane %v1568_v16, 1  ;;  %v8411_v25 = vld [vmem:[#allocation2 + $0x58] sm:$0x1]  ;;  %v1569_v27 = vld [vmem:[#allocation2 + $0x50] sm:$0xfe]  ;;  %v7695_v34 = vld [vmem:[%s9539_s1 + $0xe0] sm:$0xff]  }
  0x83   : > { %6710 = vmatprep.subr.bf16.mxu0 %v7679_v39  ;;  %v1606_v28 = vsel %vm1594_vm11, %v1604_v18, %v1605_v20  ;;  %v8414_v29 = vld [vmem:[#allocation2 + $0x68] sm:$0x1]  ;;  %v1570_v30 = vld [vmem:[#allocation2 + $0x60] sm:$0xfe]  ;;  %v1610_v32 = vrot.slane %v1569_v27, 1  ;;  %v1611_v33 = vrot.slane %v8411_v25, 1 }
  0x84   : > { %v1609_v31 = vsel %vm1594_vm11, %v1607_v22, %v1608_v23  ;;  %v1613_v35 = vrot.slane %v1570_v30, 1  ;;  %v1614_v36 = vrot.slane %v8414_v29, 1  ;;  %v8422_v37 = vld [vmem:[#allocation2 + $0x78] sm:$0x1]  ;;  %v1571_v19 = vld [vmem:[#allocation2 + $0x70] sm:$0xfe] }
  0x85   : > { %v8438_v60 = vld [vmem:[#allocation2 + $0x98] sm:$0x1]  ;;  %v1573_v61 = vld [vmem:[#allocation2 + $0x90] sm:$0xfe]  ;;  %v7699_v5 = vld [vmem:[%s9539_s1 + $0x100] sm:$0xff]   ;;  %v1111_v13 = vshll.u32 %v8333_v43, 16 }
  0x86   : > { %6711 = vmatpush3.bf16.msra.mxu0 %v7679_v39  ;;  %v7696_v39 = vld [vmem:[%s9539_s1 + $0xe8] sm:$0xff]   ;;  %v7698_v62 = vld [vmem:[%s9539_s1 + $0xf8] sm:$0xff]   ;;  %v1623_v4 = vrot.slane %v8438_v60, 1  ;;  %v7701_v8 = vld [vmem:[%s9539_s1 + $0x110] sm:$0xff]   ;;  %v1123_v22 = vshll.u32 %v8338_v45, 16 }
  0x87   : > { %6712 = vmatprep.subr.bf16.mxu0 %v7680_v2  ;;  %v7702_v9 = vld [vmem:[%s9539_s1 + $0x118] sm:$0xff]   ;;  %v7703_v10 = vld [vmem:[%s9539_s1 + $0x120] sm:$0xff]   ;;  %v1113_v18 = vrot.slane %v1111_v13, 1  ;;  %v8487_v27 = vld [vmem:[#allocation2 + $0x28] sm:$0x1] }
  0x88   : > { %v8474_v16 = vld [vmem:[#allocation2 + $0x18] sm:$0x1] }
  0x89   : > { %v7706_v20 = vld [vmem:[%s9539_s1 + $0x138] sm:$0xff]  }
  0x8a   : > { %6713 = vmatpush3.bf16.msra.mxu0 %v7680_v2  ;;  %v1612_v2 = vsel %vm1594_vm11, %v1610_v32, %v1611_v33  ;;  %v8492_v30 = vld [vmem:[#allocation2 + $0x38] sm:$0x1]  ;;  %v1125_v32 = vrot.slane %v1123_v22, 1  ;;  %v8495_v33 = vld [vmem:[#allocation2 + $0xa0] sm:$0xff]  ;;  %v1169_v22 = vshrl.u32 %v8359_v53, 16 }
  0x8b   : > { %6714 = vmatprep.subr.bf16.mxu0 %v7681_v40 }
  0x8e   : > { %6715 = vmatpush3.bf16.msra.mxu0 %v7681_v40  ;;  %v8428_v40 = vld [vmem:[#allocation2 + $0x88] sm:$0x1] }
  0x8f   : > { %6716 = vmatprep.subr.bf16.mxu0 %v7682_v41 }
  0x92   : > { %6717 = vmatpush3.bf16.msra.mxu0 %v7682_v41  ;;  %v1572_v41 = vld [vmem:[#allocation2 + $0x80] sm:$0xfe] }
  0x93   : > { %6738 = vmatprep.subr.bf16.mxu0 %v7683_v42 }
  0x95   : > { %6719 = vmatmul.mubr.bf16.vlgmr.msra.gmra.mrb[0].mxu0 %v8333_v43 }
  0x96   : > { %6739 = vmatpush3.bf16.msra.mxu0 %v7683_v42  ;;  %6722 = vmatprep.mubr.bf16.mxu0 %v8338_v45  ;;  %v1615_v42 = vsel %vm1594_vm11, %v1613_v35, %v1614_v36  ;;  %v1133_v35 = vshrl.u32 %v8345_v48, 16 }
  0x97   : > { %6740 = vmatprep.subr.bf16.mxu0 %v7684_v44 }
  0x9a   : > { %6741 = vmatpush3.bf16.msra.mxu0 %v7684_v44  ;;  %v1616_v44 = vrot.slane %v1571_v19, 1 }
  0x9b   : > { %6742 = vmatprep.subr.bf16.mxu0 %v7685_v47 }
  0x9d   : > { %6723 = vmatmul.mubr.bf16.gmra.mrb[4].mxu0 %v8345_v48 }
  0x9e   : > { %6743 = vmatpush3.bf16.msra.mxu0 %v7685_v47  ;;  %6726 = vmatprep.mubr.bf16.mxu0 %v8347_v49  ;;  %v1617_v47 = vrot.slane %v8422_v37, 1 }
  0x9f   : > { %6744 = vmatprep.subr.bf16.mxu0 %v7686_v50 }
  0xa2   : > { %6745 = vmatpush3.bf16.msra.mxu0 %v7686_v50  ;;  %v7697_v50 = vld [vmem:[%s9539_s1 + $0xf0] sm:$0xff]  }
  0xa3   : > { %6746 = vmatprep.subr.bf16.mxu0 %v7687_v51 }
  0xa5   : > { %6727 = vmatmul.mubr.bf16.gmra.mrb[8].mxu0 %v8357_v52 }
  0xa6   : > { %6747 = vmatpush3.bf16.msra.mxu0 %v7687_v51  ;;  %6730 = vmatprep.mubr.bf16.mxu0 %v8359_v53  ;;  %v1619_v51 = vrot.slane %v1572_v41, 1 }
  0xa7   : > { %6748 = vmatprep.subr.bf16.mxu0 %v7688_v54 }
  0xaa   : > { %6749 = vmatpush3.bf16.msra.mxu0 %v7688_v54  ;;  %v1620_v54 = vrot.slane %v8428_v40, 1 }
  0xab   : > { %6750 = vmatprep.subr.bf16.mxu0 %v7689_v55 }
  0xad   : > { %6731 = vmatmul.mubr.bf16.gmra.mrb[12].mxu0 %v8369_v56 }
  0xae   : > { %6734 = vmatprep.mubr.bf16.mxu0 %v8371_v57  ;;  %6751 = vmatpush3.bf16.msra.mxu0 %v7689_v55  ;;  %v1618_v55 = vsel %vm1594_vm11, %v1616_v44, %v1617_v47  ;;  %v1159_v44 = vshll.u32 %v8357_v52, 16 }
  0xaf   : > { %6752 = vmatprep.subr.bf16.mxu0 %v7690_v58 }
  0xb2   : > { %6753 = vmatpush3.bf16.msra.mxu0 %v7690_v58  ;;  %v1621_v58 = vsel %vm1594_vm11, %v1619_v51, %v1620_v54  ;;  %v7733_v51 = vld [vmem:[%s9539_s1 + $0x40] sm:$0xff]   ;;  %v8514_v54 = vld [vmem:[#allocation2 + $0x58] sm:$0x1] }
  0xb3   : > { %6774 = vmatprep.subr.bf16.mxu0 %v7691_v63  ;;  %6666 = vmatprep.subr.bf16.mxu1 %v7733_v51 }
  0xb4   : > { %6667 = vmatpush3.bf16.msra.mxu1 %v7733_v51  ;;  %v1207_v51 = vshll.u32 %v8384_v1, 16 }
  0xb5   : > { %6735 = vmatmul.mubr.bf16.gmra.mrb[16].mxu0 %v8384_v1 }
  0xb6   : > { %6754 = vmatprep.mubr.bf16.mxu0 %v1597_v6 }
  0xbd   : > { %6755 = vmatmul.mubr.bf16.vlgmr.msra.gmra.mrb[0].mxu0 %v1600_v14  ;;  %v7705_v14 = vld [vmem:[%s9539_s1 + $0x130] sm:$0xff]  }
  0xbe   : > { %6775 = vmatpush3.bf16.msra.mxu0 %v7691_v63  ;;  %6758 = vmatprep.mubr.bf16.mxu0 %v1603_v17  ;;  %v1622_v63 = vrot.slane %v1573_v61, 1  ;;  %v1109_v17 = vshrl.u32 %v8333_v43, 16 }
  0xbf   : > { %6776 = vmatprep.subr.bf16.mxu0 %v7692_v11 }
  0xc0   : > { %v1624_v6 = vsel %vm1594_vm11, %v1622_v63, %v1623_v4  ;;  %v8484_v23 = vor.u32 %v1113_v18, %v1109_v17  ;;  %v1157_v63 = vshrl.u32 %v8357_v52, 16  ;;  %v1161_v4 = vrot.slane %v1159_v44, 1  ;;  %v7709_v17 = vld [vmem:[%s9539_s1 + $0x150] sm:$0xff]   ;;  %v7740_v44 = vld [vmem:[%s9539_s1 + $0x60] sm:$0xff]  }
  0xc2   : > { %6777 = vmatpush3.bf16.msra.mxu0 %v7692_v11  ;;  %v7704_v11 = vld [vmem:[%s9539_s1 + $0x128] sm:$0xff]   ;;  %v8536_v13 = vor.u32 %v1161_v4, %v1157_v63  ;;  %v1193_v63 = vshrl.u32 %v8371_v57, 16 }
  0xc3   : > { %6778 = vmatprep.subr.bf16.mxu0 %v7693_v21 }
  0xc5   : > { %6759 = vmatmul.mubr.bf16.gmra.mrb[4].mxu0 %v1606_v28  ;;  %v7707_v28 = vld [vmem:[%s9539_s1 + $0x140] sm:$0xff]  }
  0xc6   : > { %6779 = vmatpush3.bf16.msra.mxu0 %v7693_v21  ;;  %6762 = vmatprep.mubr.bf16.mxu0 %v1609_v31  ;;  %v2068_v21 = vshll.u32 %v8474_v16, 16  ;;  %v1121_v31 = vshrl.u32 %v8338_v45, 16 }
  0xc7   : > { %6780 = vmatprep.subr.bf16.mxu0 %v7694_v24 }
  0xca   : > { %6781 = vmatpush3.bf16.msra.mxu0 %v7694_v24  ;;  %v1135_v24 = vshll.u32 %v8345_v48, 16 }
  0xcb   : > { %6782 = vmatprep.subr.bf16.mxu0 %v7695_v34 }
  0xcc   : > { %v1137_v36 = vrot.slane %v1135_v24, 1 }
  0xcd   : > { %6763 = vmatmul.mubr.bf16.gmra.mrb[8].mxu0 %v1612_v2  ;;  %v8503_v2 = vor.u32 %v1125_v32, %v1121_v31  ;;  %v1181_v31 = vshrl.u32 %v8369_v56, 16 }
  0xce   : > { %6783 = vmatpush3.bf16.msra.mxu0 %v7695_v34  ;;  %6766 = vmatprep.mubr.bf16.mxu0 %v1615_v42  ;;  %v2080_v34 = vshll.u32 %v8487_v27, 16  ;;  %v8506_v42 = vor.u32 %v1137_v36, %v1133_v35  ;;  %v7710_v35 = vld [vmem:[%s9539_s1 + $0x158] sm:$0xff]  }
  0xcf   : > { %6784 = vmatprep.subr.bf16.mxu0 %v7696_v39 }
  0xd0   : > { %v2082_v41 = vrot.slane %v2080_v34, 1 }
  0xd2   : > { %6785 = vmatpush3.bf16.msra.mxu0 %v7696_v39  ;;  %v2092_v39 = vshll.u32 %v8492_v30, 16  ;;  %v2083_v61 = vsel %vm1095_vm12, %v8503_v2, %v2082_v41 }
  0xd3   : > { %6786 = vmatprep.subr.bf16.mxu0 %v7697_v50 }
  0xd4   : > { %v2094_v47 = vrot.slane %v2092_v39, 1 }
  0xd5   : > { %6767 = vmatmul.mubr.bf16.gmra.mrb[12].mxu0 %v1618_v55  ;;  %v1145_v55 = vshrl.u32 %v8347_v49, 16 }
  0xd6   : > { %6770 = vmatprep.mubr.bf16.mxu0 %v1621_v58  ;;  %6787 = vmatpush3.bf16.msra.mxu0 %v7697_v50  ;;  %v8509_v50 = vld [vmem:[#allocation2 + $0x48] sm:$0x1] }
  0xd7   : > { %6788 = vmatprep.subr.bf16.mxu0 %v7698_v62 }
  0xda   : > { %6789 = vmatpush3.bf16.msra.mxu0 %v7698_v62  ;;  %v2104_v62 = vshll.u32 %v8509_v50, 16 }
  0xdb   : > { %6810 = vmatprep.subr.bf16.mxu0 %v7699_v5 }
  0xdd   : > { %6771 = vmatmul.mubr.bf16.gmra.mrb[16].mxu0 %v1624_v6  ;;  %v2095_v6 = vsel %vm1095_vm12, %v8506_v42, %v2094_v47 }
  0xde   : > { %6790 = vmatprep.mubr.bf16.mxu0 %v8333_v43  ;;  %v2070_v43 = vrot.slane %v2068_v21, 1  ;;  %v8544_v21 = vld [vmem:[#allocation2 + $0x78] sm:$0x1] }
  0xdf   : > { %v2140_v36 = vshll.u32 %v8544_v21, 16 }
  0xe0   : > { %v2071_v19 = vsel %vm1095_vm12, %v8484_v23, %v2070_v43 }
  0xe5   : > { %6791 = vmatmul.mubr.bf16.vlgmr.msra.gmra.mrb[0].mxu0 %v8338_v45  ;;  %v1147_v45 = vshll.u32 %v8347_v49, 16 }
  0xe6   : > { %6811 = vmatpush3.bf16.msra.mxu0 %v7699_v5  ;;  %6794 = vmatprep.mubr.bf16.mxu0 %v8345_v48  ;;  %v7708_v5 = vld [vmem:[%s9539_s1 + $0x148] sm:$0xff]  }
  0xe7   : > { %6812 = vmatprep.subr.bf16.mxu0 %v7700_v7  ;;  %v1149_v58 = vrot.slane %v1147_v45, 1  ;;  %v1195_v45 = vshll.u32 %v8371_v57, 16 }
  0xe9   : > { %v1197_v4 = vrot.slane %v1195_v45, 1  ;;  %v2169_v45 = vshrl.u32 %v8495_v33, 16 }
  0xea   : > { %6813 = vmatpush3.bf16.msra.mxu0 %v7700_v7  ;;  %v2116_v7 = vshll.u32 %v8514_v54, 16 }
  0xeb   : > { %6814 = vmatprep.subr.bf16.mxu0 %v7701_v8 }
  0xec   : > { %v2118_v18 = vrot.slane %v2116_v7, 1  ;;  %v1205_v7 = vshrl.u32 %v8384_v1, 16 }
  0xed   : > { %6795 = vmatmul.mubr.bf16.gmra.mrb[4].mxu0 %v8347_v49  ;;  %v7734_v49 = vld [vmem:[%s9539_s1 + $0x48] sm:$0xff]  }
  0xee   : > { %6815 = vmatpush3.bf16.msra.mxu0 %v7701_v8  ;;  %6798 = vmatprep.mubr.bf16.mxu0 %v8357_v52  ;;  %v8530_v8 = vor.u32 %v1149_v58, %v1145_v55  ;;  %v2119_v34 = vsel %vm1095_vm12, %v8536_v13, %v2118_v18  ;;  %v7711_v55 = vld [vmem:[%s9539_s1 + $0x160] sm:$0xff]   ;;  %v2142_v58 = vrot.slane %v2140_v36, 1  ;;  %v7743_v18 = vld [vmem:[%s9539_s1 + $0x70] sm:$0xff]  }
  0xef   : > { %6816 = vmatprep.subr.bf16.mxu0 %v7702_v9  ;;  %6668 = vmatprep.subr.bf16.mxu1 %v7734_v49 }
  0xf0   : > { %6669 = vmatpush3.bf16.msra.mxu1 %v7734_v49  ;;  %v1209_v49 = vrot.slane %v1207_v51, 1 }
  0xf2   : > { %6817 = vmatpush3.bf16.msra.mxu0 %v7702_v9  ;;  %v1171_v9 = vshll.u32 %v8359_v53, 16 }
  0xf3   : > { %6818 = vmatprep.subr.bf16.mxu0 %v7703_v10 }
  0xf4   : > { %v1173_v24 = vrot.slane %v1171_v9, 1 }
  0xf5   : > { %6799 = vmatmul.mubr.bf16.gmra.mrb[8].mxu0 %v8359_v53 }
  0xf6   : > { %6819 = vmatpush3.bf16.msra.mxu0 %v7703_v10  ;;  %6802 = vmatprep.mubr.bf16.mxu0 %v8369_v56  ;;  %v2106_v10 = vrot.slane %v2104_v62, 1  ;;  %v8560_v39 = vor.u32 %v1173_v24, %v1169_v22  ;;  %v8574_v62 = vld [vmem:[#allocation2 + $0x98] sm:$0x1]  ;;  %v8594_v22 = vor.u32 %v1197_v4, %v1193_v63  ;;  %v1104_v63 = vshll.u32 %v8376_v59, 16 }
  0xf7   : > { %6820 = vmatprep.subr.bf16.mxu0 %v7704_v11 }
  0xf8   : > { %v2107_v43 = vsel %vm1095_vm12, %v8530_v8, %v2106_v10  ;;  %v7712_v10 = vld [vmem:[%s9539_s1 + $0x168] sm:$0xff]  }
  0xfa   : > { %6821 = vmatpush3.bf16.msra.mxu0 %v7704_v11  ;;  %v7736_v11 = vld [vmem:[%s9539_s1 + $0x50] sm:$0xff]  }
  0xfb   : > { %6822 = vmatprep.subr.bf16.mxu0 %v7705_v14  ;;  %6670 = vmatprep.subr.bf16.mxu1 %v7736_v11 }
  0xfc   : > { %6671 = vmatpush3.bf16.msra.mxu1 %v7736_v11  ;;  %v2164_v11 = vshll.u32 %v8574_v62, 16 }
  0xfd   : > { %6803 = vmatmul.mubr.bf16.gmra.mrb[12].mxu0 %v8371_v57 }
  0xfe   : > { %6806 = vmatprep.mubr.bf16.mxu0 %v8384_v1  ;;  %6823 = vmatpush3.bf16.msra.mxu0 %v7705_v14  ;;  %v1183_v14 = vshll.u32 %v8369_v56, 16 }
  0xff   : > { %6824 = vmatprep.subr.bf16.mxu0 %v7706_v20 }
 0x100   : > { %v1185_v32 = vrot.slane %v1183_v14, 1  ;;  %v7742_v14 = vld [vmem:[%s9539_s1 + $0x68] sm:$0xff]  }
 0x102   : > { %6825 = vmatpush3.bf16.msra.mxu0 %v7706_v20  ;;  %v8542_v20 = vld [vmem:[#allocation2 + $0x68] sm:$0x1]  ;;  %v8566_v47 = vor.u32 %v1185_v32, %v1181_v31  ;;  %v7713_v31 = vld [vmem:[%s9539_s1 + $0x170] sm:$0xff]   ;;  %v2166_v32 = vrot.slane %v2164_v11, 1  ;;  %v7715_v11 = vld [vmem:[%s9539_s1 + $0x180] sm:$0xff]  }
 0x103   : > { %6846 = vmatprep.subr.bf16.mxu0 %v7707_v28 }
 0x104   : > { %v2143_v9 = vsel %vm1095_vm12, %v8566_v47, %v2142_v58  ;;  %v7745_v58 = vld [vmem:[%s9539_s1 + $0x78] sm:$0xff]  }
 0x105   : > { %6807 = vmatmul.mubr.bf16.gmra.mrb[16].mxu0 %v8495_v33 }
 0x106   : > { %6826 = vmatprep.mubr.bf16.mxu0 %v2071_v19  ;;  %v7738_v19 = vld [vmem:[%s9539_s1 + $0x58] sm:$0xff]  }
 0x107   : > { %6672 = vmatprep.subr.bf16.mxu1 %v7738_v19 }
 0x108   : > { %6673 = vmatpush3.bf16.msra.mxu1 %v7738_v19 }
 0x109   : > { %6674 = vmatprep.subr.bf16.mxu1 %v7740_v44 }
 0x10c   : > { %6675 = vmatpush3.bf16.msra.mxu1 %v7740_v44 }
 0x10d   : > { %6827 = vmatmul.mubr.bf16.vlgmr.msra.gmra.mrb[0].mxu0 %v2083_v61  ;;  %v8572_v61 = vld [vmem:[#allocation2 + $0x88] sm:$0x1]  ;;  %6676 = vmatprep.subr.bf16.mxu1 %v7742_v14 }
 0x10e   : > { %6847 = vmatpush3.bf16.msra.mxu0 %v7707_v28  ;;  %6830 = vmatprep.mubr.bf16.mxu0 %v2095_v6  ;;  %v2128_v28 = vshll.u32 %v8542_v20, 16  ;;  %v2152_v6 = vshll.u32 %v8572_v61, 16 }
 0x10f   : > { %6848 = vmatprep.subr.bf16.mxu0 %v7708_v5 }
 0x110   : > { %v2130_v41 = vrot.slane %v2128_v28, 1  ;;  %v2154_v24 = vrot.slane %v2152_v6, 1  ;;  %v8597_v28 = vor.u32 %v1209_v49, %v1205_v7  ;;  %6677 = vmatpush3.bf16.msra.mxu1 %v7742_v14  ;;  %v1106_v49 = vrot.slane %v1104_v63, 1  ;;  %v7717_v63 = vld [vmem:[%s9539_s1 + $0x190] sm:$0xff]  }
 0x111   : > { %6678 = vmatprep.subr.bf16.mxu1 %v7743_v18 }
 0x112   : > { %6849 = vmatpush3.bf16.msra.mxu0 %v7708_v5  ;;  %v2131_v5 = vsel %vm1095_vm12, %v8560_v39, %v2130_v41  ;;  %v2155_v19 = vsel %vm1095_vm12, %v8594_v22, %v2154_v24  ;;  %v2167_v51 = vsel %vm1095_vm12, %v8597_v28, %v2166_v32  ;;  %v2389_v24 = vld [vmem:[#allocation2 + $0x30] sm:$0xfe] }
 0x113   : > { %6850 = vmatprep.subr.bf16.mxu0 %v7709_v17 }
 0x114   : > { %6679 = vmatpush3.bf16.msra.mxu1 %v7743_v18 }
 0x115   : > { %6831 = vmatmul.mubr.bf16.gmra.mrb[4].mxu0 %v2107_v43  ;;  %v2171_v43 = vshll.u32 %v8495_v33, 16  ;;  %6680 = vmatprep.subr.bf16.mxu1 %v7745_v58 }
 0x116   : > { %6851 = vmatpush3.bf16.msra.mxu0 %v7709_v17  ;;  %6834 = vmatprep.mubr.bf16.mxu0 %v2119_v34  ;;  %v1099_v17 = vshll.u32 %v8315_v38, 16  ;;  %v8602_v34 = vld [vmem:[#allocation2 + $0xa8] sm:$0x1] }
 0x117   : > { %6852 = vmatprep.subr.bf16.mxu0 %v7710_v35  ;;  %v2173_v41 = vrot.slane %v2171_v43, 1  ;;  %v2176_v44 = vshll.u32 %v8602_v34, 16  ;;  %v1128_v43 = vshll.u32 %v8388_v46, 16 }
 0x118   : > { %v1101_v36 = vrot.slane %v1099_v17, 1  ;;  %6681 = vmatpush3.bf16.msra.mxu1 %v7745_v58 }
 0x119   : > { %v8619_v6 = vor.u32 %v2173_v41, %v2169_v45  ;;  %v2178_v7 = vrot.slane %v2176_v44, 1 }
 0x11a   : > { %6853 = vmatpush3.bf16.msra.mxu0 %v7710_v35  ;;  %v1097_v35 = vshrl.u32 %v8315_v38, 16  ;;  %v2387_v38 = vld [vmem:[#allocation2 + $0x10] sm:$0xfe] }
 0x11b   : > { %6854 = vmatprep.subr.bf16.mxu0 %v7711_v55  ;;  %v2179_v17 = vsel %vm1095_vm12, %v8619_v6, %v2178_v7 }
 0x11c   : > { %v1102_v4 = vor.u32 %v1101_v36, %v1097_v35  ;;  %v2421_v35 = vrot.slane %v8487_v27, 1  ;;  %v2423_v36 = vrot.slane %v2389_v24, 1 }
 0x11d   : > { %6835 = vmatmul.mubr.bf16.gmra.mrb[8].mxu0 %v2131_v5  ;;  %v1116_v5 = vshll.u32 %v8386_v3, 16 }
 0x11e   : > { %6855 = vmatpush3.bf16.msra.mxu0 %v7711_v55  ;;  %6838 = vmatprep.mubr.bf16.mxu0 %v2143_v9  ;;  %v7714_v55 = vld [vmem:[%s9539_s1 + $0x178] sm:$0xff]   ;;  %v2417_v9 = vrot.slane %v2387_v38, 1  ;;  %v1107_v14 = vsel %vm1095_vm12, %v1102_v4, %v1106_v49 }
 0x11f   : > { %6856 = vmatprep.subr.bf16.mxu0 %v7712_v10  ;;  %v1118_v59 = vrot.slane %v1116_v5, 1  ;;  %6682 = vmatprep.mubr.bf16.mxu1 %v1107_v14  ;;  %v2430_v5 = vrot.slane %v8514_v54, 1  ;;  %v2393_v54 = vld [vmem:[#allocation2 + $0x70] sm:$0xfe] }
 0x121   : > { %v1119_v3 = vsel %vm1095_vm12, %v8484_v23, %v1118_v59  ;;  %v1130_v23 = vrot.slane %v1128_v43, 1  ;;  %v2433_v59 = vrot.slane %v8542_v20, 1  ;;  %v2394_v43 = vld [vmem:[#allocation2 + $0x80] sm:$0xfe] }
 0x122   : > { %6857 = vmatpush3.bf16.msra.mxu0 %v7712_v10  ;;  %v2418_v10 = vrot.slane %v8474_v16, 1  ;;  %v2388_v16 = vld [vmem:[#allocation2 + $0x20] sm:$0xfe]  ;;  %6683 = vmatmul.mubr.bf16.vlgmr.msra.gmra.mrb[0].mxu1 %v1119_v3 }
 0x123   : > { %6858 = vmatprep.subr.bf16.mxu0 %v7713_v31  ;;  %v2420_v32 = vrot.slane %v2388_v16, 1  ;;  %v1131_v41 = vsel %vm1095_vm12, %v8503_v2, %v1130_v23  ;;  %v1164_v2 = vshll.u32 %v8411_v25, 16  ;;  %v7719_v3 = vld [vmem:[%s9539_s1 + $0x1a0] sm:$0xff]  }
 0x124   : > { %v2419_v18 = vsel %vm1594_vm11, %v2417_v9, %v2418_v10  ;;  %6686 = vmatprep.mubr.bf16.mxu1 %v1131_v41  ;;  %v7718_v9 = vld [vmem:[%s9539_s1 + $0x198] sm:$0xff]   ;;  %v2392_v10 = vld [vmem:[#allocation2 + $0x60] sm:$0xfe] }
 0x125   : > { %6839 = vmatmul.mubr.bf16.gmra.mrb[12].mxu0 %v2155_v19  ;;  %v2424_v19 = vrot.slane %v8492_v30, 1  ;;  %v2422_v46 = vsel %vm1594_vm11, %v2420_v32, %v2421_v35  ;;  %v1152_v30 = vshll.u32 %v8400_v15, 16  ;;  %v1166_v7 = vrot.slane %v1164_v2, 1  ;;  %v7726_v2 = vld [vmem:[%s9539_s1 + $0x1d8] sm:$0xff]  }
 0x126   : > { %6842 = vmatprep.mubr.bf16.mxu0 %v2167_v51  ;;  %6859 = vmatpush3.bf16.msra.mxu0 %v7713_v31  ;;  %v1140_v31 = vshll.u32 %v8397_v12, 16  ;;  %v7716_v12 = vld [vmem:[%s9539_s1 + $0x188] sm:$0xff]   ;;  %v2390_v51 = vld [vmem:[#allocation2 + $0x40] sm:$0xfe]  ;;  %v1200_v32 = vshll.u32 %v8428_v40, 16  ;;  %v2439_v35 = vrot.slane %v8572_v61, 1 }
 0x127   : > { %6860 = vmatprep.subr.bf16.mxu0 %v7714_v55  ;;  %v2425_v27 = vsel %vm1594_vm11, %v2423_v36, %v2424_v19  ;;  %v2426_v38 = vrot.slane %v2390_v51, 1  ;;  %v1154_v58 = vrot.slane %v1152_v30, 1  ;;  %v1167_v25 = vsel %vm1095_vm12, %v8536_v13, %v1166_v7  ;;  %v7721_v36 = vld [vmem:[%s9539_s1 + $0x1b0] sm:$0xff]   ;;  %v7747_v51 = vld [vmem:[#allocation2 + $0x20] sm:$0xff] }
 0x128   : > { %v1142_v45 = vrot.slane %v1140_v31, 1  ;;  %v2432_v13 = vrot.slane %v2392_v10, 1  ;;  %v7720_v31 = vld [vmem:[%s9539_s1 + $0x1a8] sm:$0xff]   ;;  %v1202_v23 = vrot.slane %v1200_v32, 1  ;;  %v7725_v30 = vld [vmem:[%s9539_s1 + $0x1d0] sm:$0xff]  }
 0x129   : > { %v1155_v15 = vsel %vm1095_vm12, %v8530_v8, %v1154_v58  ;;  %v1188_v8 = vshll.u32 %v8422_v37, 16  ;;  %v8720_v58 = vld [vmem:[#allocation2 + $0x28] sm:$0x1]  ;;  %v2864_v7 = vld [vmem:[#allocation2 + $0x30] sm:$0xff] }
 0x12a   : > { %6861 = vmatpush3.bf16.msra.mxu0 %v7714_v55  ;;  %v1143_v44 = vsel %vm1095_vm12, %v8506_v42, %v1142_v45  ;;  %v2391_v55 = vld [vmem:[#allocation2 + $0x50] sm:$0xfe]  ;;  %v2427_v42 = vrot.slane %v8509_v50, 1  ;;  %v2434_v24 = vsel %vm1594_vm11, %v2432_v13, %v2433_v59  ;;  %v2442_v45 = vrot.slane %v8574_v62, 1 }
 0x12b   : > { %6882 = vmatprep.subr.bf16.mxu0 %v7715_v11  ;;  %6687 = vmatmul.mubr.bf16.gmra.mrb[4].mxu1 %v1143_v44  ;;  %v2429_v4 = vrot.slane %v2391_v55, 1  ;;  %v1190_v16 = vrot.slane %v1188_v8, 1  ;;  %v1203_v40 = vsel %vm1095_vm12, %v8594_v22, %v1202_v23  ;;  %v2445_v22 = vrot.slane %v8602_v34, 1  ;;  %v7724_v55 = vld [vmem:[%s9539_s1 + $0x1c8] sm:$0xff]   ;;  %v7748_v34 = vld [vmem:[#allocation2 + $0x40] sm:$0xff] }
 0x12c   : > { %6690 = vmatprep.mubr.bf16.mxu1 %v1155_v15  ;;  %v2428_v50 = vsel %vm1594_vm11, %v2426_v38, %v2427_v42  ;;  %v7728_v38 = vld [vmem:[%s9539_s1 + $0x1e8] sm:$0xff]   ;;  %v2862_v42 = vld [vmem:[#allocation2 + $0x20] sm:$0xff]  ;;  %v2897_v15 = vshll.u32 %v2864_v7, 16 }
 0x12d   : > { %6843 = vmatmul.mubr.bf16.gmra.mrb[16].mxu0 %v2179_v17  ;;  %v2431_v49 = vsel %vm1594_vm11, %v2429_v4, %v2430_v5  ;;  %v2435_v17 = vrot.slane %v2393_v54, 1  ;;  %v1191_v37 = vsel %vm1095_vm12, %v8566_v47, %v1190_v16  ;;  %v2438_v47 = vrot.slane %v2394_v43, 1  ;;  %v8733_v54 = vld [vmem:[#allocation2 + $0x48] sm:$0x1]  ;;  %v8741_v43 = vld [vmem:[#allocation2 + $0x58] sm:$0x1] }
 0x12e   : > { %6862 = vmatprep.mubr.bf16.mxu0 %v2419_v18  ;;  %v2436_v18 = vrot.slane %v8544_v21, 1  ;;  %v2395_v21 = vld [vmem:[#allocation2 + $0x90] sm:$0xfe]  ;;  %v2883_v4 = vshrl.u32 %v2862_v42, 16  ;;  %v2899_v8 = vrot.slane %v2897_v15, 1  ;;  %v7732_v23 = vld [vmem:[%s9539_s1 + $0x208] sm:$0xff]  }
 0x12f   : > { %v2441_v19 = vrot.slane %v2395_v21, 1  ;;  %v2440_v44 = vsel %vm1594_vm11, %v2438_v47, %v2439_v35  ;;  %v8743_v21 = vld [vmem:[#allocation2 + $0x68] sm:$0x1]  ;;  %v2926_v35 = vshll.u32 %v8741_v43, 16 }
 0x130   : > { %v2437_v20 = vsel %vm1594_vm11, %v2435_v17, %v2436_v18  ;;  %v2868_v17 = vld [vmem:[#allocation2 + $0x50] sm:$0xff]  ;;  %v2870_v18 = vld [vmem:[#allocation2 + $0x60] sm:$0xff] }
 0x131   : > { %v2443_v61 = vsel %vm1594_vm11, %v2441_v19, %v2442_v45  ;;  %v2931_v19 = vshrl.u32 %v2870_v18, 16 }
 0x133   : > { %6691 = vmatmul.mubr.bf16.gmra.mrb[8].mxu1 %v1167_v25 }
 0x135   : > { %6863 = vmatmul.mubr.bf16.vlgmr.msra.gmra.mrb[0].mxu0 %v2422_v46  ;;  %v2396_v46 = vld [vmem:[#allocation2 + $0xa0] sm:$0xfe] }
 0x136   : > { %6883 = vmatpush3.bf16.msra.mxu0 %v7715_v11  ;;  %6866 = vmatprep.mubr.bf16.mxu0 %v2425_v27  ;;  %v1176_v11 = vshll.u32 %v8414_v29, 16  ;;  %v2444_v62 = vrot.slane %v2396_v46, 1 }
 0x137   : > { %6884 = vmatprep.subr.bf16.mxu0 %v7716_v12 }
 0x138   : > { %v1178_v14 = vrot.slane %v1176_v11, 1  ;;  %v2446_v27 = vsel %vm1594_vm11, %v2444_v62, %v2445_v22  ;;  %v8735_v11 = vld [vmem:[#allocation2 + $0xb0] sm:$0xff] }
 0x13a   : > { %6885 = vmatpush3.bf16.msra.mxu0 %v7716_v12  ;;  %v1179_v29 = vsel %vm1095_vm12, %v8560_v39, %v1178_v14  ;;  %v1212_v39 = vshll.u32 %v8438_v60, 16  ;;  %v7722_v12 = vld [vmem:[%s9539_s1 + $0x1b8] sm:$0xff]  }
 0x13b   : > { %6886 = vmatprep.subr.bf16.mxu0 %v7717_v63  ;;  %6694 = vmatprep.mubr.bf16.mxu1 %v1179_v29 }
 0x13c   : > { %6695 = vmatmul.mubr.bf16.gmra.mrb[12].mxu1 %v1191_v37  ;;  %v1214_v41 = vrot.slane %v1212_v39, 1  ;;  %v2921_v37 = vshll.u32 %v2868_v17, 16  ;;  %v2919_v39 = vshrl.u32 %v2868_v17, 16  ;;  %v2993_v17 = vshll.u32 %v8735_v11, 16 }
 0x13d   : > { %6867 = vmatmul.mubr.bf16.gmra.mrb[4].mxu0 %v2428_v50  ;;  %6698 = vmatprep.mubr.bf16.mxu1 %v1203_v40  ;;  %v2872_v40 = vld [vmem:[#allocation2 + $0x70] sm:$0xff] }
 0x13e   : > { %6887 = vmatpush3.bf16.msra.mxu0 %v7717_v63  ;;  %6870 = vmatprep.mubr.bf16.mxu0 %v2431_v49  ;;  %v1215_v60 = vsel %vm1095_vm12, %v8597_v28, %v1214_v41  ;;  %v7723_v28 = vld [vmem:[%s9539_s1 + $0x1c0] sm:$0xff]   ;;  %v7730_v63 = vld [vmem:[%s9539_s1 + $0x1f8] sm:$0xff]   ;;  %v2923_v47 = vrot.slane %v2921_v37, 1  ;;  %v2938_v41 = vshll.u32 %v8743_v21, 16  ;;  %v2945_v46 = vshll.u32 %v2872_v40, 16 }
 0x13f   : > { %6888 = vmatprep.subr.bf16.mxu0 %v7718_v9  ;;  %v8728_v49 = vld [vmem:[#allocation2 + $0x38] sm:$0x1] }
 0x140   : > { %v2940_v22 = vrot.slane %v2938_v41, 1  ;;  %v3211_v41 = vld [vmem:[#allocation2 + $0x40] sm:$0xfe] }
 0x142   : > { %6889 = vmatpush3.bf16.msra.mxu0 %v7718_v9  ;;  %v7731_v9 = vld [vmem:[%s9539_s1 + $0x200] sm:$0xff]  }
 0x143   : > { %6890 = vmatprep.subr.bf16.mxu0 %v7719_v3 }
 0x144   : > { %6699 = vmatmul.mubr.bf16.gmra.mrb[16].mxu1 %v1215_v60  ;;  %v2874_v60 = vld [vmem:[#allocation2 + $0x80] sm:$0xff] }
 0x145   : > { %6871 = vmatmul.mubr.bf16.gmra.mrb[8].mxu0 %v2434_v24 }
 0x146   : > { %6891 = vmatpush3.bf16.msra.mxu0 %v7719_v3  ;;  %6874 = vmatprep.mubr.bf16.mxu0 %v2437_v20  ;;  %v2914_v3 = vshll.u32 %v8733_v54, 16 }
 0x147   : > { %6892 = vmatprep.subr.bf16.mxu0 %v7720_v31 }
 0x148   : > { %v2916_v20 = vrot.slane %v2914_v3, 1 }
 0x14a   : > { %6893 = vmatpush3.bf16.msra.mxu0 %v7720_v31  ;;  %v2933_v31 = vshll.u32 %v2870_v18, 16  ;;  %v7744_v18 = vld [vmem:[%s9539_s1 + $0x230] sm:$0xff]  }
 0x14b   : > { %6894 = vmatprep.subr.bf16.mxu0 %v7721_v36 }
 0x14c   : > { %v2935_v45 = vrot.slane %v2933_v31, 1 }
 0x14d   : > { %6875 = vmatmul.mubr.bf16.gmra.mrb[12].mxu0 %v2440_v44  ;;  %v2924_v44 = vor.u32 %v2923_v47, %v2919_v39  ;;  %v7746_v39 = vld [vmem:[%s9539_s1 + $0x238] sm:$0xff]   ;;  %v3209_v47 = vld [vmem:[#allocation2 + $0x20] sm:$0xfe] }
 0x14e   : > { %6878 = vmatprep.mubr.bf16.mxu0 %v2443_v61  ;;  %6895 = vmatpush3.bf16.msra.mxu0 %v7721_v36  ;;  %v2928_v61 = vrot.slane %v2926_v35, 1  ;;  %v2936_v62 = vor.u32 %v2935_v45, %v2931_v19 }
 0x14f   : > { %6896 = vmatprep.subr.bf16.mxu0 %v7722_v12 }
 0x152   : > { %6897 = vmatpush3.bf16.msra.mxu0 %v7722_v12  ;;  %v7735_v12 = vld [vmem:[%s9539_s1 + $0x210] sm:$0xff]  }
 0x153   : > { %6918 = vmatprep.subr.bf16.mxu0 %v7723_v28 }
 0x155   : > { %6879 = vmatmul.mubr.bf16.gmra.mrb[16].mxu0 %v2446_v27  ;;  %v2957_v27 = vshll.u32 %v2874_v60, 16 }
 0x156   : > { %6898 = vmatprep.mubr.bf16.mxu0 %v7747_v51  ;;  %v8757_v51 = vld [vmem:[#allocation2 + $0x88] sm:$0x1] }
 0x15d   : > { %6899 = vmatmul.mubr.bf16.vlgmr.msra.gmra.mrb[0].mxu0 %v8345_v48  ;;  %v7727_v48 = vld [vmem:[%s9539_s1 + $0x1e0] sm:$0xff]  }
 0x15e   : > { %6919 = vmatpush3.bf16.msra.mxu0 %v7723_v28  ;;  %6902 = vmatprep.mubr.bf16.mxu0 %v7748_v34  ;;  %v8755_v28 = vld [vmem:[#allocation2 + $0x78] sm:$0x1]  ;;  %v2943_v34 = vshrl.u32 %v2872_v40, 16 }
 0x15f   : > { %6920 = vmatprep.subr.bf16.mxu0 %v7724_v55 }
 0x162   : > { %6921 = vmatpush3.bf16.msra.mxu0 %v7724_v55  ;;  %v2929_v55 = vsel %vm1095_vm12, %v2924_v44, %v2928_v61  ;;  %v3245_v44 = vrot.slane %v3211_v41, 1  ;;  %v3246_v61 = vrot.slane %v8733_v54, 1  ;;  %v3215_v54 = vld [vmem:[#allocation2 + $0x80] sm:$0xfe] }
 0x163   : > { %6922 = vmatprep.subr.bf16.mxu0 %v7725_v30 }
 0x165   : > { %6903 = vmatmul.mubr.bf16.gmra.mrb[4].mxu0 %v8357_v52  ;;  %v7729_v52 = vld [vmem:[%s9539_s1 + $0x1f0] sm:$0xff]  }
 0x166   : > { %6923 = vmatpush3.bf16.msra.mxu0 %v7725_v30  ;;  %6906 = vmatprep.mubr.bf16.mxu0 %v8359_v53  ;;  %v2885_v53 = vshll.u32 %v2862_v42, 16  ;;  %v2947_v30 = vrot.slane %v2945_v46, 1  ;;  %v2955_v42 = vshrl.u32 %v2874_v60, 16  ;;  %v3243_v60 = vrot.slane %v8728_v49, 1 }
 0x167   : > { %6924 = vmatprep.subr.bf16.mxu0 %v7726_v2 }
 0x168   : > { %v2887_v5 = vrot.slane %v2885_v53, 1  ;;  %v2962_v53 = vshll.u32 %v8757_v51, 16 }
 0x16a   : > { %6925 = vmatpush3.bf16.msra.mxu0 %v7726_v2  ;;  %v2888_v25 = vor.u32 %v2887_v5, %v2883_v4  ;;  %v2950_v2 = vshll.u32 %v8755_v28, 16  ;;  %v2948_v4 = vor.u32 %v2947_v30, %v2943_v34  ;;  %v2964_v15 = vrot.slane %v2962_v53, 1 }
 0x16b   : > { %6926 = vmatprep.subr.bf16.mxu0 %v7727_v48  ;;  %v3252_v34 = vrot.slane %v8743_v21, 1  ;;  %v3217_v21 = vld [vmem:[#allocation2 + $0xa0] sm:$0xfe] }
 0x16c   : > { %v2952_v5 = vrot.slane %v2950_v2, 1  ;;  %v3214_v2 = vld [vmem:[#allocation2 + $0x70] sm:$0xfe] }
 0x16d   : > { %6907 = vmatmul.mubr.bf16.gmra.mrb[8].mxu0 %v8369_v56  ;;  %v2890_v56 = vshll.u32 %v8720_v58, 16 }
 0x16e   : > { %6927 = vmatpush3.bf16.msra.mxu0 %v7727_v48  ;;  %6910 = vmatprep.mubr.bf16.mxu0 %v8371_v57  ;;  %v2866_v57 = vld [vmem:[#allocation2 + $0x40] sm:$0xff]  ;;  %v2941_v48 = vsel %vm1095_vm12, %v2936_v62, %v2940_v22 }
 0x16f   : > { %6928 = vmatprep.subr.bf16.mxu0 %v7728_v38  ;;  %v2892_v50 = vrot.slane %v2890_v56, 1  ;;  %v2909_v10 = vshll.u32 %v2866_v57, 16  ;;  %v2907_v59 = vshrl.u32 %v2866_v57, 16  ;;  %v3213_v62 = vld [vmem:[#allocation2 + $0x60] sm:$0xfe] }
 0x171   : > { %v2893_v13 = vsel %vm1095_vm12, %v2888_v25, %v2892_v50  ;;  %v2911_v14 = vrot.slane %v2909_v10, 1  ;;  %v8769_v25 = vld [vmem:[#allocation2 + $0x98] sm:$0x1]  ;;  %v8771_v50 = vld [vmem:[#allocation2 + $0xa8] sm:$0x1] }
 0x172   : > { %6929 = vmatpush3.bf16.msra.mxu0 %v7728_v38  ;;  %v7737_v38 = vld [vmem:[%s9539_s1 + $0x218] sm:$0xff]  }
 0x173   : > { %6930 = vmatprep.subr.bf16.mxu0 %v7729_v52  ;;  %v2912_v24 = vor.u32 %v2911_v14, %v2907_v59  ;;  %v2986_v59 = vshll.u32 %v8771_v50, 16 }
 0x175   : > { %6911 = vmatmul.mubr.bf16.gmra.mrb[12].mxu0 %v8384_v1  ;;  %v2895_v1 = vshrl.u32 %v2864_v7, 16  ;;  %v2917_v36 = vsel %vm1095_vm12, %v2912_v24, %v2916_v20  ;;  %v7739_v7 = vld [vmem:[%s9539_s1 + $0x220] sm:$0xff]   ;;  %v2991_v24 = vshrl.u32 %v8735_v11, 16  ;;  %v2995_v20 = vrot.slane %v2993_v17, 1 }
 0x176   : > { %6914 = vmatprep.mubr.bf16.mxu0 %v8495_v33  ;;  %6931 = vmatpush3.bf16.msra.mxu0 %v7729_v52  ;;  %v2902_v33 = vshll.u32 %v8728_v49, 16  ;;  %v2959_v52 = vrot.slane %v2957_v27, 1  ;;  %v3249_v27 = vrot.slane %v8741_v43, 1 }
 0x177   : > { %6932 = vmatprep.subr.bf16.mxu0 %v7730_v63  ;;  %v2900_v16 = vor.u32 %v2899_v8, %v2895_v1  ;;  %v2974_v8 = vshll.u32 %v8769_v25, 16  ;;  %v2996_v35 = vor.u32 %v2995_v20, %v2991_v24 }
 0x178   : > { %v2904_v29 = vrot.slane %v2902_v33, 1  ;;  %v2960_v57 = vor.u32 %v2959_v52, %v2955_v42  ;;  %v3257_v42 = vrot.slane %v3215_v54, 1  ;;  %v3258_v52 = vrot.slane %v8757_v51, 1 }
 0x179   : > { %v2976_v3 = vrot.slane %v2974_v8, 1 }
 0x17a   : > { %6933 = vmatpush3.bf16.msra.mxu0 %v7730_v63  ;;  %v2905_v32 = vsel %vm1095_vm12, %v2900_v16, %v2904_v29  ;;  %v2876_v63 = vld [vmem:[#allocation2 + $0x90] sm:$0xff]  ;;  %v2965_v33 = vsel %vm1095_vm12, %v2960_v57, %v2964_v15  ;;  %v2988_v16 = vrot.slane %v2986_v59, 1  ;;  %v8784_v29 = vld [vmem:[#allocation2 + $0xb8] sm:$0x1]  ;;  %v3259_v43 = vsel %vm1594_vm11, %v3257_v42, %v3258_v52 }
 0x17b   : > { %6954 = vmatprep.subr.bf16.mxu0 %v7731_v9  ;;  %v2969_v56 = vshll.u32 %v2876_v63, 16  ;;  %v2967_v10 = vshrl.u32 %v2876_v63, 16  ;;  %v2998_v31 = vshll.u32 %v8784_v29, 16  ;;  %v3216_v63 = vld [vmem:[#allocation2 + $0x90] sm:$0xfe] }
 0x17c   : > { %v3218_v15 = vld [vmem:[#allocation2 + $0xb0] sm:$0xfe] }
 0x17d   : > { %6915 = vmatmul.mubr.bf16.gmra.mrb[16].mxu0 %v8735_v11  ;;  %v2971_v1 = vrot.slane %v2969_v56, 1  ;;  %v3240_v11 = vrot.slane %v8720_v58, 1  ;;  %v3212_v58 = vld [vmem:[#allocation2 + $0x50] sm:$0xfe]  ;;  %v3263_v56 = vrot.slane %v3217_v21, 1  ;;  %v3266_v51 = vrot.slane %v3218_v15, 1 }
 0x17e   : > { %6934 = vmatprep.mubr.bf16.mxu0 %v2893_v13  ;;  %v7741_v13 = vld [vmem:[%s9539_s1 + $0x228] sm:$0xff]   ;;  %v3248_v22 = vrot.slane %v3212_v58, 1 }
 0x17f   : > { %v2972_v14 = vor.u32 %v2971_v1, %v2967_v10 }
 0x180   : > { %v3250_v30 = vsel %vm1594_vm11, %v3248_v22, %v3249_v27 }
 0x181   : > { %v2977_v37 = vsel %vm1095_vm12, %v2972_v14, %v2976_v3 }
 0x185   : > { %6935 = vmatmul.mubr.bf16.vlgmr.msra.gmra.mrb[0].mxu0 %v2905_v32  ;;  %v2989_v32 = vsel %vm1095_vm12, %v8619_v6, %v2988_v16  ;;  %v3210_v6 = vld [vmem:[#allocation2 + $0x30] sm:$0xfe] }
 0x186   : > { %6955 = vmatpush3.bf16.msra.mxu0 %v7731_v9  ;;  %6938 = vmatprep.mubr.bf16.mxu0 %v2917_v36  ;;  %v2953_v9 = vsel %vm1095_vm12, %v2948_v4, %v2952_v5  ;;  %v3239_v36 = vrot.slane %v3209_v47, 1  ;;  %v3242_v40 = vrot.slane %v3210_v6, 1  ;;  %v3260_v4 = vrot.slane %v3216_v63, 1 }
 0x187   : > { %6956 = vmatprep.subr.bf16.mxu0 %v7732_v23  ;;  %v3261_v5 = vrot.slane %v8769_v25, 1 }
 0x188   : > { %v3241_v45 = vsel %vm1594_vm11, %v3239_v36, %v3240_v11  ;;  %v3244_v46 = vsel %vm1594_vm11, %v3242_v40, %v3243_v60 }
 0x189   : > { %v3262_v57 = vsel %vm1594_vm11, %v3260_v4, %v3261_v5 }
 0x18a   : > { %6957 = vmatpush3.bf16.msra.mxu0 %v7732_v23  ;;  %v3000_v23 = vrot.slane %v2998_v31, 1 }
 0x18b   : > { %6958 = vmatprep.subr.bf16.mxu0 %v7735_v12 }
 0x18c   : > { %v3001_v19 = vsel %vm1095_vm12, %v2996_v35, %v3000_v23  ;;  %v8842_v23 = vld [vmem:[%s9540_s2] ss:$0 sm:$0xff] }
 0x18d   : > { %6939 = vmatmul.mubr.bf16.gmra.mrb[4].mxu0 %v2929_v55  ;;  %v3251_v55 = vrot.slane %v3213_v62, 1 }
 0x18e   : > { %6959 = vmatpush3.bf16.msra.mxu0 %v7735_v12  ;;  %6942 = vmatprep.mubr.bf16.mxu0 %v2941_v48  ;;  %v3247_v12 = vsel %vm1594_vm11, %v3245_v44, %v3246_v61  ;;  %v3254_v48 = vrot.slane %v3214_v2, 1 }
 0x18f   : > { %6960 = vmatprep.subr.bf16.mxu0 %v7737_v38  ;;  %v3253_v49 = vsel %vm1594_vm11, %v3251_v55, %v3252_v34 }
 0x192   : > { %6961 = vmatpush3.bf16.msra.mxu0 %v7737_v38  ;;  %v3255_v38 = vrot.slane %v8755_v28, 1 }
 0x193   : > { %6962 = vmatprep.subr.bf16.mxu0 %v7739_v7 }
 0x194   : > { %v3256_v53 = vsel %vm1594_vm11, %v3254_v48, %v3255_v38 }
 0x195   : > { %6943 = vmatmul.mubr.bf16.gmra.mrb[8].mxu0 %v2953_v9  ;;  %v3267_v9 = vrot.slane %v8784_v29, 1 }
 0x196   : > { %6963 = vmatpush3.bf16.msra.mxu0 %v7739_v7  ;;  %6946 = vmatprep.mubr.bf16.mxu0 %v2965_v33  ;;  %v3264_v7 = vrot.slane %v8771_v50, 1 }
 0x197   : > { %6964 = vmatprep.subr.bf16.mxu0 %v7741_v13  ;;  %v3268_v10 = vsel %vm1594_vm11, %v3266_v51, %v3267_v9 }
 0x198   : > { %v3265_v28 = vsel %vm1594_vm11, %v3263_v56, %v3264_v7  ;;  %v3628_v56 = vld [vmem:[#allocation3 + $0x8] sm:$0x1] }
 0x19a   : > { %6965 = vmatpush3.bf16.msra.mxu0 %v7741_v13 }
 0x19b   : > { %6966 = vmatprep.subr.bf16.mxu0 %v7744_v18 }
 0x19d   : > { %6947 = vmatmul.mubr.bf16.gmra.mrb[12].mxu0 %v2977_v37 }
 0x19e   : > { %6950 = vmatprep.mubr.bf16.mxu0 %v2989_v32  ;;  %6967 = vmatpush3.bf16.msra.mxu0 %v7744_v18 }
 0x19f   : > { %6968 = vmatprep.subr.bf16.mxu0 %v7746_v39 }
 0x1a2   : > { %6969 = vmatpush3.bf16.msra.mxu0 %v7746_v39 }
 0x1a5   : > { %6951 = vmatmul.mubr.bf16.gmra.mrb[16].mxu0 %v3001_v19 }
 0x1a6   : > { %6970 = vmatprep.mubr.bf16.mxu0 %v3241_v45 }
 0x1ad   : > { %6971 = vmatmul.mubr.bf16.vlgmr.msra.gmra.mrb[0].mxu0 %v3244_v46 }
 0x1ae   : > { %6974 = vmatprep.mubr.bf16.mxu0 %v3247_v12 }
 0x1b5   : > { %6975 = vmatmul.mubr.bf16.gmra.mrb[4].mxu0 %v3250_v30 }
 0x1b6   : > { %6978 = vmatprep.mubr.bf16.mxu0 %v3253_v49 }
 0x1bd   : > { %6979 = vmatmul.mubr.bf16.gmra.mrb[8].mxu0 %v3256_v53  ;;  %v3634_v53 = vld [vmem:[#allocation3 + $0x18] sm:$0x1] }
 0x1be   : > { %6982 = vmatprep.mubr.bf16.mxu0 %v3259_v43 }
 0x1c5   : > { %6983 = vmatmul.mubr.bf16.gmra.mrb[12].mxu0 %v3262_v57 }
 0x1c6   : > { %6986 = vmatprep.mubr.bf16.mxu0 %v3265_v28  ;;  %v3631_v28 = vld [vmem:[#allocation3 + $0x10] sm:$0xff] }
 0x1cd   : > { %6987 = vmatmul.mubr.bf16.gmra.mrb[16].mxu0 %v3268_v10 }
 0x1f5   : > { %v6684_v1 = vpop.f32.mrb[0].mxu1 }
 0x1f6   : > { %v1324_v8 = vpop.f32.mrb[1].mxu1 }
 0x1f7   : > { %v6685_v33 = vpop.f32.mrb[2].mxu1 }
 0x1f8   : > { %v1327_v25 = vpop.f32.mrb[3].mxu1 }
 0x1fe   : > { %v6688_v13 = vpop.f32.mrb[4].mxu1 }
 0x1ff   : > { %v1340_v59 = vpop.f32.mrb[5].mxu1 }
 0x200   : > { %v6689_v50 = vpop.f32.mrb[6].mxu1 }
 0x201   : > { %v1343_v14 = vpop.f32.mrb[7].mxu1 }
 0x206   : > { %v8815_v3 = vpop.f32.mrb[8].mxu1 }
 0x207   : > { %v8817_v17 = vpop.f32.mrb[9].mxu1 }
 0x208   : > { %v8819_v18 = vpop.f32.mrb[10].mxu1 }
 0x209   : > { %v8821_v16 = vpop.f32.mrb[11].mxu1 }
 0x20f   : > { %v8823_v29 = vpop.f32.mrb[12].mxu1 }
 0x210   : > { %v8825_v37 = vpop.f32.mrb[13].mxu1 }
 0x211   : > { %v8827_v24 = vpop.f32.mrb[14].mxu1 }
 0x212   : > { %v8829_v20 = vpop.f32.mrb[15].mxu1 }
 0x217   : > { %v8831_v31 = vpop.f32.mrb[16].mxu1 }
 0x218   : > { %v8833_v32 = vpop.f32.mrb[17].mxu1 }
 0x219   : > { %v8835_v39 = vpop.f32.mrb[18].mxu1 }
 0x21a   : > { %v8837_v47 = vpop.f32.mrb[19].mxu1 }
 0x280   : > { %v6972_v35 = vpop.f32.mrb[0].mxu0 }
 0x281   : > { %v7278_v36 = vadd.f32 %v6972_v35, %v6684_v1  ;;  %v3377_v11 = vpop.f32.mrb[1].mxu0 }
 0x282   : > { %v7279_v19 = vadd.f32 %v3377_v11, %v1324_v8  ;;  %v6973_v45 = vpop.f32.mrb[2].mxu0  ;;  %v3625_v8 = vld [vmem:[#allocation3] sm:$0xff] }
 0x283   : > { %v3485_v6 = vadd.f32 %v7278_v36, %v8842_v23  ;;  %v7280_v41 = vadd.f32 %v6973_v45, %v6685_v33  ;;  %v3380_v40 = vpop.f32.mrb[3].mxu0 }
 0x284   : > { %v3483_v60 = vadd.f32 %v7279_v19, %v8842_v23  ;;  %v7281_v44 = vadd.f32 %v3380_v40, %v1327_v25 }
 0x285   : > { %v3486_v61 = vadd.f32 %v7280_v41, %v8842_v23  ;;  %v3505_v12 = vmax.f32 %v3485_v6, 0.0 }
 0x286   : > { %v3484_v46 = vadd.f32 %v7281_v44, %v8842_v23  ;;  %v3503_v62 = vmax.f32 %v3483_v60, 0.0 }
 0x287   : > { %v3506_v58 = vmax.f32 %v3486_v61, 0.0 }
 0x288   : > { %v3504_v22 = vmax.f32 %v3484_v46, 0.0  ;;  %v6976_v27 = vpop.f32.mrb[4].mxu0 }
 0x289   : > { %v3524_v55 = vpack.c.bf16 %v3506_v58, %v3505_v12  ;;  %v7282_v34 = vadd.f32 %v6976_v27, %v6688_v13  ;;  %v3393_v30 = vpop.f32.mrb[5].mxu0  ;;  %v3646_v58 = vld [vmem:[#allocation3 + $0x38] sm:$0x1] }
 0x28a   : > { %v3523_v49 = vpack.c.bf16 %v3504_v22, %v3503_v62  ;;  %v7283_v2 = vadd.f32 %v3393_v30, %v1340_v59  ;;  %v6977_v54 = vpop.f32.mrb[6].mxu0 }
 0x28b   : > { %v3541_v48 = vshrl.u32 %v3524_v55, 16  ;;  %v3489_v38 = vadd.f32 %v7282_v34, %v8842_v23  ;;  %v7284_v42 = vadd.f32 %v6977_v54, %v6689_v50  ;;  %v3396_v52 = vpop.f32.mrb[7].mxu0  ;;  %v3544_v5 = vshll.u32 %v3524_v55, 16  ;;  %v3640_v34 = vld [vmem:[#allocation3 + $0x28] sm:$0x1] }
 0x28c   : > { %v3534_v43 = vshrl.u32 %v3523_v49, 16  ;;  %v3487_v63 = vadd.f32 %v7283_v2, %v8842_v23  ;;  %v7285_v21 = vadd.f32 %v3396_v52, %v1343_v14  ;;  %v3537_v51 = vshll.u32 %v3523_v49, 16  ;;  %v3637_v52 = vld [vmem:[#allocation3 + $0x20] sm:$0xff] }
 0x28d   : > { %v3543_v4 = vrot.slane %v3541_v48, 7  ;;  %v3490_v7 = vadd.f32 %v7284_v42, %v8842_v23  ;;  %v3509_v33 = vmax.f32 %v3489_v38, 0.0 }
 0x28e   : > { %v3536_v15 = vrot.slane %v3534_v43, 7  ;;  %v3488_v9 = vadd.f32 %v7285_v21, %v8842_v23  ;;  %v3507_v50 = vmax.f32 %v3487_v63, 0.0 }
 0x28f   : > { %v3546_v10 = vor.u32 %v3544_v5, %v3543_v4  ;;  %v3635_v1 = vsel %vm8033_vm2, %v3543_v4, %v3634_v53  ;;  %v3510_v25 = vmax.f32 %v3490_v7, 0.0 }
 0x290   : > { %3636 = vst [vmem:[#allocation3 + $0x18] sm:$0x1] %v3635_v1  ;;  %v3539_v13 = vor.u32 %v3537_v51, %v3536_v15  ;;  %v3629_v59 = vsel %vm8033_vm2, %v3536_v15, %v3628_v56  ;;  %v3508_v14 = vmax.f32 %v3488_v9, 0.0  ;;  %v6980_v35 = vpop.f32.mrb[8].mxu0 }
 0x291   : > { %v3632_v36 = vsel %vm8852_vm14, %v3546_v10, %v3631_v28  ;;  %3630 = vst [vmem:[#allocation3 + $0x8] sm:$0x1] %v3629_v59  ;;  %v3526_v11 = vpack.c.bf16 %v3510_v25, %v3509_v33  ;;  %v7286_v19 = vadd.f32 %v6980_v35, %v8815_v3  ;;  %v3409_v45 = vpop.f32.mrb[9].mxu0 }
 0x292   : > { %3633 = vst [vmem:[#allocation3 + $0x10] sm:$0xff] %v3632_v36  ;;  %v3626_v6 = vsel %vm8852_vm14, %v3539_v13, %v3625_v8  ;;  %v3525_v41 = vpack.c.bf16 %v3508_v14, %v3507_v50  ;;  %v7287_v40 = vadd.f32 %v3409_v45, %v8817_v17  ;;  %v6981_v60 = vpop.f32.mrb[10].mxu0  ;;  %v3643_v17 = vld [vmem:[#allocation3 + $0x30] sm:$0xff]  ;;  %v3658_v36 = vld [vmem:[#allocation3 + $0x58] sm:$0x1] }
 0x293   : > { %3627 = vst [vmem:[#allocation3] sm:$0xff] %v3626_v6  ;;  %v3555_v44 = vshrl.u32 %v3526_v11, 16  ;;  %v3493_v61 = vadd.f32 %v7286_v19, %v8842_v23  ;;  %v7288_v46 = vadd.f32 %v6981_v60, %v8819_v18  ;;  %v3412_v12 = vpop.f32.mrb[11].mxu0  ;;  %v3558_v55 = vshll.u32 %v3526_v11, 16  ;;  %v3655_v60 = vld [vmem:[#allocation3 + $0x50] sm:$0xff] }
 0x294   : > { %v3548_v62 = vshrl.u32 %v3525_v41, 16  ;;  %v3491_v3 = vadd.f32 %v7287_v40, %v8842_v23  ;;  %v7289_v22 = vadd.f32 %v3412_v12, %v8821_v16  ;;  %v3551_v2 = vshll.u32 %v3525_v41, 16 }
 0x295   : > { %v3557_v27 = vrot.slane %v3555_v44, 7  ;;  %v3494_v30 = vadd.f32 %v7288_v46, %v8842_v23  ;;  %v3513_v54 = vmax.f32 %v3493_v61, 0.0 }
 0x296   : > { %v3550_v49 = vrot.slane %v3548_v62, 7  ;;  %v3492_v48 = vadd.f32 %v7289_v22, %v8842_v23  ;;  %v3511_v53 = vmax.f32 %v3491_v3, 0.0  ;;  %v3649_v22 = vld [vmem:[#allocation3 + $0x40] sm:$0xff] }
 0x297   : > { %v3718_v38 = vld [vmem:[#allocation3 + $0x18] sm:$0x1]  ;;  %v3560_v18 = vor.u32 %v3558_v55, %v3557_v27  ;;  %v3647_v42 = vsel %vm8033_vm2, %v3557_v27, %v3646_v58  ;;  %v3514_v43 = vmax.f32 %v3494_v30, 0.0 }
 0x298   : > { %v3719_v16 = vsel %vm8077_vm4, 0, %v3718_v38  ;;  %v3715_v63 = vld [vmem:[#allocation3 + $0x8] sm:$0x1]  ;;  %3648 = vst [vmem:[#allocation3 + $0x38] sm:$0x1] %v3647_v42  ;;  %v3553_v21 = vor.u32 %v3551_v2, %v3550_v49  ;;  %v3641_v4 = vsel %vm8033_vm2, %v3550_v49, %v3640_v34  ;;  %v3512_v5 = vmax.f32 %v3492_v48, 0.0 }
 0x299   : > { %v6984_v56 = vpop.f32.mrb[12].mxu0  ;;  %v3688_v7 = vld [vmem:[#allocation3 + $0x10] sm:$0x1]  ;;  %3720 = vst [vmem:[#allocation3 + $0x18] sm:$0x1] %v3719_v16  ;;  %v3716_v28 = vsel %vm8077_vm4, 0, %v3715_v63  ;;  %v3644_v15 = vsel %vm8852_vm14, %v3560_v18, %v3643_v17  ;;  %v3528_v51 = vpack.c.bf16 %v3514_v43, %v3513_v54 }
 0x29a   : > { %3642 = vst [vmem:[#allocation3 + $0x28] sm:$0x1] %v3641_v4  ;;  %v7290_v9 = vadd.f32 %v6984_v56, %v8823_v29  ;;  %v3425_v10 = vpop.f32.mrb[13].mxu0  ;;  %v3689_v1 = vsel %vm8033_vm2, 0, %v3688_v7  ;;  %v3685_v8 = vld [vmem:[#allocation3] sm:$0x1]  ;;  %v3638_v33 = vsel %vm8852_vm14, %v3553_v21, %v3637_v52  ;;  %v3527_v25 = vpack.c.bf16 %v3512_v5, %v3511_v53 }
 0x29b   : > { %3717 = vst [vmem:[#allocation3 + $0x8] sm:$0x1] %v3716_v28  ;;  %3645 = vst [vmem:[#allocation3 + $0x30] sm:$0xff] %v3644_v15  ;;  %v7291_v13 = vadd.f32 %v3425_v10, %v8825_v37  ;;  %v6985_v59 = vpop.f32.mrb[14].mxu0  ;;  %v3686_v50 = vsel %vm8033_vm2, 0, %v3685_v8  ;;  %v3569_v29 = vshrl.u32 %v3528_v51, 16 }
 0x29c   : > { %3690 = vst [vmem:[#allocation3 + $0x10] sm:$0x1] %v3689_v1  ;;  %3639 = vst [vmem:[#allocation3 + $0x20] sm:$0xff] %v3638_v33  ;;  %v3497_v14 = vadd.f32 %v7290_v9, %v8842_v23  ;;  %v3428_v35 = vpop.f32.mrb[15].mxu0  ;;  %v3562_v11 = vshrl.u32 %v3527_v25, 16  ;;  %v7292_v45 = vadd.f32 %v6985_v59, %v8827_v24  ;;  %v3572_v41 = vshll.u32 %v3528_v51, 16 }
 0x29d   : > { %3687 = vst [vmem:[#allocation3] sm:$0x1] %v3686_v50  ;;  %v3495_v19 = vadd.f32 %v7291_v13, %v8842_v23  ;;  %v3571_v6 = vrot.slane %v3569_v29, 7  ;;  %v3652_v37 = vld [vmem:[#allocation3 + $0x48] sm:$0x1]  ;;  %v7293_v40 = vadd.f32 %v3428_v35, %v8829_v20  ;;  %v3565_v61 = vshll.u32 %v3527_v25, 16 }
 0x29e   : > { %v3564_v44 = vrot.slane %v3562_v11, 7  ;;  %v3517_v46 = vmax.f32 %v3497_v14, 0.0  ;;  %v3498_v12 = vadd.f32 %v7292_v45, %v8842_v23  ;;  %v3670_v9 = vld [vmem:[#allocation3 + $0x78] sm:$0x1]  ;;  %v3667_v33 = vld [vmem:[#allocation3 + $0x70] sm:$0xff]  ;;  %v3661_v45 = vld [vmem:[#allocation3 + $0x60] sm:$0xff] }
 0x29f   : > { %v3724_v58 = vld [vmem:[#allocation3 + $0x38] sm:$0x1]  ;;  %v3574_v62 = vor.u32 %v3572_v41, %v3571_v6  ;;  %v3659_v3 = vsel %vm8033_vm2, %v3571_v6, %v3658_v36  ;;  %v3515_v27 = vmax.f32 %v3495_v19, 0.0  ;;  %v3496_v24 = vadd.f32 %v7293_v40, %v8842_v23  ;;  %v3664_v13 = vld [vmem:[#allocation3 + $0x68] sm:$0x1] }
 0x2a0   : > { %v3725_v55 = vsel %vm8077_vm4, 0, %v3724_v58  ;;  %3660 = vst [vmem:[#allocation3 + $0x58] sm:$0x1] %v3659_v3  ;;  %v3567_v20 = vor.u32 %v3565_v61, %v3564_v44  ;;  %v3653_v30 = vsel %vm8033_vm2, %v3564_v44, %v3652_v37  ;;  %v3518_v17 = vmax.f32 %v3498_v12, 0.0  ;;  %v6988_v49 = vpop.f32.mrb[16].mxu0 }
 0x2a1   : > { %v3721_v34 = vld [vmem:[#allocation3 + $0x28] sm:$0x1]  ;;  %3726 = vst [vmem:[#allocation3 + $0x38] sm:$0x1] %v3725_v55  ;;  %v3656_v48 = vsel %vm8852_vm14, %v3574_v62, %v3655_v60  ;;  %3654 = vst [vmem:[#allocation3 + $0x48] sm:$0x1] %v3653_v30  ;;  %v7294_v18 = vadd.f32 %v6988_v49, %v8831_v31 }
 0x2a2   : > { %v3694_v2 = vld [vmem:[#allocation3 + $0x30] sm:$0x1]  ;;  %v3722_v54 = vsel %vm8077_vm4, 0, %v3721_v34  ;;  %v3516_v38 = vmax.f32 %v3496_v24, 0.0  ;;  %v3441_v42 = vpop.f32.mrb[17].mxu0  ;;  %3657 = vst [vmem:[#allocation3 + $0x50] sm:$0xff] %v3656_v48  ;;  %v3650_v43 = vsel %vm8852_vm14, %v3567_v20, %v3649_v22  ;;  %v3530_v16 = vpack.c.bf16 %v3518_v17, %v3517_v46 }
 0x2a3   : > { %v3695_v52 = vsel %vm8033_vm2, 0, %v3694_v2  ;;  %v3691_v53 = vld [vmem:[#allocation3 + $0x20] sm:$0x1]  ;;  %3723 = vst [vmem:[#allocation3 + $0x28] sm:$0x1] %v3722_v54  ;;  %v7295_v63 = vadd.f32 %v3441_v42, %v8833_v32  ;;  %v6989_v21 = vpop.f32.mrb[18].mxu0  ;;  %v3501_v5 = vadd.f32 %v7294_v18, %v8842_v23 }
 0x2a4   : > { %3696 = vst [vmem:[#allocation3 + $0x30] sm:$0x1] %v3695_v52  ;;  %v3692_v4 = vsel %vm8033_vm2, 0, %v3691_v53  ;;  %3651 = vst [vmem:[#allocation3 + $0x40] sm:$0xff] %v3650_v43  ;;  %v3529_v31 = vpack.c.bf16 %v3516_v38, %v3515_v27  ;;  %v7296_v56 = vadd.f32 %v6989_v21, %v8835_v39  ;;  %v3444_v7 = vpop.f32.mrb[19].mxu0  ;;  %v3583_v28 = vshrl.u32 %v3530_v16, 16 }
 0x2a5   : > { %3693 = vst [vmem:[#allocation3 + $0x20] sm:$0x1] %v3692_v4  ;;  %v3499_v15 = vadd.f32 %v7295_v63, %v8842_v23  ;;  %v7297_v51 = vadd.f32 %v3444_v7, %v8837_v47  ;;  %v3586_v8 = vshll.u32 %v3530_v16, 16  ;;  %v3521_v29 = vmax.f32 %v3501_v5, 0.0  ;;  %v3682_v22 = vld [vmem:[#allocation3 + $0x98] sm:$0x1] }
 0x2a6   : > { %v3576_v32 = vshrl.u32 %v3529_v31, 16  ;;  %v3502_v10 = vadd.f32 %v7296_v56, %v8842_v23  ;;  %v3585_v1 = vrot.slane %v3583_v28, 7  ;;  %v3579_v25 = vshll.u32 %v3529_v31, 16  ;;  %v3676_v34 = vld [vmem:[#allocation3 + $0x88] sm:$0x1]  ;;  %v3679_v20 = vld [vmem:[#allocation3 + $0x90] sm:$0xff] }
 0x2a7   : > { %v3500_v59 = vadd.f32 %v7297_v51, %v8842_v23  ;;  %v3730_v50 = vld [vmem:[#allocation3 + $0x58] sm:$0x1]  ;;  %v3519_v14 = vmax.f32 %v3499_v15, 0.0  ;;  %v3673_v54 = vld [vmem:[#allocation3 + $0x80] sm:$0xff] }
 0x2a8   : > { %v3578_v39 = vrot.slane %v3576_v32, 7  ;;  %v3522_v35 = vmax.f32 %v3502_v10, 0.0  ;;  %v3731_v36 = vsel %vm8077_vm4, 0, %v3730_v50  ;;  %v3727_v47 = vld [vmem:[#allocation3 + $0x48] sm:$0x1]  ;;  %v3588_v11 = vor.u32 %v3586_v8, %v3585_v1 }
 0x2a9   : > { %v3671_v19 = vsel %vm8033_vm2, %v3585_v1, %v3670_v9  ;;  %v3520_v6 = vmax.f32 %v3500_v59, 0.0  ;;  %v3700_v41 = vld [vmem:[#allocation3 + $0x50] sm:$0x1]  ;;  %3732 = vst [vmem:[#allocation3 + $0x58] sm:$0x1] %v3731_v36  ;;  %v3728_v23 = vsel %vm8077_vm4, 0, %v3727_v47 }
 0x2aa   : > { %3672 = vst [vmem:[#allocation3 + $0x78] sm:$0x1] %v3671_v19  ;;  %v3581_v37 = vor.u32 %v3579_v25, %v3578_v39  ;;  %v3665_v40 = vsel %vm8033_vm2, %v3578_v39, %v3664_v13  ;;  %v3532_v60 = vpack.c.bf16 %v3522_v35, %v3521_v29  ;;  %v3701_v44 = vsel %vm8033_vm2, 0, %v3700_v41  ;;  %3729 = vst [vmem:[#allocation3 + $0x48] sm:$0x1] %v3728_v23 }
 0x2ab   : > { %v3697_v61 = vld [vmem:[#allocation3 + $0x40] sm:$0x1]  ;;  %v3668_v46 = vsel %vm8852_vm14, %v3588_v11, %v3667_v33  ;;  %3666 = vst [vmem:[#allocation3 + $0x68] sm:$0x1] %v3665_v40  ;;  %v3531_v12 = vpack.c.bf16 %v3520_v6, %v3519_v14  ;;  %3702 = vst [vmem:[#allocation3 + $0x50] sm:$0x1] %v3701_v44 }
 0x2ac   : > { %v3698_v58 = vsel %vm8033_vm2, 0, %v3697_v61  ;;  %3669 = vst [vmem:[#allocation3 + $0x70] sm:$0xff] %v3668_v46  ;;  %v3662_v62 = vsel %vm8852_vm14, %v3581_v37, %v3661_v45  ;;  %v3597_v3 = vshrl.u32 %v3532_v60, 16  ;;  %v3600_v55 = vshll.u32 %v3532_v60, 16 }
 0x2ad   : > { %3699 = vst [vmem:[#allocation3 + $0x40] sm:$0x1] %v3698_v58  ;;  %3663 = vst [vmem:[#allocation3 + $0x60] sm:$0xff] %v3662_v62  ;;  %v3590_v27 = vshrl.u32 %v3531_v12, 16  ;;  %v3593_v17 = vshll.u32 %v3531_v12, 16  ;;  %v7919_v32 = vmov (!%p6176_p2), 0  }
 0x2ae   : > { %v3599_v24 = vrot.slane %v3597_v3, 7  ;;  %3748 = vst [vmem:[#allocation3] sm:$0xff] (!%p6176_p2), %v7919_v32  ;;  %3749 = vst [vmem:[#allocation3 + $0x8] sm:$0xff] (!%p6176_p2), %v7919_v32 }
 0x2af   : > { %v3592_v30 = vrot.slane %v3590_v27, 7 }
 0x2b0   : > { %v3602_v49 = vor.u32 %v3600_v55, %v3599_v24  ;;  %v3683_v2 = vsel %vm8033_vm2, %v3599_v24, %v3682_v22 }
 0x2b1   : > { %v3736_v48 = vld [vmem:[#allocation3 + $0x78] sm:$0x1]  ;;  %3684 = vst [vmem:[#allocation3 + $0x98] sm:$0x1] %v3683_v2  ;;  %v3595_v38 = vor.u32 %v3593_v17, %v3592_v30  ;;  %v3677_v18 = vsel %vm8033_vm2, %v3592_v30, %v3676_v34 }
 0x2b2   : > { %v3737_v42 = vsel %vm8077_vm4, 0, %v3736_v48  ;;  %v3733_v52 = vld [vmem:[#allocation3 + $0x68] sm:$0x1]  ;;  %v3680_v53 = vsel %vm8852_vm14, %v3602_v49, %v3679_v20  ;;  %3678 = vst [vmem:[#allocation3 + $0x88] sm:$0x1] %v3677_v18 }
 0x2b3   : > { %v3706_v43 = vld [vmem:[#allocation3 + $0x70] sm:$0x1]  ;;  %3738 = vst [vmem:[#allocation3 + $0x78] sm:$0x1] %v3737_v42  ;;  %v3734_v16 = vsel %vm8077_vm4, 0, %v3733_v52  ;;  %3681 = vst [vmem:[#allocation3 + $0x90] sm:$0xff] %v3680_v53  ;;  %v3674_v63 = vsel %vm8852_vm14, %v3595_v38, %v3673_v54 }
 0x2b4   : > { %v3707_v21 = vsel %vm8033_vm2, 0, %v3706_v43  ;;  %v3703_v4 = vld [vmem:[#allocation3 + $0x60] sm:$0x1]  ;;  %3735 = vst [vmem:[#allocation3 + $0x68] sm:$0x1] %v3734_v16  ;;  %3675 = vst [vmem:[#allocation3 + $0x80] sm:$0xff] %v3674_v63 }
 0x2b5   : > { %3708 = vst [vmem:[#allocation3 + $0x70] sm:$0x1] %v3707_v21  ;;  %v3704_v31 = vsel %vm8033_vm2, 0, %v3703_v4 }
 0x2b6   : > { %3705 = vst [vmem:[#allocation3 + $0x60] sm:$0x1] %v3704_v31 }
 0x2b7   : > { %3747 = sbr.rel (%p6176_p2) target bundleno = 702 (0x2be), region = 56 }
 0x2b8   : > { %v3742_v5 = vld [vmem:[#allocation3 + $0x98] sm:$0x1] }
 0x2b9   : > { %v3743_v56 = vsel %vm8077_vm4, 0, %v3742_v5  ;;  %v3739_v7 = vld [vmem:[#allocation3 + $0x88] sm:$0x1] }
 0x2ba   : > { %v3712_v28 = vld [vmem:[#allocation3 + $0x90] sm:$0x1]  ;;  %3744 = vst [vmem:[#allocation3 + $0x98] sm:$0x1] %v3743_v56  ;;  %v3740_v57 = vsel %vm8077_vm4, 0, %v3739_v7 }
 0x2bb   : > { %v3713_v15 = vsel %vm8033_vm2, 0, %v3712_v28  ;;  %v3709_v51 = vld [vmem:[#allocation3 + $0x80] sm:$0x1]  ;;  %3741 = vst [vmem:[#allocation3 + $0x88] sm:$0x1] %v3740_v57 }
 0x2bc   : > { %3714 = vst [vmem:[#allocation3 + $0x90] sm:$0x1] %v3713_v15  ;;  %v3710_v9 = vsel %vm8033_vm2, 0, %v3709_v51 }
 0x2bd   : > { %3711 = vst [vmem:[#allocation3 + $0x80] sm:$0x1] %v3710_v9 }
 0x2be PF: > { %3752 = sbr.rel (%p6187_p4) target bundleno = 709 (0x2c5), region = 60  ;;  %v7920_v26 = vmov (!%p6187_p4), 0  }
 0x2bf   : > { %3754 = vst [vmem:[#allocation3 + $0x90] sm:$0xff] (!%p6187_p4), %v7920_v26  ;;  %3755 = vst [vmem:[#allocation3 + $0x98] sm:$0xff] (!%p6187_p4), %v7920_v26 }
 0x2c5 PF: > { %v7749_v0 = vld [vmem:[%s9541_s3 + $0x40] sm:$0xff]   ;;  %v7750_v10 = vld [vmem:[%s9541_s3 + $0x48] sm:$0xff]   ;;  %v7751_v1 = vld [vmem:[%s9541_s3 + $0x50] sm:$0xff]   ;;  %s6359_s27 = sshll.u32 %s7899_s21, 4  ;;  %s6352_s30 = sshll.u32 %s7903_s22, 5 }
 0x2c6   : > { %6990 = vmatprep.subr.bf16.mxu1 %v7749_v0  ;;  %v7752_v8 = vld [vmem:[%s9541_s3 + $0x58] sm:$0xff]   ;;  %v8977_v33 = vld [vmem:[#allocation3] sm:$0xff]  ;;  %v8979_v25 = vld [vmem:[#allocation3 + $0x8] sm:$0x1]  ;;  %s6069_s9 = sadd.s32 %s6359_s27, %s6352_s30  ;;  %s6072_s22 = sshll.u32 %s8106_s8, 4  ;;  %s9479_s22 = int_to_ptr.vmem [resolvable:$true] %s6072_s22 }
 0x2c7   : > { %6991 = vmatpush3.bf16.msra.mxu1 %v7749_v0  ;;  %v3789_v13 = vshrl.u32 %v8977_v33, 16  ;;  %v3791_v59 = vshll.u32 %v8977_v33, 16  ;;  %v3796_v50 = vshll.u32 %v8979_v25, 16  ;;  %v7753_v14 = vld [vmem:[%s9541_s3 + $0x60] sm:$0xff]   ;;  %v7754_v36 = vld [vmem:[%s9541_s3 + $0x68] sm:$0xff]   ;;  %v8991_v11 = vld [vmem:[#allocation3 + $0x10] sm:$0xff] }
 0x2c8   : > { %6992 = vmatprep.subr.bf16.mxu1 %v7750_v10  ;;  %v8993_v19 = vld [vmem:[#allocation3 + $0x20] sm:$0xff]  ;;  %v8995_v45 = vld [vmem:[#allocation3 + $0x18] sm:$0x1]  ;;  %v3803_v6 = vshll.u32 %v8991_v11, 16  ;;  %v7755_v41 = vld [vmem:[%s9541_s3 + $0x70] sm:$0xff]   ;;  %v3801_v44 = vshrl.u32 %v8991_v11, 16 }
 0x2c9   : > { %v3793_v39 = vrot.slane %v3791_v59, 1  ;;  %v3798_v29 = vrot.slane %v3796_v50, 1  ;;  %v3815_v23 = vshll.u32 %v8993_v19, 16  ;;  %v3808_v37 = vshll.u32 %v8995_v45, 16  ;;  %v9003_v40 = vld [vmem:[#allocation3 + $0x28] sm:$0x1] }
 0x2ca   : > { %v7756_v60 = vld [vmem:[%s9541_s3 + $0x78] sm:$0xff]   ;;  %v3805_v61 = vrot.slane %v3803_v6, 1  ;;  %v3813_v46 = vshrl.u32 %v8993_v19, 16  ;;  %v9010_v12 = vld [vmem:[#allocation3 + $0x30] sm:$0xff]  ;;  %v3820_v62 = vshll.u32 %v9003_v40, 16  ;;  %v9015_v27 = vld [vmem:[#allocation3 + $0x40] sm:$0xff] }
 0x2cb   : > { %6993 = vmatpush3.bf16.msra.mxu1 %v7750_v10  ;;  %v3794_v35 = vor.u32 %v3793_v39, %v3789_v13  ;;  %v3817_v58 = vrot.slane %v3815_v23, 1  ;;  %v3810_v3 = vrot.slane %v3808_v37, 1  ;;  %v9013_v22 = vld [vmem:[#allocation3 + $0x38] sm:$0x1]  ;;  %v7757_v24 = vld [vmem:[%s9541_s3] sm:$0xff]   ;;  %v3825_v55 = vshrl.u32 %v9010_v12, 16 }
 0x2cc   : > { %6994 = vmatprep.subr.bf16.mxu1 %v7751_v1  ;;  %v3827_v34 = vshll.u32 %v9010_v12, 16  ;;  %v9022_v20 = vor.u32 %v3805_v61, %v3801_v44  ;;  %v3822_v17 = vrot.slane %v3820_v62, 1  ;;  %v3839_v49 = vshll.u32 %v9015_v27, 16  ;;  %v9027_v2 = vld [vmem:[#allocation3 + $0x48] sm:$0x1]  ;;  %v9036_v52 = vld [vmem:[#allocation3 + $0x50] sm:$0xff] }
 0x2cd   : > { %v3799_v47 = vsel %vm1095_vm12, %v3794_v35, %v3798_v29  ;;  %v9024_v30 = vor.u32 %v3817_v58, %v3813_v46  ;;  %v7758_v54 = vld [vmem:[%s9541_s3 + $0x8] sm:$0xff]   ;;  %v3832_v38 = vshll.u32 %v9013_v22, 16  ;;  %v3837_v42 = vshrl.u32 %v9015_v27, 16  ;;  %v9041_v63 = vld [vmem:[#allocation3 + $0x60] sm:$0xff]  ;;  %v7759_v21 = vld [vmem:[%s9541_s3 + $0x10] sm:$0xff]   ;;  %s6353_s21 = sshll.u32 %s6069_s9, 7 }
 0x2ce   : > { %7006 = vmatprep.mubr.bf16.mxu1 %v3799_v47  ;;  %v3829_v48 = vrot.slane %v3827_v34, 1  ;;  %v3811_v18 = vsel %vm1095_vm12, %v9022_v20, %v3810_v3  ;;  %v3841_v43 = vrot.slane %v3839_v49, 1  ;;  %v3844_v16 = vshll.u32 %v9027_v2, 16  ;;  %v9051_v28 = vld [vmem:[#allocation3 + $0x58] sm:$0x1]  ;;  %v7761_v35 = vld [vmem:[%s9541_s3 + $0x20] sm:$0xff]   ;;  %s9477_s13 = scalar_lea.hbm %s9543_s5, %s6353_s21 }
 0x2cf   : > { %6995 = vmatpush3.bf16.msra.mxu1 %v7751_v1  ;;  %v3823_v53 = vsel %vm1095_vm12, %v9024_v30, %v3822_v17  ;;  %v3834_v31 = vrot.slane %v3832_v38, 1  ;;  %v3851_v5 = vshll.u32 %v9036_v52, 16  ;;  %v3863_v57 = vshll.u32 %v9041_v63, 16  ;;  %v9054_v15 = vld [vmem:[#allocation3 + $0x68] sm:$0x1]  ;;  %v7760_v32 = vld [vmem:[%s9541_s3 + $0x18] sm:$0xff]  }
 0x2d0   : > { %6996 = vmatprep.subr.bf16.mxu1 %v7752_v8  ;;  %v9046_v4 = vor.u32 %v3829_v48, %v3825_v55  ;;  %v9049_v56 = vor.u32 %v3841_v43, %v3837_v42  ;;  %v3846_v7 = vrot.slane %v3844_v16, 1  ;;  %v3849_v51 = vshrl.u32 %v9036_v52, 16  ;;  %v9064_v1 = vld [vmem:[#allocation3 + $0x70] sm:$0xff]  ;;  %v9069_v50 = vld [vmem:[#allocation3 + $0x78] sm:$0x1]  ;;  %v7766_v55 = vld [vmem:[%s9541_s3 + $0x88] sm:$0xff]  }
 0x2d1   : > { %v3853_v26 = vrot.slane %v3851_v5, 1  ;;  %v3856_v0 = vshll.u32 %v9051_v28, 16  ;;  %v3861_v10 = vshrl.u32 %v9041_v63, 16  ;;  %v3865_v13 = vrot.slane %v3863_v57, 1  ;;  %v7763_v58 = vld [vmem:[%s9541_s3 + $0x30] sm:$0xff]   ;;  %v7764_v3 = vld [vmem:[%s9541_s3 + $0x38] sm:$0xff]  }
 0x2d2   : > { %v3835_v9 = vsel %vm1095_vm12, %v9046_v4, %v3834_v31  ;;  %v3868_v59 = vshll.u32 %v9054_v15, 16  ;;  %v3873_v6 = vshrl.u32 %v9064_v1, 16  ;;  %v3880_v37 = vshll.u32 %v9069_v50, 16  ;;  %v7768_v34 = vld [vmem:[%s9541_s3 + $0x98] sm:$0xff]   ;;  %v7769_v17 = vld [vmem:[%s9541_s3 + $0xa0] sm:$0xff]   ;;  %v7770_v49 = vld [vmem:[%s9541_s3 + $0xa8] sm:$0xff]  }
 0x2d3   : > { %6997 = vmatpush3.bf16.msra.mxu1 %v7752_v8  ;;  %v3847_v8 = vsel %vm1095_vm12, %v9049_v56, %v3846_v7  ;;  %v9071_v39 = vor.u32 %v3853_v26, %v3849_v51  ;;  %v3858_v29 = vrot.slane %v3856_v0, 1  ;;  %v4198_v48 = vld [vmem:[#allocation3] sm:$0xfe]  ;;  %v7771_v38 = vld [vmem:[%s9541_s3 + $0xb0] sm:$0xff]   ;;  %v7772_v42 = vld [vmem:[%s9541_s3 + $0xb8] sm:$0xff]   ;;  %v4226_v16 = vrot.slane %v8995_v45, 1 }
 0x2d4   : > { %6998 = vmatprep.subr.bf16.mxu1 %v7753_v14  ;;  %v3870_v47 = vrot.slane %v3868_v59, 1  ;;  %v3882_v46 = vrot.slane %v3880_v37, 1  ;;  %v4200_v43 = vld [vmem:[#allocation3 + $0x20] sm:$0xfe]  ;;  %v4229_v7 = vrot.slane %v9003_v40, 1  ;;  %v7774_v51 = vld [vmem:[%s9541_s3 + $0xc8] sm:$0xff]  }
 0x2d5   : > { %v7773_v31 = vld [vmem:[%s9541_s3 + $0xc0] sm:$0xff]   ;;  %v4228_v5 = vrot.slane %v4200_v43, 1  ;;  %v4232_v0 = vrot.slane %v9013_v22, 1  ;;  %v7775_v40 = vld [vmem:[%s9541_s3 + $0xd0] sm:$0xff]   ;;  %v7776_v59 = vld [vmem:[%s9541_s3 + $0xd8] sm:$0xff]   ;;  %s9486_s16 = scalar_lea.sflag [#allocation5], %s229_s12 }
 0x2d6   : > { %v4204_v22 = vld [vmem:[#allocation3 + $0x60] sm:$0xfe]  ;;  %v7778_v37 = vld [vmem:[%s9541_s3 + $0xe8] sm:$0xff]   ;;  %s7821_s17 = scalar_lea.vmem %s9479_s22, 2048  ;;  %s7921_s14 = smov [#allocation4]  }
 0x2d7   : > { %6999 = vmatpush3.bf16.msra.mxu1 %v7753_v14  ;;  %v3875_v14 = vshll.u32 %v9064_v1, 16  ;;  %v4230_v45 = vsel %vm1594_vm11, %v4228_v5, %v4229_v7  ;;  %v9218_v5 = vld [vmem:[#allocation3 + $0x48] sm:$0x1]  ;;  %v9220_v7 = vld [vmem:[#allocation3 + $0x58] sm:$0x1]  ;;  %p7822_p5 = scmp.ne.s32.totalorder %s9479_s22, %s7821_s17  ;;  %s7825_s26 = sshll.u32 %s7921_s14, 4  ;;  %s7826_s26 = int_to_ptr.vmem [resolvable:$false] %s7825_s26 }
 0x2d8   : > { %7000 = vmatprep.subr.bf16.mxu1 %v7754_v36  ;;  %s7827_s27 = scalar_lea.vmem %s7826_s26, 4096  ;;  %p7828_p9 = scmp.lt.s32.totalorder %s9479_s22, %s7826_s26 }
 0x2d9   : > { %v3877_v23 = vrot.slane %v3875_v14, 1  ;;  %v4203_v14 = vld [vmem:[#allocation3 + $0x50] sm:$0xfe]  ;;  %p7823_p6 = pnand %p7822_p5, %p8005_p3  ;;  %p7829_p10 = scmp.lt.s32.totalorder %s7827_s27, %s7821_s17 }
 0x2db   : > { %7001 = vmatpush3.bf16.msra.mxu1 %v7754_v36  ;;  %v9077_v36 = vor.u32 %v3865_v13, %v3861_v10  ;;  %v9088_v61 = vor.u32 %v3877_v23, %v3873_v6  ;;  %v4240_v6 = vrot.slane %v4204_v22, 1  ;;  %p7824_p7 = pneg %p7823_p6  ;;  %p7830_p11 = por %p7829_p10, %p7828_p9 }
 0x2dc   : > { %7002 = vmatprep.subr.bf16.mxu1 %v7755_v41 }
 0x2dd   : > { %v3871_v44 = vsel %vm1095_vm12, %v9077_v36, %v3870_v47  ;;  %v3883_v62 = vsel %vm1095_vm12, %v9088_v61, %v3882_v46  ;;  %v4238_v47 = vrot.slane %v9051_v28, 1  ;;  %v4244_v46 = vrot.slane %v9069_v50, 1  ;;  %v7781_v50 = vld [vmem:[%s9541_s3 + $0x100] sm:$0xff]   ;;  %p7831_p12 = pnand %p7830_p11, %p7824_p7 }
 0x2df   : > { %7003 = vmatpush3.bf16.msra.mxu1 %v7755_v41  ;;  %v3859_v41 = vsel %vm1095_vm12, %v9071_v39, %v3858_v29 }
 0x2e0   : > { %7004 = vmatprep.subr.bf16.mxu1 %v7756_v60 }
 0x2e3   : > { %7005 = vmatpush3.bf16.msra.mxu1 %v7756_v60  ;;  %v7762_v60 = vld [vmem:[%s9541_s3 + $0x28] sm:$0xff]  }
 0x2e4   : > { %7022 = vmatprep.subr.bf16.mxu1 %v7757_v24 }
 0x2e6   : > { %7007 = vmatmul.mubr.bf16.vlgmr.msra.gmra.mrb[20].mxu1 %v3811_v18  ;;  %v4222_v18 = vrot.slane %v4198_v48, 1  ;;  %v9201_v48 = vld [vmem:[#allocation3 + $0x28] sm:$0x1] }
 0x2e7   : > { %7023 = vmatpush3.bf16.msra.mxu1 %v7757_v24  ;;  %7010 = vmatprep.mubr.bf16.mxu1 %v3823_v53  ;;  %v7765_v24 = vld [vmem:[%s9541_s3 + $0x80] sm:$0xff]   ;;  %v4199_v53 = vld [vmem:[#allocation3 + $0x10] sm:$0xfe] }
 0x2e8   : > { %7024 = vmatprep.subr.bf16.mxu1 %v7758_v54 }
 0x2eb   : > { %7025 = vmatpush3.bf16.msra.mxu1 %v7758_v54  ;;  %v4223_v54 = vrot.slane %v8979_v25, 1 }
 0x2ec   : > { %7026 = vmatprep.subr.bf16.mxu1 %v7759_v21 }
 0x2ed   : > { %v4224_v25 = vsel %vm1594_vm11, %v4222_v18, %v4223_v54  ;;  %v9205_v18 = vld [vmem:[#allocation3 + $0x80] sm:$0xff] }
 0x2ee   : > { %7011 = vmatmul.mubr.bf16.gmra.mrb[24].mxu1 %v3835_v9  ;;  %v4201_v9 = vld [vmem:[#allocation3 + $0x30] sm:$0xfe] }
 0x2ef   : > { %7027 = vmatpush3.bf16.msra.mxu1 %v7759_v21  ;;  %7014 = vmatprep.mubr.bf16.mxu1 %v3847_v8  ;;  %v4225_v21 = vrot.slane %v4199_v53, 1  ;;  %v4231_v26 = vrot.slane %v4201_v9, 1  ;;  %v4235_v8 = vrot.slane %v9027_v2, 1  ;;  %v7777_v2 = vld [vmem:[%s9541_s3 + $0xe0] sm:$0xff]   ;;  %v4689_v9 = vshll.u32 %v9220_v7, 16 }
 0x2f0   : > { %7028 = vmatprep.subr.bf16.mxu1 %v7760_v32 }
 0x2f1   : > { %v4227_v57 = vsel %vm1594_vm11, %v4225_v21, %v4226_v16  ;;  %v4233_v13 = vsel %vm1594_vm11, %v4231_v26, %v4232_v0  ;;  %v7789_v21 = vld [vmem:[%s9541_s3 + $0x140] sm:$0xff]   ;;  %v4691_v26 = vrot.slane %v4689_v9, 1  ;;  %v9234_v0 = vld [vmem:[#allocation3 + $0x68] sm:$0x1] }
 0x2f3   : > { %7029 = vmatpush3.bf16.msra.mxu1 %v7760_v32  ;;  %v4202_v32 = vld [vmem:[#allocation3 + $0x40] sm:$0xfe] }
 0x2f4   : > { %7030 = vmatprep.subr.bf16.mxu1 %v7761_v35  ;;  %v4234_v10 = vrot.slane %v4202_v32, 1 }
 0x2f6   : > { %7015 = vmatmul.mubr.bf16.gmra.mrb[28].mxu1 %v3859_v41  ;;  %v4236_v29 = vsel %vm1594_vm11, %v4234_v10, %v4235_v8  ;;  %v4241_v41 = vrot.slane %v9054_v15, 1  ;;  %v7779_v15 = vld [vmem:[%s9541_s3 + $0xf0] sm:$0xff]   ;;  %v4701_v10 = vshll.u32 %v9234_v0, 16  ;;  %v7792_v8 = vld [vmem:[%s9541_s3 + $0x158] sm:$0xff]  }
 0x2f7   : > { %7031 = vmatpush3.bf16.msra.mxu1 %v7761_v35  ;;  %7018 = vmatprep.mubr.bf16.mxu1 %v3871_v44  ;;  %v4237_v35 = vrot.slane %v4203_v14, 1  ;;  %v4205_v44 = vld [vmem:[#allocation3 + $0x70] sm:$0xfe]  ;;  %v4720_v14 = vshll.u32 %v9205_v18, 16 }
 0x2f8   : > { %7032 = vmatprep.subr.bf16.mxu1 %v7762_v60  ;;  %v4243_v28 = vrot.slane %v4205_v44, 1  ;;  %v7795_v44 = vld [vmem:[%s9541_s3 + $0x170] sm:$0xff]  }
 0x2f9   : > { %v4239_v23 = vsel %vm1594_vm11, %v4237_v35, %v4238_v47  ;;  %v9251_v35 = vld [vmem:[#allocation3 + $0x88] sm:$0x1]  ;;  %v4718_v47 = vshrl.u32 %v9205_v18, 16 }
 0x2fb   : > { %7033 = vmatpush3.bf16.msra.mxu1 %v7762_v60  ;;  %v4242_v60 = vsel %vm1594_vm11, %v4240_v6, %v4241_v41  ;;  %v4725_v6 = vshll.u32 %v9251_v35, 16  ;;  %v7794_v41 = vld [vmem:[%s9541_s3 + $0x168] sm:$0xff]  }
 0x2fc   : > { %7034 = vmatprep.subr.bf16.mxu1 %v7763_v58 }
 0x2fe   : > { %7019 = vmatmul.mubr.bf16.gmra.mrb[32].mxu1 %v3883_v62  ;;  %v7780_v62 = vld [vmem:[%s9541_s3 + $0xf8] sm:$0xff]  }
 0x2ff   : > { %7035 = vmatpush3.bf16.msra.mxu1 %v7763_v58  ;;  %7038 = vmatprep.mubr.bf16.mxu1 %v8977_v33  ;;  %v7767_v33 = vld [vmem:[%s9541_s3 + $0x90] sm:$0xff]   ;;  %v4245_v58 = vsel %vm1594_vm11, %v4243_v28, %v4244_v46 }
 0x300   : > { %7036 = vmatprep.subr.bf16.mxu1 %v7764_v3 }
 0x303   : > { %7037 = vmatpush3.bf16.msra.mxu1 %v7764_v3  ;;  %v7782_v3 = vld [vmem:[%s9541_s3 + $0x108] sm:$0xff]  }
 0x304   : > { %7054 = vmatprep.subr.bf16.mxu1 %v7765_v24 }
 0x306   : > { %7039 = vmatmul.mubr.bf16.vlgmr.msra.gmra.mrb[20].mxu1 %v8991_v11 }
 0x307   : > { %7055 = vmatpush3.bf16.msra.mxu1 %v7765_v24  ;;  %7042 = vmatprep.mubr.bf16.mxu1 %v8993_v19  ;;  %v7784_v24 = vld [vmem:[%s9541_s3 + $0x118] sm:$0xff]  }
 0x308   : > { %7056 = vmatprep.subr.bf16.mxu1 %v7766_v55 }
 0x30b   : > { %7057 = vmatpush3.bf16.msra.mxu1 %v7766_v55  ;;  %v7785_v55 = vld [vmem:[%s9541_s3 + $0x120] sm:$0xff]  }
 0x30c   : > { %7058 = vmatprep.subr.bf16.mxu1 %v7767_v33 }
 0x30e   : > { %7043 = vmatmul.mubr.bf16.gmra.mrb[24].mxu1 %v9010_v12 }
 0x30f   : > { %7059 = vmatpush3.bf16.msra.mxu1 %v7767_v33  ;;  %7046 = vmatprep.mubr.bf16.mxu1 %v9015_v27  ;;  %v9190_v33 = vld [vmem:[#allocation3 + $0x18] sm:$0x1] }
 0x310   : > { %7060 = vmatprep.subr.bf16.mxu1 %v7768_v34  ;;  %v4939_v46 = vrot.slane %v9190_v33, 1 }
 0x313   : > { %7061 = vmatpush3.bf16.msra.mxu1 %v7768_v34  ;;  %v7786_v34 = vld [vmem:[%s9541_s3 + $0x128] sm:$0xff]  }
 0x314   : > { %7062 = vmatprep.subr.bf16.mxu1 %v7769_v17 }
 0x316   : > { %7047 = vmatmul.mubr.bf16.gmra.mrb[28].mxu1 %v9036_v52 }
 0x317   : > { %7063 = vmatpush3.bf16.msra.mxu1 %v7769_v17  ;;  %7050 = vmatprep.mubr.bf16.mxu1 %v9041_v63  ;;  %v4641_v17 = vshll.u32 %v9190_v33, 16 }
 0x318   : > { %7064 = vmatprep.subr.bf16.mxu1 %v7770_v49 }
 0x319   : > { %v4643_v54 = vrot.slane %v4641_v17, 1  ;;  %v7798_v17 = vld [vmem:[%s9541_s3 + $0x188] sm:$0xff]  }
 0x31b   : > { %7065 = vmatpush3.bf16.msra.mxu1 %v7770_v49  ;;  %v7787_v49 = vld [vmem:[%s9541_s3 + $0x130] sm:$0xff]   ;;  %v4644_v53 = vsel %vm1095_vm12, %v9022_v20, %v4643_v54  ;;  %v4917_v54 = vld [vmem:[#allocation3 + $0x40] sm:$0xfe] }
 0x31c   : > { %7066 = vmatprep.subr.bf16.mxu1 %v7771_v38 }
 0x31e   : > { %7051 = vmatmul.mubr.bf16.gmra.mrb[32].mxu1 %v9064_v1 }
 0x31f   : > { %7067 = vmatpush3.bf16.msra.mxu1 %v7771_v38  ;;  %7070 = vmatprep.mubr.bf16.mxu1 %v4224_v25  ;;  %v9203_v38 = vld [vmem:[#allocation3 + $0x38] sm:$0x1] }
 0x320   : > { %7068 = vmatprep.subr.bf16.mxu1 %v7772_v42  ;;  %v7788_v25 = vld [vmem:[%s9541_s3 + $0x138] sm:$0xff]   ;;  %v4665_v43 = vshll.u32 %v9203_v38, 16  ;;  %v4945_v33 = vrot.slane %v9203_v38, 1  ;;  %v7799_v38 = vld [vmem:[%s9541_s3 + $0x190] sm:$0xff]  }
 0x323   : > { %7069 = vmatpush3.bf16.msra.mxu1 %v7772_v42  ;;  %v4653_v42 = vshll.u32 %v9201_v48, 16 }
 0x324   : > { %7086 = vmatprep.subr.bf16.mxu1 %v7773_v31 }
 0x325   : > { %v4655_v16 = vrot.slane %v4653_v42, 1  ;;  %v4947_v42 = vrot.slane %v4917_v54, 1 }
 0x326   : > { %7071 = vmatmul.mubr.bf16.vlgmr.msra.gmra.mrb[20].mxu1 %v4227_v57  ;;  %v4677_v57 = vshll.u32 %v9218_v5, 16 }
 0x327   : > { %7087 = vmatpush3.bf16.msra.mxu1 %v7773_v31  ;;  %7074 = vmatprep.mubr.bf16.mxu1 %v4230_v45  ;;  %v4667_v31 = vrot.slane %v4665_v43, 1  ;;  %v4656_v20 = vsel %vm1095_vm12, %v9024_v30, %v4655_v16  ;;  %v7791_v30 = vld [vmem:[%s9541_s3 + $0x150] sm:$0xff]   ;;  %v4951_v43 = vrot.slane %v9220_v7, 1  ;;  %v7801_v7 = vld [vmem:[%s9541_s3 + $0x1a0] sm:$0xff]  }
 0x328   : > { %7088 = vmatprep.subr.bf16.mxu1 %v7774_v51  ;;  %v4679_v32 = vrot.slane %v4677_v57, 1 }
 0x329   : > { %v4668_v45 = vsel %vm1095_vm12, %v9046_v4, %v4667_v31 }
 0x32a   : > { %v4680_v4 = vsel %vm1095_vm12, %v9049_v56, %v4679_v32  ;;  %v7793_v56 = vld [vmem:[%s9541_s3 + $0x160] sm:$0xff]  }
 0x32b   : > { %7089 = vmatpush3.bf16.msra.mxu1 %v7774_v51  ;;  %v7790_v51 = vld [vmem:[%s9541_s3 + $0x148] sm:$0xff]  }
 0x32c   : > { %7090 = vmatprep.subr.bf16.mxu1 %v7775_v40 }
 0x32e   : > { %7075 = vmatmul.mubr.bf16.gmra.mrb[24].mxu1 %v4233_v13  ;;  %v4692_v13 = vsel %vm1095_vm12, %v9071_v39, %v4691_v26 }
 0x32f   : > { %7091 = vmatpush3.bf16.msra.mxu1 %v7775_v40  ;;  %7078 = vmatprep.mubr.bf16.mxu1 %v4236_v29  ;;  %v9236_v40 = vld [vmem:[#allocation3 + $0x78] sm:$0x1]  ;;  %v4703_v29 = vrot.slane %v4701_v10, 1  ;;  %v4960_v10 = vrot.slane %v9251_v35, 1  ;;  %v7810_v35 = vld [vmem:[%s9541_s3 + $0x1e8] sm:$0xff]  }
 0x330   : > { %7092 = vmatprep.subr.bf16.mxu1 %v7776_v59  ;;  %v4957_v9 = vrot.slane %v9236_v40, 1 }
 0x331   : > { %v4704_v39 = vsel %vm1095_vm12, %v9077_v36, %v4703_v29  ;;  %v4727_v36 = vrot.slane %v4725_v6, 1  ;;  %v7806_v29 = vld [vmem:[%s9541_s3 + $0x1c8] sm:$0xff]  }
 0x333   : > { %7093 = vmatpush3.bf16.msra.mxu1 %v7776_v59  ;;  %v4713_v59 = vshll.u32 %v9236_v40, 16  ;;  %v7803_v40 = vld [vmem:[%s9541_s3 + $0x1b0] sm:$0xff]  }
 0x334   : > { %7094 = vmatprep.subr.bf16.mxu1 %v7777_v2 }
 0x335   : > { %v4715_v22 = vrot.slane %v4713_v59, 1  ;;  %v7805_v59 = vld [vmem:[%s9541_s3 + $0x1c0] sm:$0xff]  }
 0x336   : > { %7079 = vmatmul.mubr.bf16.gmra.mrb[28].mxu1 %v4239_v23 }
 0x337   : > { %7095 = vmatpush3.bf16.msra.mxu1 %v7777_v2  ;;  %7082 = vmatprep.mubr.bf16.mxu1 %v4242_v60  ;;  %v4722_v2 = vrot.slane %v4720_v14, 1  ;;  %v4716_v23 = vsel %vm1095_vm12, %v9088_v61, %v4715_v22  ;;  %v7796_v61 = vld [vmem:[%s9541_s3 + $0x178] sm:$0xff]   ;;  %v9332_v22 = vld [vmem:[#allocation3 + $0x28] sm:$0x1] }
 0x338   : > { %7096 = vmatprep.subr.bf16.mxu1 %v7778_v37  ;;  %v7808_v14 = vld [vmem:[%s9541_s3 + $0x1d8] sm:$0xff]  }
 0x339   : > { %v9262_v60 = vor.u32 %v4722_v2, %v4718_v47  ;;  %v5335_v2 = vld [vmem:[#allocation3 + $0x30] sm:$0xff] }
 0x33a   : > { %v5364_v6 = vshll.u32 %v5335_v2, 16 }
 0x33b   : > { %7097 = vmatpush3.bf16.msra.mxu1 %v7778_v37  ;;  %v4914_v37 = vld [vmem:[#allocation3 + $0x10] sm:$0xfe] }
 0x33c   : > { %7098 = vmatprep.subr.bf16.mxu1 %v7779_v15  ;;  %v4938_v28 = vrot.slane %v4914_v37, 1 }
 0x33e   : > { %7083 = vmatmul.mubr.bf16.gmra.mrb[32].mxu1 %v4245_v58  ;;  %v4940_v58 = vsel %vm1594_vm11, %v4938_v28, %v4939_v46  ;;  %v9345_v28 = vld [vmem:[#allocation3 + $0x48] sm:$0x1]  ;;  %v9347_v46 = vld [vmem:[#allocation3 + $0x90] sm:$0xff] }
 0x33f   : > { %7099 = vmatpush3.bf16.msra.mxu1 %v7779_v15  ;;  %7102 = vmatprep.mubr.bf16.mxu1 %v8991_v11  ;;  %v7783_v11 = vld [vmem:[%s9541_s3 + $0x110] sm:$0xff]   ;;  %v4728_v15 = vsel %vm1095_vm12, %v9262_v60, %v4727_v36  ;;  %v9343_v36 = vld [vmem:[#allocation3 + $0x38] sm:$0x1] }
 0x340   : > { %7100 = vmatprep.subr.bf16.mxu1 %v7780_v62 }
 0x343   : > { %7101 = vmatpush3.bf16.msra.mxu1 %v7780_v62  ;;  %v4915_v62 = vld [vmem:[#allocation3 + $0x20] sm:$0xfe] }
 0x344   : > { %7118 = vmatprep.subr.bf16.mxu1 %v7781_v50 }
 0x346   : > { %7103 = vmatmul.mubr.bf16.vlgmr.msra.gmra.mrb[20].mxu1 %v8993_v19 }
 0x347   : > { %7119 = vmatpush3.bf16.msra.mxu1 %v7781_v50  ;;  %7106 = vmatprep.mubr.bf16.mxu1 %v9010_v12  ;;  %v4916_v50 = vld [vmem:[#allocation3 + $0x30] sm:$0xfe] }
 0x348   : > { %7120 = vmatprep.subr.bf16.mxu1 %v7782_v3 }
 0x34b   : > { %7121 = vmatpush3.bf16.msra.mxu1 %v7782_v3  ;;  %v4941_v3 = vrot.slane %v4915_v62, 1 }
 0x34c   : > { %7122 = vmatprep.subr.bf16.mxu1 %v7783_v11 }
 0x34e   : > { %7107 = vmatmul.mubr.bf16.gmra.mrb[24].mxu1 %v9015_v27 }
 0x34f   : > { %7123 = vmatpush3.bf16.msra.mxu1 %v7783_v11  ;;  %7110 = vmatprep.mubr.bf16.mxu1 %v9036_v52  ;;  %v4942_v11 = vrot.slane %v9201_v48, 1  ;;  %v4918_v48 = vld [vmem:[#allocation3 + $0x50] sm:$0xfe] }
 0x350   : > { %7124 = vmatprep.subr.bf16.mxu1 %v7784_v24 }
 0x353   : > { %7125 = vmatpush3.bf16.msra.mxu1 %v7784_v24  ;;  %v7797_v24 = vld [vmem:[%s9541_s3 + $0x180] sm:$0xff]  }
 0x354   : > { %7126 = vmatprep.subr.bf16.mxu1 %v7785_v55 }
 0x356   : > { %7111 = vmatmul.mubr.bf16.gmra.mrb[28].mxu1 %v9041_v63 }
 0x357   : > { %7127 = vmatpush3.bf16.msra.mxu1 %v7785_v55  ;;  %7114 = vmatprep.mubr.bf16.mxu1 %v9064_v1  ;;  %v4944_v55 = vrot.slane %v4916_v50, 1 }
 0x358   : > { %7128 = vmatprep.subr.bf16.mxu1 %v7786_v34 }
 0x35b   : > { %7129 = vmatpush3.bf16.msra.mxu1 %v7786_v34  ;;  %v4943_v34 = vsel %vm1594_vm11, %v4941_v3, %v4942_v11  ;;  %v5381_v3 = vshll.u32 %v9345_v28, 16  ;;  %v5339_v11 = vld [vmem:[#allocation3 + $0x50] sm:$0xff] }
 0x35c   : > { %7130 = vmatprep.subr.bf16.mxu1 %v7787_v49 }
 0x35d   : > { %v5383_v54 = vrot.slane %v5381_v3, 1  ;;  %v5658_v3 = vrot.slane %v9343_v36, 1 }
 0x35e   : > { %7115 = vmatmul.mubr.bf16.gmra.mrb[32].mxu1 %v9205_v18 }
 0x35f   : > { %7131 = vmatpush3.bf16.msra.mxu1 %v7787_v49  ;;  %7134 = vmatprep.mubr.bf16.mxu1 %v4644_v53  ;;  %v4946_v49 = vsel %vm1594_vm11, %v4944_v55, %v4945_v33  ;;  %v4950_v53 = vrot.slane %v4918_v48, 1  ;;  %v9359_v48 = vld [vmem:[#allocation3 + $0x58] sm:$0x1] }
 0x360   : > { %7132 = vmatprep.subr.bf16.mxu1 %v7788_v25 }
 0x361   : > { %v4952_v31 = vsel %vm1594_vm11, %v4950_v53, %v4951_v43  ;;  %v5386_v53 = vshrl.u32 %v5339_v11, 16 }
 0x363   : > { %7133 = vmatpush3.bf16.msra.mxu1 %v7788_v25  ;;  %v4948_v25 = vrot.slane %v9218_v5, 1  ;;  %v4920_v5 = vld [vmem:[#allocation3 + $0x70] sm:$0xfe] }
 0x364   : > { %7150 = vmatprep.subr.bf16.mxu1 %v7789_v21 }
 0x365   : > { %v4949_v16 = vsel %vm1594_vm11, %v4947_v42, %v4948_v25  ;;  %v9361_v25 = vld [vmem:[#allocation3 + $0x68] sm:$0x1] }
 0x366   : > { %7135 = vmatmul.mubr.bf16.vlgmr.msra.gmra.mrb[20].mxu1 %v4656_v20  ;;  %v4919_v20 = vld [vmem:[#allocation3 + $0x60] sm:$0xfe] }
 0x367   : > { %7151 = vmatpush3.bf16.msra.mxu1 %v7789_v21  ;;  %7138 = vmatprep.mubr.bf16.mxu1 %v4668_v45  ;;  %v7800_v21 = vld [vmem:[%s9541_s3 + $0x198] sm:$0xff]   ;;  %v4953_v57 = vrot.slane %v4919_v20, 1  ;;  %v4956_v45 = vrot.slane %v4920_v5, 1 }
 0x368   : > { %7152 = vmatprep.subr.bf16.mxu1 %v7790_v51 }
 0x369   : > { %v4958_v26 = vsel %vm1594_vm11, %v4956_v45, %v4957_v9 }
 0x36b   : > { %7153 = vmatpush3.bf16.msra.mxu1 %v7790_v51  ;;  %v4954_v51 = vrot.slane %v9234_v0, 1 }
 0x36c   : > { %7154 = vmatprep.subr.bf16.mxu1 %v7791_v30 }
 0x36d   : > { %v4955_v32 = vsel %vm1594_vm11, %v4953_v57, %v4954_v51  ;;  %v5405_v57 = vshll.u32 %v9361_v25, 16  ;;  %v5343_v51 = vld [vmem:[#allocation3 + $0x70] sm:$0xff] }
 0x36e   : > { %7139 = vmatmul.mubr.bf16.gmra.mrb[24].mxu1 %v4680_v4  ;;  %v4921_v4 = vld [vmem:[#allocation3 + $0x80] sm:$0xfe]  ;;  %v5412_v9 = vshll.u32 %v5343_v51, 16 }
 0x36f   : > { %7155 = vmatpush3.bf16.msra.mxu1 %v7791_v30  ;;  %7142 = vmatprep.mubr.bf16.mxu1 %v4692_v13  ;;  %v7802_v30 = vld [vmem:[%s9541_s3 + $0x1a8] sm:$0xff]   ;;  %v4959_v0 = vrot.slane %v4921_v4, 1  ;;  %v7804_v13 = vld [vmem:[%s9541_s3 + $0x1b8] sm:$0xff]  }
 0x370   : > { %7156 = vmatprep.subr.bf16.mxu1 %v7792_v8  ;;  %v9373_v4 = vld [vmem:[#allocation3 + $0x78] sm:$0x1] }
 0x373   : > { %7157 = vmatpush3.bf16.msra.mxu1 %v7792_v8  ;;  %v4961_v8 = vsel %vm1594_vm11, %v4959_v0, %v4960_v10  ;;  %v9375_v0 = vld [vmem:[#allocation3 + $0x88] sm:$0x1] }
 0x374   : > { %7158 = vmatprep.subr.bf16.mxu1 %v7793_v56 }
 0x376   : > { %7143 = vmatmul.mubr.bf16.gmra.mrb[28].mxu1 %v4704_v39 }
 0x377   : > { %7159 = vmatpush3.bf16.msra.mxu1 %v7793_v56  ;;  %7146 = vmatprep.mubr.bf16.mxu1 %v4716_v23  ;;  %v5333_v56 = vld [vmem:[#allocation3 + $0x20] sm:$0xff] }
 0x378   : > { %7160 = vmatprep.subr.bf16.mxu1 %v7794_v41  ;;  %v5350_v39 = vshrl.u32 %v5333_v56, 16 }
 0x37b   : > { %7161 = vmatpush3.bf16.msra.mxu1 %v7794_v41  ;;  %v7811_v41 = vld [vmem:[%s9541_s3 + $0x1f0] sm:$0xff]  }
 0x37c   : > { %7162 = vmatprep.subr.bf16.mxu1 %v7795_v44 }
 0x37e   : > { %7147 = vmatmul.mubr.bf16.gmra.mrb[32].mxu1 %v4728_v15  ;;  %v5366_v15 = vrot.slane %v5364_v6, 1  ;;  %v7818_v6 = vld [vmem:[%s9541_s3 + $0x228] sm:$0xff]  }
 0x37f   : > { %7163 = vmatpush3.bf16.msra.mxu1 %v7795_v44  ;;  %7166 = vmatprep.mubr.bf16.mxu1 %v4940_v58 }
 0x380   : > { %7164 = vmatprep.subr.bf16.mxu1 %v7796_v61 }
 0x383   : > { %7165 = vmatpush3.bf16.msra.mxu1 %v7796_v61  ;;  %v7812_v61 = vld [vmem:[%s9541_s3 + $0x1f8] sm:$0xff]  }
 0x384   : > { %7182 = vmatprep.subr.bf16.mxu1 %v7797_v24 }
 0x386   : > { %7167 = vmatmul.mubr.bf16.vlgmr.msra.gmra.mrb[20].mxu1 %v4943_v34  ;;  %v5388_v34 = vshll.u32 %v5339_v11, 16  ;;  %v5661_v11 = vrot.slane %v9345_v28, 1  ;;  %v5635_v28 = vld [vmem:[#allocation3 + $0x70] sm:$0xfe] }
 0x387   : > { %7183 = vmatpush3.bf16.msra.mxu1 %v7797_v24  ;;  %7170 = vmatprep.mubr.bf16.mxu1 %v4946_v49  ;;  %v5341_v24 = vld [vmem:[#allocation3 + $0x60] sm:$0xff] }
 0x388   : > { %7184 = vmatprep.subr.bf16.mxu1 %v7798_v17  ;;  %v5400_v42 = vshll.u32 %v5341_v24, 16  ;;  %v5390_v43 = vrot.slane %v5388_v34, 1  ;;  %v5398_v20 = vshrl.u32 %v5341_v24, 16  ;;  %v5634_v34 = vld [vmem:[#allocation3 + $0x60] sm:$0xfe] }
 0x38a   : > { %v5402_v5 = vrot.slane %v5400_v42, 1  ;;  %v5667_v42 = vrot.slane %v9361_v25, 1 }
 0x38b   : > { %7185 = vmatpush3.bf16.msra.mxu1 %v7798_v17  ;;  %v7813_v17 = vld [vmem:[%s9541_s3 + $0x200] sm:$0xff]  }
 0x38c   : > { %7186 = vmatprep.subr.bf16.mxu1 %v7799_v38 }
 0x38e   : > { %7171 = vmatmul.mubr.bf16.gmra.mrb[24].mxu1 %v4949_v16  ;;  %v5393_v16 = vshll.u32 %v9359_v48, 16 }
 0x38f   : > { %7187 = vmatpush3.bf16.msra.mxu1 %v7799_v38  ;;  %7174 = vmatprep.mubr.bf16.mxu1 %v4952_v31 }
 0x390   : > { %7188 = vmatprep.subr.bf16.mxu1 %v7800_v21  ;;  %v5395_v45 = vrot.slane %v5393_v16, 1  ;;  %v5670_v16 = vrot.slane %v9373_v4, 1 }
 0x393   : > { %7189 = vmatpush3.bf16.msra.mxu1 %v7800_v21  ;;  %v7814_v21 = vld [vmem:[%s9541_s3 + $0x208] sm:$0xff]  }
 0x394   : > { %7190 = vmatprep.subr.bf16.mxu1 %v7801_v7 }
 0x396   : > { %7175 = vmatmul.mubr.bf16.gmra.mrb[28].mxu1 %v4955_v32  ;;  %v7815_v32 = vld [vmem:[%s9541_s3 + $0x210] sm:$0xff]  }
 0x397   : > { %7191 = vmatpush3.bf16.msra.mxu1 %v7801_v7  ;;  %7178 = vmatprep.mubr.bf16.mxu1 %v4958_v26  ;;  %v5391_v7 = vor.u32 %v5390_v43, %v5386_v53  ;;  %v5407_v26 = vrot.slane %v5405_v57, 1  ;;  %v5636_v53 = vld [vmem:[#allocation3 + $0x80] sm:$0xfe]  ;;  %v5669_v43 = vrot.slane %v5635_v28, 1 }
 0x398   : > { %7192 = vmatprep.subr.bf16.mxu1 %v7802_v30 }
 0x399   : > { %v5396_v10 = vsel %vm1095_vm12, %v5391_v7, %v5395_v45  ;;  %v5865_v7 = vld [vmem:[#allocation2 + $0x30] sm:$0xff]  ;;  %v5863_v45 = vld [vmem:[#allocation2 + $0x20] sm:$0xff] }
 0x39b   : > { %7193 = vmatpush3.bf16.msra.mxu1 %v7802_v30  ;;  %v5403_v30 = vor.u32 %v5402_v5, %v5398_v20  ;;  %v5671_v20 = vsel %vm1594_vm11, %v5669_v43, %v5670_v16  ;;  %v5637_v5 = vld [vmem:[#allocation3 + $0x90] sm:$0xfe]  ;;  %v5874_v43 = vld [vmem:[#allocation2 + $0x78] sm:$0x1] }
 0x39c   : > { %7194 = vmatprep.subr.bf16.mxu1 %v7803_v40  ;;  %v5675_v25 = vrot.slane %v5637_v5, 1  ;;  %v5872_v5 = vld [vmem:[#allocation2 + $0x68] sm:$0x1] }
 0x39e   : > { %7179 = vmatmul.mubr.bf16.gmra.mrb[32].mxu1 %v4961_v8  ;;  %v5414_v8 = vrot.slane %v5412_v9, 1  ;;  %v5866_v9 = vld [vmem:[#allocation2 + $0x38] sm:$0x1] }
 0x39f   : > { %7195 = vmatpush3.bf16.msra.mxu1 %v7803_v40  ;;  %7198 = vmatprep.mubr.bf16.mxu1 %v8993_v19  ;;  %v7807_v19 = vld [vmem:[%s9541_s3 + $0x1d0] sm:$0xff]   ;;  %v5410_v40 = vshrl.u32 %v5343_v51, 16 }
 0x3a0   : > { %7196 = vmatprep.subr.bf16.mxu1 %v7804_v13 }
 0x3a3   : > { %7197 = vmatpush3.bf16.msra.mxu1 %v7804_v13  ;;  %v5417_v13 = vshll.u32 %v9373_v4, 16  ;;  %v5879_v4 = vunpack.c.l.bf16 %v5863_v45 }
 0x3a4   : > { %7214 = vmatprep.subr.bf16.mxu1 %v7805_v59 }
 0x3a6   : > { %7199 = vmatmul.mubr.bf16.vlgmr.msra.gmra.mrb[20].mxu1 %v9010_v12  ;;  %v7809_v12 = vld [vmem:[%s9541_s3 + $0x1e0] sm:$0xff]  }
 0x3a7   : > { %7215 = vmatpush3.bf16.msra.mxu1 %v7805_v59  ;;  %7202 = vmatprep.mubr.bf16.mxu1 %v9015_v27  ;;  %v5352_v27 = vshll.u32 %v5333_v56, 16  ;;  %v7816_v59 = vld [vmem:[%s9541_s3 + $0x218] sm:$0xff]   ;;  %v5419_v56 = vrot.slane %v5417_v13, 1 }
 0x3a8   : > { %7216 = vmatprep.subr.bf16.mxu1 %v7806_v29 }
 0x3a9   : > { %v5354_v47 = vrot.slane %v5352_v27, 1  ;;  %v7817_v27 = vld [vmem:[%s9541_s3 + $0x220] sm:$0xff]  }
 0x3ab   : > { %7217 = vmatpush3.bf16.msra.mxu1 %v7806_v29  ;;  %v5355_v23 = vor.u32 %v5354_v47, %v5350_v39  ;;  %v5408_v29 = vsel %vm1095_vm12, %v5403_v30, %v5407_v26  ;;  %v9388_v39 = vld [vmem:[#allocation3 + $0x98] sm:$0x1]  ;;  %v5883_v30 = vunpack.c.h.bf16 %v5865_v7  ;;  %v5864_v26 = vld [vmem:[#allocation2 + $0x28] sm:$0x1] }
 0x3ac   : > { %7218 = vmatprep.subr.bf16.mxu1 %v7807_v19  ;;  %v5676_v57 = vrot.slane %v9388_v39, 1 }
 0x3ad   : > { %v5934_v13 = vrot.slane %v5883_v30, 1 }
 0x3ae   : > { %7203 = vmatmul.mubr.bf16.gmra.mrb[24].mxu1 %v9036_v52  ;;  %v5357_v52 = vshll.u32 %v9332_v22, 16  ;;  %v5677_v51 = vsel %vm1594_vm11, %v5675_v25, %v5676_v57 }
 0x3af   : > { %7219 = vmatpush3.bf16.msra.mxu1 %v7807_v19  ;;  %7206 = vmatprep.mubr.bf16.mxu1 %v9041_v63  ;;  %v5337_v63 = vld [vmem:[#allocation3 + $0x40] sm:$0xff]  ;;  %v5429_v19 = vshll.u32 %v9375_v0, 16 }
 0x3b0   : > { %7220 = vmatprep.subr.bf16.mxu1 %v7808_v14  ;;  %v5359_v37 = vrot.slane %v5357_v52, 1  ;;  %v5376_v44 = vshll.u32 %v5337_v63, 16  ;;  %v5374_v62 = vshrl.u32 %v5337_v63, 16  ;;  %v5434_v52 = vshrl.u32 %v9347_v46, 16 }
 0x3b1   : > { %v5441_v63 = vshll.u32 %v9388_v39, 16 }
 0x3b2   : > { %v5360_v58 = vsel %vm1095_vm12, %v5355_v23, %v5359_v37  ;;  %v5378_v50 = vrot.slane %v5376_v44, 1  ;;  %v5630_v23 = vld [vmem:[#allocation3 + $0x20] sm:$0xfe] }
 0x3b3   : > { %7221 = vmatpush3.bf16.msra.mxu1 %v7808_v14  ;;  %v5415_v14 = vor.u32 %v5414_v8, %v5410_v40  ;;  %v5443_v44 = vrot.slane %v5441_v63, 1  ;;  %v5881_v40 = vunpack.c.l.bf16 %v5864_v26  ;;  %v5868_v63 = vld [vmem:[#allocation2 + $0x48] sm:$0x1]  ;;  %v5896_v26 = vunpack.c.l.bf16 %v5874_v43 }
 0x3b4   : > { %7222 = vmatprep.subr.bf16.mxu1 %v7809_v12  ;;  %v5379_v49 = vor.u32 %v5378_v50, %v5374_v62  ;;  %v5632_v62 = vld [vmem:[#allocation3 + $0x40] sm:$0xfe] }
 0x3b5   : > { %v5420_v47 = vsel %vm1095_vm12, %v5415_v14, %v5419_v56  ;;  %v9424_v14 = vld [vmem:[%s9542_s4] ss:$0 sm:$0xff] }
 0x3b6   : > { %7207 = vmatmul.mubr.bf16.gmra.mrb[28].mxu1 %v9064_v1  ;;  %v5362_v1 = vshrl.u32 %v5335_v2, 16  ;;  %v5384_v31 = vsel %vm1095_vm12, %v5379_v49, %v5383_v54  ;;  %v5664_v49 = vrot.slane %v9359_v48, 1  ;;  %v5666_v54 = vrot.slane %v5634_v34, 1 }
 0x3b7   : > { %7223 = vmatpush3.bf16.msra.mxu1 %v7809_v12  ;;  %7210 = vmatprep.mubr.bf16.mxu1 %v9205_v18  ;;  %v5369_v18 = vshll.u32 %v9343_v36, 16  ;;  %v5436_v12 = vshll.u32 %v9347_v46, 16 }
 0x3b8   : > { %7224 = vmatprep.subr.bf16.mxu1 %v7810_v35  ;;  %v5367_v55 = vor.u32 %v5366_v15, %v5362_v1  ;;  %v5654_v1 = vrot.slane %v5630_v23, 1  ;;  %v5655_v15 = vrot.slane %v9332_v22, 1  ;;  %v5660_v22 = vrot.slane %v5632_v62, 1 }
 0x3b9   : > { %v5371_v33 = vrot.slane %v5369_v18, 1  ;;  %v5438_v2 = vrot.slane %v5436_v12, 1  ;;  %v5867_v12 = vld [vmem:[#allocation2 + $0x40] sm:$0xff] }
 0x3bb   : > { %7225 = vmatpush3.bf16.msra.mxu1 %v7810_v35  ;;  %v5372_v38 = vsel %vm1095_vm12, %v5367_v55, %v5371_v33  ;;  %v5431_v35 = vrot.slane %v5429_v19, 1  ;;  %v5439_v37 = vor.u32 %v5438_v2, %v5434_v52  ;;  %v5662_v55 = vsel %vm1594_vm11, %v5660_v22, %v5661_v11  ;;  %v5633_v33 = vld [vmem:[#allocation3 + $0x50] sm:$0xfe] }
 0x3bc   : > { %7226 = vmatprep.subr.bf16.mxu1 %v7811_v41  ;;  %v5869_v19 = vld [vmem:[#allocation2 + $0x50] sm:$0xff] }
 0x3bd   : > { %v5444_v18 = vsel %vm1095_vm12, %v5439_v37, %v5443_v44  ;;  %v5888_v52 = vunpack.c.l.bf16 %v5869_v19  ;;  %v5889_v2 = vunpack.c.h.bf16 %v5869_v19  ;;  %v5885_v37 = vunpack.c.l.bf16 %v5867_v12 }
 0x3be   : > { %7211 = vmatmul.mubr.bf16.gmra.mrb[32].mxu1 %v9347_v46  ;;  %v7819_v46 = vld [vmem:[%s9541_s3 + $0x230] sm:$0xff]   ;;  %v5886_v44 = vunpack.c.h.bf16 %v5867_v12 }
 0x3bf   : > { %7227 = vmatpush3.bf16.msra.mxu1 %v7811_v41  ;;  %7230 = vmatprep.mubr.bf16.mxu1 %v5360_v58  ;;  %v5432_v41 = vsel %vm1095_vm12, %v9262_v60, %v5431_v35  ;;  %v7820_v60 = vld [vmem:[%s9541_s3 + $0x238] sm:$0xff]   ;;  %v5631_v58 = vld [vmem:[#allocation3 + $0x30] sm:$0xfe]  ;;  %v5943_v11 = vrot.slane %v5888_v52, 1  ;;  %v5938_v34 = vrot.slane %v5885_v37, 1 }
 0x3c0   : > { %7228 = vmatprep.subr.bf16.mxu1 %v7812_v61  ;;  %v5657_v50 = vrot.slane %v5631_v58, 1  ;;  %v5870_v35 = vld [vmem:[#allocation2 + $0x58] sm:$0x1] }
 0x3c2   : > { %v5659_v24 = vsel %vm1594_vm11, %v5657_v50, %v5658_v3  ;;  %v5887_v50 = vunpack.c.l.bf16 %v5868_v63  ;;  %v5875_v63 = vld [vmem:[#allocation2 + $0x80] sm:$0xff] }
 0x3c3   : > { %7229 = vmatpush3.bf16.msra.mxu1 %v7812_v61  ;;  %v5656_v61 = vsel %vm1594_vm11, %v5654_v1, %v5655_v15 }
 0x3c4   : > { %7246 = vmatprep.subr.bf16.mxu1 %v7813_v17 }
 0x3c6   : > { %7231 = vmatmul.mubr.bf16.vlgmr.msra.gmra.mrb[20].mxu1 %v5372_v38  ;;  %v5668_v38 = vsel %vm1594_vm11, %v5666_v54, %v5667_v42 }
 0x3c7   : > { %7247 = vmatpush3.bf16.msra.mxu1 %v7813_v17  ;;  %7234 = vmatprep.mubr.bf16.mxu1 %v5384_v31  ;;  %v5663_v17 = vrot.slane %v5633_v33, 1  ;;  %v5673_v31 = vrot.slane %v9375_v0, 1  ;;  %v5880_v0 = vunpack.c.h.bf16 %v5863_v45 }
 0x3c8   : > { %7248 = vmatprep.subr.bf16.mxu1 %v7814_v21 }
 0x3c9   : > { %v5665_v36 = vsel %vm1594_vm11, %v5663_v17, %v5664_v49  ;;  %v5939_v17 = vrot.slane %v5886_v44, 1  ;;  %v5873_v49 = vld [vmem:[#allocation2 + $0x70] sm:$0xff] }
 0x3cb   : > { %7249 = vmatpush3.bf16.msra.mxu1 %v7814_v21  ;;  %v5672_v21 = vrot.slane %v5636_v53, 1  ;;  %v5941_v53 = vrot.slane %v5887_v50, 1  ;;  %v5898_v50 = vunpack.c.h.bf16 %v5875_v63 }
 0x3cc   : > { %7250 = vmatprep.subr.bf16.mxu1 %v7815_v32 }
 0x3cd   : > { %v5674_v48 = vsel %vm1594_vm11, %v5672_v21, %v5673_v31 }
 0x3ce   : > { %7235 = vmatmul.mubr.bf16.gmra.mrb[24].mxu1 %v5396_v10  ;;  %v5884_v10 = vunpack.c.l.bf16 %v5866_v9 }
 0x3cf   : > { %7251 = vmatpush3.bf16.msra.mxu1 %v7815_v32  ;;  %7238 = vmatprep.mubr.bf16.mxu1 %v5408_v29  ;;  %v5882_v32 = vunpack.c.l.bf16 %v5865_v7  ;;  %v5929_v29 = vrot.slane %v5880_v0, 1 }
 0x3d0   : > { %7252 = vmatprep.subr.bf16.mxu1 %v7816_v59  ;;  %v5936_v56 = vrot.slane %v5884_v10, 1 }
 0x3d1   : > { %v5933_v8 = vrot.slane %v5882_v32, 1 }
 0x3d2   : > { %v5937_v15 = vsel %vm1594_vm11, %v5934_v13, %v5936_v56 }
 0x3d3   : > { %7253 = vmatpush3.bf16.msra.mxu1 %v7816_v59  ;;  %v5928_v59 = vrot.slane %v5879_v4, 1 }
 0x3d4   : > { %7254 = vmatprep.subr.bf16.mxu1 %v7817_v27 }
 0x3d5   : > { %v5930_v23 = vsel %vm1594_vm11, %v5928_v59, %v5929_v29 }
 0x3d6   : > { %7239 = vmatmul.mubr.bf16.gmra.mrb[28].mxu1 %v5420_v47  ;;  %v5935_v47 = vsel %vm1594_vm11, %v5933_v8, %v5934_v13  ;;  %v5893_v8 = vunpack.c.l.bf16 %v5872_v5 }
 0x3d7   : > { %7255 = vmatpush3.bf16.msra.mxu1 %v7817_v27  ;;  %7242 = vmatprep.mubr.bf16.mxu1 %v5432_v41  ;;  %v5931_v27 = vrot.slane %v5881_v40, 1  ;;  %v5942_v40 = vsel %vm1594_vm11, %v5939_v17, %v5941_v53 }
 0x3d8   : > { %7256 = vmatprep.subr.bf16.mxu1 %v7818_v6 }
 0x3d9   : > { %v5932_v62 = vsel %vm1594_vm11, %v5929_v29, %v5931_v27 }
 0x3db   : > { %7257 = vmatpush3.bf16.msra.mxu1 %v7818_v6 }
 0x3dc   : > { %7258 = vmatprep.subr.bf16.mxu1 %v7819_v46 }
 0x3de   : > { %7243 = vmatmul.mubr.bf16.gmra.mrb[32].mxu1 %v5444_v18  ;;  %v5890_v18 = vunpack.c.l.bf16 %v5870_v35 }
 0x3df   : > { %7259 = vmatpush3.bf16.msra.mxu1 %v7819_v46  ;;  %7262 = vmatprep.mubr.bf16.mxu1 %v5656_v61 }
 0x3e0   : > { %7260 = vmatprep.subr.bf16.mxu1 %v7820_v60 }
 0x3e3   : > { %7261 = vmatpush3.bf16.msra.mxu1 %v7820_v60 }
 0x3e6   : > { %7263 = vmatmul.mubr.bf16.vlgmr.msra.gmra.mrb[20].mxu1 %v5659_v24  ;;  %v5944_v24 = vrot.slane %v5889_v2, 1  ;;  %v5956_v2 = vrot.slane %v5896_v26, 1 }
 0x3e7   : > { %7266 = vmatprep.mubr.bf16.mxu1 %v5662_v55 }
 0x3e8   : > { %v5945_v31 = vsel %vm1594_vm11, %v5943_v11, %v5944_v24 }
 0x3ee   : > { %7267 = vmatmul.mubr.bf16.gmra.mrb[24].mxu1 %v5665_v36  ;;  %v5946_v36 = vrot.slane %v5890_v18, 1  ;;  %v5876_v18 = vld [vmem:[#allocation2 + $0x88] sm:$0x1] }
 0x3ef   : > { %7270 = vmatprep.mubr.bf16.mxu1 %v5668_v38  ;;  %v5871_v38 = vld [vmem:[#allocation2 + $0x60] sm:$0xff] }
 0x3f0   : > { %v5891_v7 = vunpack.c.l.bf16 %v5871_v38  ;;  %v5892_v45 = vunpack.c.h.bf16 %v5871_v38  ;;  %v5947_v30 = vsel %vm1594_vm11, %v5944_v24, %v5946_v36 }
 0x3f2   : > { %v5948_v27 = vrot.slane %v5891_v7, 1  ;;  %v5949_v35 = vrot.slane %v5892_v45, 1 }
 0x3f6   : > { %7271 = vmatmul.mubr.bf16.gmra.mrb[28].mxu1 %v5671_v20  ;;  %v5894_v20 = vunpack.c.l.bf16 %v5873_v49 }
 0x3f7   : > { %7274 = vmatprep.mubr.bf16.mxu1 %v5674_v48  ;;  %v5895_v48 = vunpack.c.h.bf16 %v5873_v49  ;;  %v5899_v49 = vunpack.c.l.bf16 %v5876_v18 }
 0x3f8   : > { %v5953_v29 = vrot.slane %v5894_v20, 1 }
 0x3f9   : > { %v5954_v19 = vrot.slane %v5895_v48, 1  ;;  %v5961_v5 = vrot.slane %v5899_v49, 1 }
 0x3fb   : > { %v5957_v11 = vsel %vm1594_vm11, %v5954_v19, %v5956_v2 }
 0x3fe   : > { %7275 = vmatmul.mubr.bf16.gmra.mrb[32].mxu1 %v5677_v51  ;;  %v5940_v51 = vsel %vm1594_vm11, %v5938_v34, %v5939_v17 }
 0x4b9   : > { %v7264_v39 = vpop.f32.mrb[20].mxu1 }
 0x4ba   : > { %v5993_v6 = vadd.f32 %v7264_v39, %v9424_v14  ;;  %v5784_v41 = vpop.f32.mrb[21].mxu1  ;;  %v5877_v39 = vld [vmem:[#allocation2 + $0x90] sm:$0xff] }
 0x4bb   : > { %v5991_v46 = vadd.f32 %v9424_v14, %v5784_v41  ;;  %v7265_v1 = vpop.f32.mrb[22].mxu1  ;;  %v5951_v41 = vrot.slane %v5893_v8, 1 }
 0x4bc   : > { %v6009_v60 = vadd.f32 %v5993_v6, %v5935_v47  ;;  %v5994_v61 = vadd.f32 %v7265_v1, %v9424_v14  ;;  %v5787_v58 = vpop.f32.mrb[23].mxu1  ;;  %v5900_v1 = vunpack.c.l.bf16 %v5877_v39 }
 0x4bd   : > { %v6007_v3 = vadd.f32 %v5991_v46, %v5930_v23  ;;  %v5992_v22 = vadd.f32 %v9424_v14, %v5787_v58  ;;  %v5878_v23 = vld [vmem:[#allocation2 + $0x98] sm:$0x1]  ;;  %v5955_v46 = vsel %vm1594_vm11, %v5953_v29, %v5954_v19  ;;  %v5950_v58 = vsel %vm1594_vm11, %v5948_v27, %v5949_v35 }
 0x4be   : > { %v6025_v55 = vmax.f32 %v6009_v60, 0.0  ;;  %v6010_v33 = vadd.f32 %v5994_v61, %v5937_v15  ;;  %v5901_v15 = vunpack.c.h.bf16 %v5877_v39  ;;  %v5902_v24 = vunpack.c.l.bf16 %v5878_v23 }
 0x4bf   : > { %v6023_v54 = vmax.f32 %v6007_v3, 0.0  ;;  %v6008_v42 = vadd.f32 %v5992_v22, %v5932_v62  ;;  %v5897_v62 = vunpack.c.l.bf16 %v5875_v63  ;;  %v5952_v17 = vsel %vm1594_vm11, %v5949_v35, %v5951_v41 }
 0x4c0   : > { %6041 = vst [vmem:[%s8106_s8 + $0x10] sm:$0xff] %v6025_v55  ;;  %v6026_v28 = vmax.f32 %v6010_v33, 0.0  ;;  %v5963_v36 = vrot.slane %v5900_v1, 1  ;;  %v5964_v38 = vrot.slane %v5901_v15, 1  ;;  %v5966_v20 = vrot.slane %v5902_v24, 1 }
 0x4c1   : > { %6039 = vst [vmem:[%s8106_s8] sm:$0xff] %v6023_v54  ;;  %v6024_v16 = vmax.f32 %v6008_v42, 0.0  ;;  %v7268_v21 = vpop.f32.mrb[24].mxu1  ;;  %v5958_v43 = vrot.slane %v5897_v62, 1 }
 0x4c2   : > { %6042 = vst [vmem:[%s8106_s8 + $0x18] sm:$0xff] %v6026_v28  ;;  %v5997_v25 = vadd.f32 %v7268_v21, %v9424_v14  ;;  %v5800_v57 = vpop.f32.mrb[25].mxu1  ;;  %v5967_v26 = vsel %vm1594_vm11, %v5964_v38, %v5966_v20 }
 0x4c3   : > { %6040 = vst [vmem:[%s8106_s8 + $0x8] sm:$0xff] %v6024_v16  ;;  %v5995_v9 = vadd.f32 %v9424_v14, %v5800_v57  ;;  %v7269_v32 = vpop.f32.mrb[26].mxu1  ;;  %v5959_v16 = vrot.slane %v5898_v50, 1 }
 0x4c4   : > { %v6013_v4 = vadd.f32 %v5997_v25, %v5945_v31  ;;  %v5998_v0 = vadd.f32 %v7269_v32, %v9424_v14  ;;  %v5803_v10 = vpop.f32.mrb[27].mxu1 }
 0x4c5   : > { %v6011_v13 = vadd.f32 %v5995_v9, %v5940_v51  ;;  %v5996_v59 = vadd.f32 %v9424_v14, %v5803_v10  ;;  %v5965_v51 = vsel %vm1594_vm11, %v5963_v36, %v5964_v38  ;;  %v5960_v9 = vsel %vm1594_vm11, %v5958_v43, %v5959_v16 }
 0x4c6   : > { %v6029_v56 = vmax.f32 %v6013_v4, 0.0  ;;  %v6014_v12 = vadd.f32 %v5998_v0, %v5947_v30 }
 0x4c7   : > { %v6027_v47 = vmax.f32 %v6011_v13, 0.0  ;;  %v6012_v52 = vadd.f32 %v5996_v59, %v5942_v40  ;;  %v5962_v40 = vsel %vm1594_vm11, %v5959_v16, %v5961_v5 }
 0x4c8   : > { %6045 = vst [vmem:[%s8106_s8 + $0x30] sm:$0xff] %v6029_v56  ;;  %v6030_v6 = vmax.f32 %v6014_v12, 0.0 }
 0x4c9   : > { %6043 = vst [vmem:[%s8106_s8 + $0x20] sm:$0xff] %v6027_v47  ;;  %v6028_v37 = vmax.f32 %v6012_v52, 0.0  ;;  %v7272_v44 = vpop.f32.mrb[28].mxu1 }
 0x4ca   : > { %6046 = vst [vmem:[%s8106_s8 + $0x38] sm:$0xff] %v6030_v6  ;;  %v6001_v60 = vadd.f32 %v7272_v44, %v9424_v14  ;;  %v5816_v61 = vpop.f32.mrb[29].mxu1 }
 0x4cb   : > { %6044 = vst [vmem:[%s8106_s8 + $0x28] sm:$0xff] %v6028_v37  ;;  %v5999_v3 = vadd.f32 %v9424_v14, %v5816_v61  ;;  %v7273_v22 = vpop.f32.mrb[30].mxu1 }
 0x4cc   : > { %v6017_v55 = vadd.f32 %v6001_v60, %v5955_v46  ;;  %v6002_v33 = vadd.f32 %v7273_v22, %v9424_v14  ;;  %v5819_v34 = vpop.f32.mrb[31].mxu1 }
 0x4cd   : > { %v6015_v54 = vadd.f32 %v5999_v3, %v5950_v58  ;;  %v6000_v42 = vadd.f32 %v9424_v14, %v5819_v34 }
 0x4ce   : > { %v6033_v28 = vmax.f32 %v6017_v55, 0.0  ;;  %v6018_v53 = vadd.f32 %v6002_v33, %v5957_v11 }
 0x4cf   : > { %v6031_v21 = vmax.f32 %v6015_v54, 0.0  ;;  %v6016_v31 = vadd.f32 %v6000_v42, %v5952_v17 }
 0x4d0   : > { %6049 = vst [vmem:[%s8106_s8 + $0x50] sm:$0xff] %v6033_v28  ;;  %v6034_v48 = vmax.f32 %v6018_v53, 0.0 }
 0x4d1   : > { %6047 = vst [vmem:[%s8106_s8 + $0x40] sm:$0xff] %v6031_v21  ;;  %v6032_v25 = vmax.f32 %v6016_v31, 0.0  ;;  %v7276_v57 = vpop.f32.mrb[32].mxu1 }
 0x4d2   : > { %6050 = vst [vmem:[%s8106_s8 + $0x58] sm:$0xff] %v6034_v48  ;;  %v6005_v7 = vadd.f32 %v7276_v57, %v9424_v14  ;;  %v5832_v45 = vpop.f32.mrb[33].mxu1 }
 0x4d3   : > { %6048 = vst [vmem:[%s8106_s8 + $0x48] sm:$0xff] %v6032_v25  ;;  %v6003_v32 = vadd.f32 %v9424_v14, %v5832_v45  ;;  %v7277_v30 = vpop.f32.mrb[34].mxu1 }
 0x4d4   : > { %v6021_v4 = vadd.f32 %v6005_v7, %v5965_v51  ;;  %v6006_v0 = vadd.f32 %v7277_v30, %v9424_v14  ;;  %v5835_v10 = vpop.f32.mrb[35].mxu1 }
 0x4d5   : > { %v6019_v8 = vadd.f32 %v6003_v32, %v5960_v9  ;;  %v6004_v13 = vadd.f32 %v9424_v14, %v5835_v10 }
 0x4d6   : > { %v6037_v59 = vmax.f32 %v6021_v4, 0.0  ;;  %v6022_v29 = vadd.f32 %v6006_v0, %v5967_v26 }
 0x4d7   : > { %v6035_v19 = vmax.f32 %v6019_v8, 0.0  ;;  %v6020_v56 = vadd.f32 %v6004_v13, %v5962_v40 }
 0x4d8   : > { %6053 = vst [vmem:[%s8106_s8 + $0x70] sm:$0xff] %v6037_v59  ;;  %v6038_v12 = vmax.f32 %v6022_v29, 0.0 }
 0x4d9   : > { %6051 = vst [vmem:[%s8106_s8 + $0x60] sm:$0xff] %v6035_v19  ;;  %v6036_v14 = vmax.f32 %v6020_v56, 0.0 }
 0x4da   : > { %6054 = vst [vmem:[%s8106_s8 + $0x78] sm:$0xff] %v6038_v12 }
 0x4db   : > { %6052 = vst [vmem:[%s8106_s8 + $0x68] sm:$0xff] %v6036_v14 }
 0x4dc   : > { %7834 = shalt.err (!%p7831_p12)
}
 0x4dd   : > { %s7835_s12 = scalar_lea.hbm %s9477_s13, 2048  ;;  %s7839_s9 = scalar_lea.hbm %s9543_s5, 8192 }
 0x4de   : > { %p7836_p13 = scmp.ne.s32.totalorder %s9477_s13, %s7835_s12  ;;  %p7840_p2 = scmp.lt.u32.totalorder %s9477_s13, %s9543_s5 }
 0x4df   : > { %p7841_p4 = scmp.lt.u32.totalorder %s7839_s9, %s7835_s12  ;;  %p7843_p6 = scmp.lt.u32.totalorder %s7835_s12, %s9477_s13 }
 0x4e0   : > { %p7837_p0 = pnand %p7836_p13, %p8005_p3 }
 0x4e1   : > { %p7842_p5 = por %p7841_p4, %p7840_p2 }
 0x4e2   : > { %p7838_p1 = pneg %p7837_p0 }
 0x4e3   : > { %p7844_p7 = por %p7843_p6, %p7842_p5 }
 0x4e5   : > { %p7845_p9 = pnand %p7844_p7, %p7838_p1 }
 0x4e7   : > { %7848 = shalt.err (!%p7845_p9)
}
 0x4e8   : > { %s7922_s15 = smov 128   ;;  %s7923_s17 = smov 8  }
 0x4e9   : > { %7566 = dma.vmem_to_hbm [thread:$0]  (%p8005_p3), %s9479_s22, 2048, %s9477_s13, %s9486_s16, %s7922_s15, %s7922_s15, %s7923_s17  }
 0x4ea PF: > { %p7572_p10 = scmp.ge.s32.totalorder %s7915_s25, 2  ;;  %s6087_s14 = sand.u32 1, %s7887_s18  }
 0x4eb   : > { %s6088_s26 = scalar_lea.sflag [#allocation5], %s6087_s14 }
 0x4ec   : > { %p7569_p11 = pnand %p7572_p10, %p8014_p8 }
 0x4ee   : > { %7882 = dma.done.wait (!%p7569_p11), %s6088_s26, 2048  }
 0x4ef   : > { %7884 = vsyncadd (!%p7569_p11), %s6088_s26, 4294965248  ;;  %s18_s25 = sadd.s32 1, %s7915_s25   ;;  %s9559_s18 = smov %s7891_s19 }
 0x4f0   : > { %p15_p12 = scmp.ge.s32.totalorder %s18_s25, 6   ;;  %s9560_s19 = smov %s7895_s20 }
 0x4f1   : > { %s9561_s20 = smov %s8023_s11  ;;  %s9562_s21 = smov %s7907_s23 }
 0x4f2   : > { %s9563_s22 = smov %s7911_s24  ;;  %s9564_s23 = smov %s9567_s28 }
 0x4f3   : > { %s9565_s24 = smov %s9571_s29  ;;  %17 = sbr.rel (!%p15_p12) target bundleno = 5 (0x5), region = 104 }
 0x4fa   :  { %6093 = vsyncpa [#allocation5], 1 }
 0x4fb   :  { %6095 = vsyncpa [#allocation5 + $0x1], 1 }

</bundles_post_ra>
